<compile_context>
chip_gen: v5e
topology: v5e:2x2
jax: 0.10.0
libtpu: 0.0.40
codegen_flags: <defaults>
</compile_context>

<pallas_src>
import jax
import jax.numpy as jnp
from jax import lax
from jax.experimental import pallas as pl
from jax.experimental.pallas import tpu as pltpu


def _round_up(x, m):
    return (x + m - 1) // m * m


# ---------------------------------------------------------------------------
# Pallas kernel: out_tile = relu(A_tile @ W + b)
#   A_tile: (tile_m, K) bf16   W: (K, N) bf16   b: (1, N) f32   out: (tile_m, N)
# Accumulation in f32 on the MXU (preferred_element_type).
# ---------------------------------------------------------------------------
def _matmul_bias_relu_kernel(a_ref, w_ref, b_ref, o_ref):
    acc = jnp.dot(a_ref[...], w_ref[...], preferred_element_type=jnp.float32)
    acc = acc + b_ref[...]
    o_ref[...] = jnp.maximum(acc, 0.0).astype(o_ref.dtype)


def pallas_matmul_bias_relu(a, w, b2d, *, out_dtype=jnp.bfloat16, tile_m=256):
    """relu(a @ w + b) with an M-tiled, parallel Pallas grid."""
    M, K = a.shape
    K2, N = w.shape
    assert K == K2
    assert b2d.shape == (1, N)

    tile_m = min(tile_m, _round_up(M, 8))          # multiple of 8 (sublane rule)
    Mp = _round_up(M, tile_m)                      # pad M so the grid is exact
    if Mp != M:
        a = jnp.pad(a, ((0, Mp - M), (0, 0)))
    grid = (Mp // tile_m,)

    out_itemsize = jnp.dtype(out_dtype).itemsize
    cost = pl.CostEstimate(
        flops=2 * Mp * K * N,
        transcendentals=0,
        bytes_accessed=(Mp * K * a.dtype.itemsize
                        + K * N * w.dtype.itemsize
                        + N * 4
                        + Mp * N * out_itemsize),
    )

    out = pl.pallas_call(
        _matmul_bias_relu_kernel,
        out_shape=jax.ShapeDtypeStruct((Mp, N), out_dtype),
        grid_spec=pltpu.PrefetchScalarGridSpec(
            num_scalar_prefetch=0,
            grid=grid,
            in_specs=[
                pl.BlockSpec((tile_m, K), lambda i: (i, 0)),   # A: streamed tiles
                pl.BlockSpec((K, N), lambda i: (0, 0)),        # W: resident
                pl.BlockSpec((1, N), lambda i: (0, 0)),        # b: resident
            ],
            out_specs=pl.BlockSpec((tile_m, N), lambda i: (i, 0)),
        ),
        compiler_params=pltpu.CompilerParams(
            dimension_semantics=("parallel",),      # pipelined; 2 TCs on v7x
            vmem_limit_bytes=32 * 1024 * 1024,      # safe on 64 MiB v7x VMEM
        ),
        cost_estimate=cost,
    )(a, w, b2d)

    return out[:M] if Mp != M else out


# ---------------------------------------------------------------------------
# im2col glue (XLA, bf16): NHWC input -> (N*Ho*Wo, kh*kw*C) patch matrix.
# Patch feature order is (kh, kw, c), matching the weight-matrix row order.
# ---------------------------------------------------------------------------
def im2col(x_nhwc, k, stride):
    n, h, w, c = x_nhwc.shape
    ho = (h - k) // stride + 1
    wo = (w - k) // stride + 1
    patches = []
    for i in range(k):
        for j in range(k):
            patches.append(
                x_nhwc[:, i:i + stride * ho:stride, j:j + stride * wo:stride, :]
            )  # (n, ho, wo, c)
    p = jnp.stack(patches, axis=3)            # (n, ho, wo, k*k, c)
    p = p.reshape(n * ho * wo, k * k * c)     # (M, K)
    return p, ho, wo


def conv2d_relu(x_nhwc, w_mat, b2d, *, k, stride, out_dtype=jnp.bfloat16):
    """Conv2d (VALID) + bias + ReLU; weights pre-flattened to (k*k*Cin, Cout)."""
    n = x_nhwc.shape[0]
    out_c = w_mat.shape[1]
    patches, ho, wo = im2col(x_nhwc, k, stride)
    y = pallas_matmul_bias_relu(patches, w_mat, b2d, out_dtype=out_dtype)
    return y.reshape(n, ho, wo, out_c)


# ---------------------------------------------------------------------------
# Parameters: PyTorch-layout construction, then a one-time "prepare" step that
# bakes all layout permutations / the 1/255 scale / bf16 casts into the
# weights (done once, outside the per-step forward).
# ---------------------------------------------------------------------------
def make_params(num_inputs, hidden_size, key):
    ks = jax.random.split(key, 4)

    def w(k, shape):
        fan_in = 1
        for d in shape[1:]:
            fan_in *= d
        return jax.random.normal(k, shape, jnp.float32) * (1.0 / jnp.sqrt(fan_in))

    return {
        "conv1_w": w(ks[0], (32, num_inputs, 8, 8)),
        "conv1_b": jnp.zeros((32,), jnp.float32),
        "conv2_w": w(ks[1], (64, 32, 4, 4)),
        "conv2_b": jnp.zeros((64,), jnp.float32),
        "conv3_w": w(ks[2], (32, 64, 3, 3)),
        "conv3_b": jnp.zeros((32,), jnp.float32),
        "fc_w": w(ks[3], (hidden_size, 32 * 7 * 7)),   # PyTorch Linear: (out, in)
        "fc_b": jnp.zeros((hidden_size,), jnp.float32),
    }


def prepare_params(params):
    """One-time conversion to inference-ready Pallas operands."""
    def conv_w_mat(w_oihw, scale=1.0):
        out_c, in_c, kh, kw = w_oihw.shape
        m = jnp.transpose(w_oihw, (2, 3, 1, 0)).reshape(kh * kw * in_c, out_c)
        if scale != 1.0:
            m = m * jnp.float32(scale)          # fold 1/255 into conv1 weights
        return m.astype(jnp.bfloat16)

    fc_w = params["fc_w"]                        # (hidden, 1568), in-dim (c,h,w)
    hidden = fc_w.shape[0]
    # Permute the input dim from PyTorch's (c, h, w) flatten order to the NHWC
    # (h, w, c) flatten order so the conv3 output can be flattened directly.
    fc_w_hwc = jnp.transpose(fc_w.reshape(hidden, 32, 7, 7),
                             (2, 3, 1, 0)).reshape(7 * 7 * 32, hidden)

    return {
        "w1": conv_w_mat(params["conv1_w"], scale=1.0 / 255.0),
        "b1": params["conv1_b"].reshape(1, -1).astype(jnp.float32),
        "w2": conv_w_mat(params["conv2_w"]),
        "b2": params["conv2_b"].reshape(1, -1).astype(jnp.float32),
        "w3": conv_w_mat(params["conv3_w"]),
        "b3": params["conv3_b"].reshape(1, -1).astype(jnp.float32),
        "w_fc": fc_w_hwc.astype(jnp.bfloat16),
        "b_fc": params["fc_b"].reshape(1, -1).astype(jnp.float32),
    }


# ---------------------------------------------------------------------------
# CNN.forward: inputs NCHW, returns (features, rnn_hxs).
# recurrent=False (module default), so rnn_hxs passes through untouched.
# ---------------------------------------------------------------------------
def cnn_forward(prep, inputs_nchw, rnn_hxs, masks):
    # NCHW -> NHWC; values 0..255 are representable in bf16; /255 is folded
    # into the conv1 weight matrix.
    x = jnp.transpose(inputs_nchw, (0, 2, 3, 1)).astype(jnp.bfloat16)

    x = conv2d_relu(x, prep["w1"], prep["b1"], k=8, stride=4)   # (N,20,20,32)
    x = conv2d_relu(x, prep["w2"], prep["b2"], k=4, stride=2)   # (N, 9, 9,64)
    x = conv2d_relu(x, prep["w3"], prep["b3"], k=3, stride=1)   # (N, 7, 7,32)

    # NHWC flatten; fc weights were pre-permuted to consume this order.
    n = x.shape[0]
    flat = x.reshape(n, -1)                                     # (N, 1568)

    features = pallas_matmul_bias_relu(flat, prep["w_fc"], prep["b_fc"],
                                       out_dtype=jnp.float32)   # (N, hidden)
    return features, rnn_hxs


# ---------------------------------------------------------------------------
# Pure-JAX f32 reference (lax.conv) on the original PyTorch-layout params.
# ---------------------------------------------------------------------------
def cnn_forward_ref(params, inputs_nchw, rnn_hxs, masks):
    x = jnp.transpose(inputs_nchw.astype(jnp.float32), (0, 2, 3, 1)) / 255.0
    dn = ("NHWC", "HWIO", "NHWC")

    def conv(x, w_oihw, b, s):
        w = jnp.transpose(w_oihw, (2, 3, 1, 0))  # OIHW -> HWIO
        y = lax.conv_general_dilated(x, w, (s, s), "VALID", dimension_numbers=dn)
        return jnp.maximum(y + b, 0.0)

    x = conv(x, params["conv1_w"], params["conv1_b"], 4)
    x = conv(x, params["conv2_w"], params["conv2_b"], 2)
    x = conv(x, params["conv3_w"], params["conv3_b"], 1)
    n = x.shape[0]
    flat = jnp.transpose(x, (0, 3, 1, 2)).reshape(n, -1)
    feats = jnp.maximum(flat @ params["fc_w"].T + params["fc_b"], 0.0)
    return feats, rnn_hxs


if __name__ == "__main__":
    key = jax.random.PRNGKey(0)
    k_x, k_p = jax.random.split(key)

    batch = 2
    num_inputs = 4           # input channels
    hidden_size = 512
    H = W = 84               # required by the 32*7*7 Linear of the module

    # Synthetic "pixel" inputs in [0, 255), NCHW like PyTorch.
    x = jax.random.uniform(k_x, (batch, num_inputs, H, W), jnp.float32, 0.0, 255.0)
    rnn_hxs = jnp.zeros((batch, 1), jnp.float32)   # recurrent_hidden_state_size == 1
    masks = jnp.ones((batch, 1), jnp.float32)

    params = make_params(num_inputs, hidden_size, k_p)
    prep = prepare_params(params)                  # one-time weight prep

    fwd = jax.jit(cnn_forward)
    features, hxs_out = fwd(prep, x, rnn_hxs, masks)
    features = jax.block_until_ready(features)

    # Sanity-check against the f32 reference (bf16 matmul operands -> loosen tol).
    feats_ref, _ = cnn_forward_ref(params, x, rnn_hxs, masks)
    assert features.shape == (batch, hidden_size)
    assert hxs_out.shape == rnn_hxs.shape
    max_err = float(jnp.max(jnp.abs(features - feats_ref)))
    assert jnp.allclose(features, feats_ref, atol=5e-2, rtol=5e-2), max_err

    print("KERNEL_OK")
</pallas_src>

<mosaic_0001>
module attributes {stable_mosaic.version = 11 : i64} {
  func.func @_matmul_bias_relu_kernel(%arg0: i32, %arg1: memref<256x256xbf16, #tpu.memory_space<vmem>>, %arg2: memref<256x32xbf16, #tpu.memory_space<vmem>>, %arg3: memref<1x32xf32, #tpu.memory_space<vmem>>, %arg4: memref<256x32xbf16, #tpu.memory_space<vmem>>) attributes {dimension_semantics = [#tpu.dimension_semantics<parallel>], iteration_bounds = array<i64: 4>, scalar_prefetch = 0 : i64, scratch_operands = 0 : i64, tpu.core_type = #tpu.core_type<tc>, window_params = [{transform_indices = @transform_0, window_bounds = array<i64: 256, 256>}, {pipeline_mode = #tpu.pipeline_mode<synchronous>, transform_indices = @transform_1, window_bounds = array<i64: 256, 32>}, {pipeline_mode = #tpu.pipeline_mode<synchronous>, transform_indices = @transform_2, window_bounds = array<i64: 1, 32>}, {transform_indices = @transform_3, window_bounds = array<i64: 256, 32>}]} {
    %c0 = arith.constant 0 : index
    %c0_0 = arith.constant 0 : index
    %0 = vector.load %arg1[%c0, %c0_0] : memref<256x256xbf16, #tpu.memory_space<vmem>>, vector<256x256xbf16>
    %c0_1 = arith.constant 0 : index
    %c0_2 = arith.constant 0 : index
    %1 = vector.load %arg2[%c0_1, %c0_2] : memref<256x32xbf16, #tpu.memory_space<vmem>>, vector<256x32xbf16>
    %cst = arith.constant dense<0.000000e+00> : vector<256x32xf32>
    %2 = tpu.matmul %0, %1, %cst {dimension_numbers = #tpu.dot_dimension_numbers<[1], [0], [0], [1], [0, 0, 1, 1], [], []>} : vector<256x256xbf16>, vector<256x32xbf16>, vector<256x32xf32> -> vector<256x32xf32>
    %c0_3 = arith.constant 0 : index
    %c0_4 = arith.constant 0 : index
    %3 = vector.load %arg3[%c0_3, %c0_4] : memref<1x32xf32, #tpu.memory_space<vmem>>, vector<1x32xf32>
    %4 = vector.broadcast %3 : vector<1x32xf32> to vector<256x32xf32>
    %5 = arith.addf %2, %4 : vector<256x32xf32>
    %cst_5 = arith.constant 0.000000e+00 : f32
    %6 = vector.broadcast %cst_5 : f32 to vector<256x32xf32>
    %7 = arith.maximumf %5, %6 : vector<256x32xf32>
    %8 = arith.truncf %7 : vector<256x32xf32> to vector<256x32xbf16>
    %c0_6 = arith.constant 0 : index
    %c0_7 = arith.constant 0 : index
    %9 = vector.load %arg4[%c0_6, %c0_7] : memref<256x32xbf16, #tpu.memory_space<vmem>>, vector<256x32xbf16>
    tpu.vector_store %arg4[%c0_6, %c0_7], %8 {strides = array<i32>} : memref<256x32xbf16, #tpu.memory_space<vmem>>, vector<256x32xbf16>,
    return
  }
  func.func @transform_0(%arg0: i32) -> (i32, i32) {
    %c0_i32 = arith.constant 0 : i32
    %c0_i32_0 = arith.constant 0 : i32
    return %arg0, %c0_i32 : i32, i32
  }
  func.func @transform_1(%arg0: i32) -> (i32, i32) {
    %c0_i32 = arith.constant 0 : i32
    %c0_i32_0 = arith.constant 0 : i32
    %c0_i32_1 = arith.constant 0 : i32
    return %c0_i32, %c0_i32_0 : i32, i32
  }
  func.func @transform_2(%arg0: i32) -> (i32, i32) {
    %c0_i32 = arith.constant 0 : i32
    %c0_i32_0 = arith.constant 0 : i32
    %c0_i32_1 = arith.constant 0 : i32
    return %c0_i32, %c0_i32_0 : i32, i32
  }
  func.func @transform_3(%arg0: i32) -> (i32, i32) {
    %c0_i32 = arith.constant 0 : i32
    %c0_i32_0 = arith.constant 0 : i32
    return %arg0, %c0_i32 : i32, i32
  }
}

module attributes {stable_mosaic.version = 11 : i64} {
  func.func @_matmul_bias_relu_kernel(%arg0: i32, %arg1: memref<168x512xbf16, #tpu.memory_space<vmem>>, %arg2: memref<512x64xbf16, #tpu.memory_space<vmem>>, %arg3: memref<1x64xf32, #tpu.memory_space<vmem>>, %arg4: memref<168x64xbf16, #tpu.memory_space<vmem>>) attributes {dimension_semantics = [#tpu.dimension_semantics<parallel>], iteration_bounds = array<i64: 1>, scalar_prefetch = 0 : i64, scratch_operands = 0 : i64, tpu.core_type = #tpu.core_type<tc>, window_params = [{transform_indices = @transform_0, window_bounds = array<i64: 168, 512>}, {pipeline_mode = #tpu.pipeline_mode<synchronous>, transform_indices = @transform_1, window_bounds = array<i64: 512, 64>}, {pipeline_mode = #tpu.pipeline_mode<synchronous>, transform_indices = @transform_2, window_bounds = array<i64: 1, 64>}, {transform_indices = @transform_3, window_bounds = array<i64: 168, 64>}]} {
    %c0 = arith.constant 0 : index
    %c0_0 = arith.constant 0 : index
    %0 = vector.load %arg1[%c0, %c0_0] : memref<168x512xbf16, #tpu.memory_space<vmem>>, vector<168x512xbf16>
    %c0_1 = arith.constant 0 : index
    %c0_2 = arith.constant 0 : index
    %1 = vector.load %arg2[%c0_1, %c0_2] : memref<512x64xbf16, #tpu.memory_space<vmem>>, vector<512x64xbf16>
    %cst = arith.constant dense<0.000000e+00> : vector<168x64xf32>
    %2 = tpu.matmul %0, %1, %cst {dimension_numbers = #tpu.dot_dimension_numbers<[1], [0], [0], [1], [0, 0, 1, 1], [], []>} : vector<168x512xbf16>, vector<512x64xbf16>, vector<168x64xf32> -> vector<168x64xf32>
    %c0_3 = arith.constant 0 : index
    %c0_4 = arith.constant 0 : index
    %3 = vector.load %arg3[%c0_3, %c0_4] : memref<1x64xf32, #tpu.memory_space<vmem>>, vector<1x64xf32>
    %4 = vector.broadcast %3 : vector<1x64xf32> to vector<168x64xf32>
    %5 = arith.addf %2, %4 : vector<168x64xf32>
    %cst_5 = arith.constant 0.000000e+00 : f32
    %6 = vector.broadcast %cst_5 : f32 to vector<168x64xf32>
    %7 = arith.maximumf %5, %6 : vector<168x64xf32>
    %8 = arith.truncf %7 : vector<168x64xf32> to vector<168x64xbf16>
    %c0_6 = arith.constant 0 : index
    %c0_7 = arith.constant 0 : index
    %9 = vector.load %arg4[%c0_6, %c0_7] : memref<168x64xbf16, #tpu.memory_space<vmem>>, vector<168x64xbf16>
    tpu.vector_store %arg4[%c0_6, %c0_7], %8 {strides = array<i32>} : memref<168x64xbf16, #tpu.memory_space<vmem>>, vector<168x64xbf16>,
    return
  }
  func.func @transform_0(%arg0: i32) -> (i32, i32) {
    %c0_i32 = arith.constant 0 : i32
    %c0_i32_0 = arith.constant 0 : i32
    return %arg0, %c0_i32 : i32, i32
  }
  func.func @transform_1(%arg0: i32) -> (i32, i32) {
    %c0_i32 = arith.constant 0 : i32
    %c0_i32_0 = arith.constant 0 : i32
    %c0_i32_1 = arith.constant 0 : i32
    return %c0_i32, %c0_i32_0 : i32, i32
  }
  func.func @transform_2(%arg0: i32) -> (i32, i32) {
    %c0_i32 = arith.constant 0 : i32
    %c0_i32_0 = arith.constant 0 : i32
    %c0_i32_1 = arith.constant 0 : i32
    return %c0_i32, %c0_i32_0 : i32, i32
  }
  func.func @transform_3(%arg0: i32) -> (i32, i32) {
    %c0_i32 = arith.constant 0 : i32
    %c0_i32_0 = arith.constant 0 : i32
    return %arg0, %c0_i32 : i32, i32
  }
}

module attributes {stable_mosaic.version = 11 : i64} {
  func.func @_matmul_bias_relu_kernel(%arg0: i32, %arg1: memref<104x576xbf16, #tpu.memory_space<vmem>>, %arg2: memref<576x32xbf16, #tpu.memory_space<vmem>>, %arg3: memref<1x32xf32, #tpu.memory_space<vmem>>, %arg4: memref<104x32xbf16, #tpu.memory_space<vmem>>) attributes {dimension_semantics = [#tpu.dimension_semantics<parallel>], iteration_bounds = array<i64: 1>, scalar_prefetch = 0 : i64, scratch_operands = 0 : i64, tpu.core_type = #tpu.core_type<tc>, window_params = [{transform_indices = @transform_0, window_bounds = array<i64: 104, 576>}, {pipeline_mode = #tpu.pipeline_mode<synchronous>, transform_indices = @transform_1, window_bounds = array<i64: 576, 32>}, {pipeline_mode = #tpu.pipeline_mode<synchronous>, transform_indices = @transform_2, window_bounds = array<i64: 1, 32>}, {transform_indices = @transform_3, window_bounds = array<i64: 104, 32>}]} {
    %c0 = arith.constant 0 : index
    %c0_0 = arith.constant 0 : index
    %0 = vector.load %arg1[%c0, %c0_0] : memref<104x576xbf16, #tpu.memory_space<vmem>>, vector<104x576xbf16>
    %c0_1 = arith.constant 0 : index
    %c0_2 = arith.constant 0 : index
    %1 = vector.load %arg2[%c0_1, %c0_2] : memref<576x32xbf16, #tpu.memory_space<vmem>>, vector<576x32xbf16>
    %cst = arith.constant dense<0.000000e+00> : vector<104x32xf32>
    %2 = tpu.matmul %0, %1, %cst {dimension_numbers = #tpu.dot_dimension_numbers<[1], [0], [0], [1], [0, 0, 1, 1], [], []>} : vector<104x576xbf16>, vector<576x32xbf16>, vector<104x32xf32> -> vector<104x32xf32>
    %c0_3 = arith.constant 0 : index
    %c0_4 = arith.constant 0 : index
    %3 = vector.load %arg3[%c0_3, %c0_4] : memref<1x32xf32, #tpu.memory_space<vmem>>, vector<1x32xf32>
    %4 = vector.broadcast %3 : vector<1x32xf32> to vector<104x32xf32>
    %5 = arith.addf %2, %4 : vector<104x32xf32>
    %cst_5 = arith.constant 0.000000e+00 : f32
    %6 = vector.broadcast %cst_5 : f32 to vector<104x32xf32>
    %7 = arith.maximumf %5, %6 : vector<104x32xf32>
    %8 = arith.truncf %7 : vector<104x32xf32> to vector<104x32xbf16>
    %c0_6 = arith.constant 0 : index
    %c0_7 = arith.constant 0 : index
    %9 = vector.load %arg4[%c0_6, %c0_7] : memref<104x32xbf16, #tpu.memory_space<vmem>>, vector<104x32xbf16>
    tpu.vector_store %arg4[%c0_6, %c0_7], %8 {strides = array<i32>} : memref<104x32xbf16, #tpu.memory_space<vmem>>, vector<104x32xbf16>,
    return
  }
  func.func @transform_0(%arg0: i32) -> (i32, i32) {
    %c0_i32 = arith.constant 0 : i32
    %c0_i32_0 = arith.constant 0 : i32
    return %arg0, %c0_i32 : i32, i32
  }
  func.func @transform_1(%arg0: i32) -> (i32, i32) {
    %c0_i32 = arith.constant 0 : i32
    %c0_i32_0 = arith.constant 0 : i32
    %c0_i32_1 = arith.constant 0 : i32
    return %c0_i32, %c0_i32_0 : i32, i32
  }
  func.func @transform_2(%arg0: i32) -> (i32, i32) {
    %c0_i32 = arith.constant 0 : i32
    %c0_i32_0 = arith.constant 0 : i32
    %c0_i32_1 = arith.constant 0 : i32
    return %c0_i32, %c0_i32_0 : i32, i32
  }
  func.func @transform_3(%arg0: i32) -> (i32, i32) {
    %c0_i32 = arith.constant 0 : i32
    %c0_i32_0 = arith.constant 0 : i32
    return %arg0, %c0_i32 : i32, i32
  }
}

module attributes {stable_mosaic.version = 11 : i64} {
  func.func @_matmul_bias_relu_kernel(%arg0: i32, %arg1: memref<8x1568xbf16, #tpu.memory_space<vmem>>, %arg2: memref<1568x512xbf16, #tpu.memory_space<vmem>>, %arg3: memref<1x512xf32, #tpu.memory_space<vmem>>, %arg4: memref<8x512xf32, #tpu.memory_space<vmem>>) attributes {dimension_semantics = [#tpu.dimension_semantics<parallel>], iteration_bounds = array<i64: 1>, scalar_prefetch = 0 : i64, scratch_operands = 0 : i64, tpu.core_type = #tpu.core_type<tc>, window_params = [{transform_indices = @transform_0, window_bounds = array<i64: 8, 1568>}, {pipeline_mode = #tpu.pipeline_mode<synchronous>, transform_indices = @transform_1, window_bounds = array<i64: 1568, 512>}, {pipeline_mode = #tpu.pipeline_mode<synchronous>, transform_indices = @transform_2, window_bounds = array<i64: 1, 512>}, {transform_indices = @transform_3, window_bounds = array<i64: 8, 512>}]} {
    %c0 = arith.constant 0 : index
    %c0_0 = arith.constant 0 : index
    %0 = vector.load %arg1[%c0, %c0_0] : memref<8x1568xbf16, #tpu.memory_space<vmem>>, vector<8x1568xbf16>
    %c0_1 = arith.constant 0 : index
    %c0_2 = arith.constant 0 : index
    %1 = vector.load %arg2[%c0_1, %c0_2] : memref<1568x512xbf16, #tpu.memory_space<vmem>>, vector<1568x512xbf16>
    %cst = arith.constant dense<0.000000e+00> : vector<8x512xf32>
    %2 = tpu.matmul %0, %1, %cst {dimension_numbers = #tpu.dot_dimension_numbers<[1], [0], [0], [1], [0, 0, 1, 1], [], []>} : vector<8x1568xbf16>, vector<1568x512xbf16>, vector<8x512xf32> -> vector<8x512xf32>
    %c0_3 = arith.constant 0 : index
    %c0_4 = arith.constant 0 : index
    %3 = vector.load %arg3[%c0_3, %c0_4] : memref<1x512xf32, #tpu.memory_space<vmem>>, vector<1x512xf32>
    %4 = vector.broadcast %3 : vector<1x512xf32> to vector<8x512xf32>
    %5 = arith.addf %2, %4 : vector<8x512xf32>
    %cst_5 = arith.constant 0.000000e+00 : f32
    %6 = vector.broadcast %cst_5 : f32 to vector<8x512xf32>
    %7 = arith.maximumf %5, %6 : vector<8x512xf32>
    %c0_6 = arith.constant 0 : index
    %c0_7 = arith.constant 0 : index
    %8 = vector.load %arg4[%c0_6, %c0_7] : memref<8x512xf32, #tpu.memory_space<vmem>>, vector<8x512xf32>
    tpu.vector_store %arg4[%c0_6, %c0_7], %7 {strides = array<i32>} : memref<8x512xf32, #tpu.memory_space<vmem>>, vector<8x512xf32>,
    return
  }
  func.func @transform_0(%arg0: i32) -> (i32, i32) {
    %c0_i32 = arith.constant 0 : i32
    %c0_i32_0 = arith.constant 0 : i32
    return %arg0, %c0_i32 : i32, i32
  }
  func.func @transform_1(%arg0: i32) -> (i32, i32) {
    %c0_i32 = arith.constant 0 : i32
    %c0_i32_0 = arith.constant 0 : i32
    %c0_i32_1 = arith.constant 0 : i32
    return %c0_i32, %c0_i32_0 : i32, i32
  }
  func.func @transform_2(%arg0: i32) -> (i32, i32) {
    %c0_i32 = arith.constant 0 : i32
    %c0_i32_0 = arith.constant 0 : i32
    %c0_i32_1 = arith.constant 0 : i32
    return %c0_i32, %c0_i32_0 : i32, i32
  }
  func.func @transform_3(%arg0: i32) -> (i32, i32) {
    %c0_i32 = arith.constant 0 : i32
    %c0_i32_0 = arith.constant 0 : i32
    return %arg0, %c0_i32 : i32, i32
  }
}

</mosaic_0001>

<bundles_post_ra>
// kernel: cnn_forward.4
= control target key start
LH: loop header
LB: loop body
LE: loop exit
PB: predicated region body
PF: predicated region fallthrough
CT: control target
= control target key end

     0   :  { %s1138_s12 = smov 0   ;;  %s1376_s0 = inlined_call_operand.vmem [shape: bf16[1024,256], index: 0, kind: input, shape index: {}]   ;;  %s1377_s1 = inlined_call_operand.vmem [shape: bf16[256,32], index: 1, kind: input, shape index: {}]   ;;  %s1378_s2 = inlined_call_operand.vmem [shape: f32[1,32], index: 2, kind: input, shape index: {}]   ;;  %s1379_s3 = inlined_call_operand.vmem [shape: bf16[1024,32], index: 3, kind: output, shape index: {}]  }
   0x1 LB: > { %s832_s13 = sadd.s32 4294967295, %s1116_s12   ;;  %p836_p0 = scmp.ge.s32.totalorder %s1116_s12, 1  ;;  %s1116_s12 = sphi %s1138_s12, %s13_s12  }
   0x2   : > { %p139_p1 = scmp.lt.s32.totalorder %s1116_s12, 5 }
   0x4   : > { %p140_p2 = pnand %p836_p0, %p139_p1 }
   0x5   : > { %s837_s26 = sshll.u32 (!%p140_p2), %s832_s13, 5 }
   0x6   : > { %143 = sbr.rel (%p140_p2) target bundleno = 304 (0x130), region = 32  ;;  %p165_p3 = scmp.lt.s32.totalorder (!%p140_p2), %s837_s26, 127 }
   0xb   : > { %v1076_v0 = vld [vmem:[%s1377_s1 + $0x38] sm:$0xff]  ;;  %v1075_v2 = vld [vmem:[%s1377_s1 + $0x30] sm:$0xff]  ;;  %v1074_v4 = vld [vmem:[%s1377_s1 + $0x28] sm:$0xff]  ;;  %s1381_s26 = smov (!%p165_p3, %s837_s26), 127  ;;  %vm743_vm0 = vcmask 257024  }
   0xc   : > { %v1084_v1 = vld [vmem:[%s1377_s1 + $0x78] sm:$0xff]  ;;  %501 = vmatpush.bf16.msra.mxu0 %v1076_v0  ;;  %1085 = vmatpush.bf16.msra.mxu2 %v1076_v0  ;;  %v1083_v3 = vld [vmem:[%s1377_s1 + $0x70] sm:$0xff]  ;;  %v1082_v5 = vld [vmem:[%s1377_s1 + $0x68] sm:$0xff]  ;;  %s1036_s13 = sshll.u32 %s1381_s26, 3  ;;  %s841_s28 = sshll.u32 %s1381_s26, 2 }
   0xd   : > { %590 = vmatpush.bf16.msra.mxu1 %v1084_v1  ;;  %1093 = vmatpush.bf16.msra.mxu3 %v1084_v1  ;;  %v1073_v6 = vld [vmem:[%s1377_s1 + $0x20] sm:$0xff]  ;;  %v1072_v8 = vld [vmem:[%s1377_s1 + $0x18] sm:$0xff]  ;;  %v1071_v10 = vld [vmem:[%s1377_s1 + $0x10] sm:$0xff]  ;;  %s1191_s18 = scalar_lea.vmem %s1376_s0, %s1036_s13  ;;  %s1276_s4 = scalar_lea.vmem %s1379_s3, %s841_s28 }
   0xe   : > { %v1081_v7 = vld [vmem:[%s1377_s1 + $0x60] sm:$0xff]  ;;  %v1080_v9 = vld [vmem:[%s1377_s1 + $0x58] sm:$0xff]  ;;  %v1079_v11 = vld [vmem:[%s1377_s1 + $0x50] sm:$0xff] }
   0xf   : > { %v1070_v12 = vld [vmem:[%s1377_s1 + $0x8] sm:$0xff]  ;;  %v1069_v14 = vld [vmem:[%s1377_s1] sm:$0xff]  ;;  %v852_v28 = vld [vmem:[%s1191_s18 + $0x10] sm:$0xf] }
  0x10   : > { %502 = vmatpush.bf16.msra.mxu0 %v1075_v2  ;;  %1086 = vmatpush.bf16.msra.mxu2 %v1075_v2  ;;  %v1078_v13 = vld [vmem:[%s1377_s1 + $0x48] sm:$0xff]  ;;  %v1077_v15 = vld [vmem:[%s1377_s1 + $0x40] sm:$0xff]  ;;  %v1040_v29 = vld [vmem:[%s1191_s18 + $0x14] sm:$0xf0] }
  0x11   : > { %591 = vmatpush.bf16.msra.mxu1 %v1083_v3  ;;  %1094 = vmatpush.bf16.msra.mxu3 %v1083_v3  ;;  %v844_v16 = vld [vmem:[%s1191_s18] sm:$0xf]  ;;  %v1038_v17 = vld [vmem:[%s1191_s18 + $0x4] sm:$0xf0]  ;;  %v1037_v20 = vld [vmem:[%s1191_s18 + $0x4] sm:$0xf]  ;;  %v853_v36 = vor.u32 %v1040_v29, %v852_v28 }
  0x12   : > { %v908_v18 = vld [vmem:[%s1191_s18 + $0x80] sm:$0xf]  ;;  %v1054_v19 = vld [vmem:[%s1191_s18 + $0x84] sm:$0xf0]  ;;  %v846_v21 = vld [vmem:[%s1191_s18 + $0x8] sm:$0xf0]  ;;  %v845_v24 = vor.u32 %v1038_v17, %v844_v16 }
  0x13   : > { %v1053_v22 = vld [vmem:[%s1191_s18 + $0x84] sm:$0xf]  ;;  %v910_v23 = vld [vmem:[%s1191_s18 + $0x88] sm:$0xf0]  ;;  %v909_v25 = vor.u32 %v1054_v19, %v908_v18  ;;  %v849_v26 = vor.u32 %v1037_v20, %v846_v21  ;;  %v916_v30 = vld [vmem:[%s1191_s18 + $0x90] sm:$0xf] }
  0x14   : > { %503 = vmatpush.bf16.msra.mxu0 %v1074_v4  ;;  %1087 = vmatpush.bf16.msra.mxu2 %v1074_v4  ;;  %v913_v27 = vor.u32 %v1053_v22, %v910_v23  ;;  %v1056_v31 = vld [vmem:[%s1191_s18 + $0x94] sm:$0xf0]  ;;  %v1039_v32 = vld [vmem:[%s1191_s18 + $0x14] sm:$0xf]  ;;  %v854_v33 = vld [vmem:[%s1191_s18 + $0x18] sm:$0xf0] }
  0x15   : > { %592 = vmatpush.bf16.msra.mxu1 %v1082_v5  ;;  %1095 = vmatpush.bf16.msra.mxu3 %v1082_v5  ;;  %v1055_v34 = vld [vmem:[%s1191_s18 + $0x94] sm:$0xf]  ;;  %v918_v35 = vld [vmem:[%s1191_s18 + $0x98] sm:$0xf0]  ;;  %v917_v37 = vor.u32 %v1056_v31, %v916_v30  ;;  %v857_v38 = vor.u32 %v1039_v32, %v854_v33  ;;  %v860_v40 = vld [vmem:[%s1191_s18 + $0x20] sm:$0xf] }
  0x16   : > { %v921_v39 = vor.u32 %v1055_v34, %v918_v35  ;;  %v1042_v41 = vld [vmem:[%s1191_s18 + $0x24] sm:$0xf0]  ;;  %v924_v42 = vld [vmem:[%s1191_s18 + $0xa0] sm:$0xf]  ;;  %v1041_v44 = vld [vmem:[%s1191_s18 + $0x24] sm:$0xf] }
  0x17   : > { %v1058_v43 = vld [vmem:[%s1191_s18 + $0xa4] sm:$0xf0]  ;;  %v862_v45 = vld [vmem:[%s1191_s18 + $0x28] sm:$0xf0]  ;;  %v1057_v46 = vld [vmem:[%s1191_s18 + $0xa4] sm:$0xf]  ;;  %v861_v48 = vor.u32 %v1042_v41, %v860_v40 }
  0x18   : > { %504 = vmatpush.bf16.msra.mxu0 %v1073_v6  ;;  %1088 = vmatpush.bf16.msra.mxu2 %v1073_v6  ;;  %v926_v47 = vld [vmem:[%s1191_s18 + $0xa8] sm:$0xf0]  ;;  %v925_v49 = vor.u32 %v1058_v43, %v924_v42  ;;  %v865_v50 = vor.u32 %v1041_v44, %v862_v45  ;;  %v868_v52 = vld [vmem:[%s1191_s18 + $0x30] sm:$0xf]  ;;  %v1044_v53 = vld [vmem:[%s1191_s18 + $0x34] sm:$0xf0] }
  0x19   : > { %593 = vmatpush.bf16.msra.mxu1 %v1081_v7  ;;  %1096 = vmatpush.bf16.msra.mxu3 %v1081_v7  ;;  %v929_v51 = vor.u32 %v1057_v46, %v926_v47  ;;  %v932_v54 = vld [vmem:[%s1191_s18 + $0xb0] sm:$0xf]  ;;  %v1060_v55 = vld [vmem:[%s1191_s18 + $0xb4] sm:$0xf0]  ;;  %v1043_v56 = vld [vmem:[%s1191_s18 + $0x34] sm:$0xf]  ;;  %v869_v60 = vor.u32 %v1044_v53, %v868_v52 }
  0x1a   : > { %v870_v57 = vld [vmem:[%s1191_s18 + $0x38] sm:$0xf0]  ;;  %v1059_v58 = vld [vmem:[%s1191_s18 + $0xb4] sm:$0xf]  ;;  %v933_v61 = vor.u32 %v1060_v55, %v932_v54  ;;  %v876_v0 = vld [vmem:[%s1191_s18 + $0x40] sm:$0xf] }
  0x1b   : > { %v934_v59 = vld [vmem:[%s1191_s18 + $0xb8] sm:$0xf0]  ;;  %v873_v62 = vor.u32 %v1043_v56, %v870_v57  ;;  %v1046_v1 = vld [vmem:[%s1191_s18 + $0x44] sm:$0xf0]  ;;  %v940_v2 = vld [vmem:[%s1191_s18 + $0xc0] sm:$0xf] }
  0x1c   : > { %505 = vmatpush.bf16.msra.mxu0 %v1072_v8  ;;  %1089 = vmatpush.bf16.msra.mxu2 %v1072_v8  ;;  %v937_v63 = vor.u32 %v1059_v58, %v934_v59  ;;  %v1062_v3 = vld [vmem:[%s1191_s18 + $0xc4] sm:$0xf0]  ;;  %v1045_v4 = vld [vmem:[%s1191_s18 + $0x44] sm:$0xf]  ;;  %v878_v5 = vld [vmem:[%s1191_s18 + $0x48] sm:$0xf0]  ;;  %v877_v8 = vor.u32 %v1046_v1, %v876_v0 }
  0x1d   : > { %594 = vmatpush.bf16.msra.mxu1 %v1080_v9  ;;  %1097 = vmatpush.bf16.msra.mxu3 %v1080_v9  ;;  %v1061_v6 = vld [vmem:[%s1191_s18 + $0xc4] sm:$0xf]  ;;  %v942_v7 = vld [vmem:[%s1191_s18 + $0xc8] sm:$0xf0]  ;;  %v941_v9 = vor.u32 %v1062_v3, %v940_v2  ;;  %v1047_v16 = vld [vmem:[%s1191_s18 + $0x54] sm:$0xf] }
  0x1e   : > { %v886_v17 = vld [vmem:[%s1191_s18 + $0x58] sm:$0xf0]  ;;  %v1063_v18 = vld [vmem:[%s1191_s18 + $0xd4] sm:$0xf]  ;;  %v1049_v28 = vld [vmem:[%s1191_s18 + $0x64] sm:$0xf] }
  0x1f   : > { %v950_v19 = vld [vmem:[%s1191_s18 + $0xd8] sm:$0xf0]  ;;  %v889_v22 = vor.u32 %v1047_v16, %v886_v17  ;;  %v894_v29 = vld [vmem:[%s1191_s18 + $0x68] sm:$0xf0]  ;;  %v1065_v30 = vld [vmem:[%s1191_s18 + $0xe4] sm:$0xf] }
  0x20   : > { %506 = vmatpush.bf16.msra.mxu0 %v1071_v10  ;;  %1090 = vmatpush.bf16.msra.mxu2 %v1071_v10  ;;  %v881_v10 = vor.u32 %v1045_v4, %v878_v5  ;;  %v953_v23 = vor.u32 %v1063_v18, %v950_v19  ;;  %v958_v31 = vld [vmem:[%s1191_s18 + $0xe8] sm:$0xf0]  ;;  %v897_v34 = vor.u32 %v1049_v28, %v894_v29  ;;  %v1051_v40 = vld [vmem:[%s1191_s18 + $0x74] sm:$0xf]  ;;  %v902_v41 = vld [vmem:[%s1191_s18 + $0x78] sm:$0xf0] }
  0x21   : > { %595 = vmatpush.bf16.msra.mxu1 %v1079_v11  ;;  %1098 = vmatpush.bf16.msra.mxu3 %v1079_v11  ;;  %v945_v11 = vor.u32 %v1061_v6, %v942_v7  ;;  %v961_v35 = vor.u32 %v1065_v30, %v958_v31  ;;  %v1067_v42 = vld [vmem:[%s1191_s18 + $0xf4] sm:$0xf]  ;;  %v966_v43 = vld [vmem:[%s1191_s18 + $0xf8] sm:$0xf0]  ;;  %v905_v46 = vor.u32 %v1051_v40, %v902_v41 }
  0x22   : > { %v969_v47 = vor.u32 %v1067_v42, %v966_v43 }
  0x24   : > { %507 = vmatpush.bf16.msra.mxu0 %v1070_v12  ;;  %1091 = vmatpush.bf16.msra.mxu2 %v1070_v12  ;;  %v884_v12 = vld [vmem:[%s1191_s18 + $0x50] sm:$0xf] }
  0x25   : > { %596 = vmatpush.bf16.msra.mxu1 %v1078_v13  ;;  %1099 = vmatpush.bf16.msra.mxu3 %v1078_v13  ;;  %v1048_v13 = vld [vmem:[%s1191_s18 + $0x54] sm:$0xf0] }
  0x26   : > { %v885_v20 = vor.u32 %v1048_v13, %v884_v12 }
  0x28   : > { %508 = vmatpush.bf16.msra.mxu0 %v1069_v14  ;;  %1092 = vmatpush.bf16.msra.mxu2 %v1069_v14  ;;  %v948_v14 = vld [vmem:[%s1191_s18 + $0xd0] sm:$0xf] }
  0x29   : > { %597 = vmatpush.bf16.msra.mxu1 %v1077_v15  ;;  %1100 = vmatpush.bf16.msra.mxu3 %v1077_v15  ;;  %v1064_v15 = vld [vmem:[%s1191_s18 + $0xd4] sm:$0xf0] }
  0x2a   : > { %v949_v21 = vor.u32 %v1064_v15, %v948_v14 }
  0x2b   : > { %509 = vmatmul.bf16.vlgmr.msra.gmra.mxu0 %v845_v24  ;;  %549 = vmatmul.bf16.vlgmr.msra.gmra.mxu2 %v909_v25  ;;  %v892_v24 = vld [vmem:[%s1191_s18 + $0x60] sm:$0xf]  ;;  %v1050_v25 = vld [vmem:[%s1191_s18 + $0x64] sm:$0xf0] }
  0x2c   : > { %598 = vmatmul.bf16.vlgmr.msra.gmra.mxu1 %v849_v26  ;;  %638 = vmatmul.bf16.vlgmr.msra.gmra.mxu3 %v913_v27  ;;  %v956_v26 = vld [vmem:[%s1191_s18 + $0xe0] sm:$0xf]  ;;  %v1066_v27 = vld [vmem:[%s1191_s18 + $0xe4] sm:$0xf0]  ;;  %v893_v32 = vor.u32 %v1050_v25, %v892_v24 }
  0x2d   : > { %v957_v33 = vor.u32 %v1066_v27, %v956_v26 }
  0x3b   : > { %514 = vmatmul.bf16.gmra.mxu0 %v853_v36  ;;  %554 = vmatmul.bf16.gmra.mxu2 %v917_v37  ;;  %v900_v36 = vld [vmem:[%s1191_s18 + $0x70] sm:$0xf]  ;;  %v1052_v37 = vld [vmem:[%s1191_s18 + $0x74] sm:$0xf0] }
  0x3c   : > { %603 = vmatmul.bf16.gmra.mxu1 %v857_v38  ;;  %643 = vmatmul.bf16.gmra.mxu3 %v921_v39  ;;  %v964_v38 = vld [vmem:[%s1191_s18 + $0xf0] sm:$0xf]  ;;  %v1068_v39 = vld [vmem:[%s1191_s18 + $0xf4] sm:$0xf0]  ;;  %v901_v44 = vor.u32 %v1052_v37, %v900_v36 }
  0x3d   : > { %v965_v45 = vor.u32 %v1068_v39, %v964_v38 }
  0x4b   : > { %519 = vmatmul.bf16.gmra.mxu0 %v861_v48  ;;  %559 = vmatmul.bf16.gmra.mxu2 %v925_v49  ;;  %v1269_v48 = vld [vmem:[%s1378_s2] ss:$0 sm:$0xff] }
  0x4c   : > { %608 = vmatmul.bf16.gmra.mxu1 %v865_v50  ;;  %648 = vmatmul.bf16.gmra.mxu3 %v929_v51 }
  0x5b   : > { %524 = vmatmul.bf16.gmra.mxu0 %v869_v60  ;;  %564 = vmatmul.bf16.gmra.mxu2 %v933_v61 }
  0x5c   : > { %613 = vmatmul.bf16.gmra.mxu1 %v873_v62  ;;  %653 = vmatmul.bf16.gmra.mxu3 %v937_v63 }
  0x6b   : > { %529 = vmatmul.bf16.gmra.mxu0 %v877_v8  ;;  %569 = vmatmul.bf16.gmra.mxu2 %v941_v9 }
  0x6c   : > { %618 = vmatmul.bf16.gmra.mxu1 %v881_v10  ;;  %658 = vmatmul.bf16.gmra.mxu3 %v945_v11 }
  0x7b   : > { %534 = vmatmul.bf16.gmra.mxu0 %v885_v20  ;;  %574 = vmatmul.bf16.gmra.mxu2 %v949_v21 }
  0x7c   : > { %623 = vmatmul.bf16.gmra.mxu1 %v889_v22  ;;  %663 = vmatmul.bf16.gmra.mxu3 %v953_v23 }
  0x8b   : > { %539 = vmatmul.bf16.gmra.mxu0 %v893_v32  ;;  %579 = vmatmul.bf16.gmra.mxu2 %v957_v33 }
  0x8c   : > { %628 = vmatmul.bf16.gmra.mxu1 %v897_v34  ;;  %668 = vmatmul.bf16.gmra.mxu3 %v961_v35 }
  0x9b   : > { %544 = vmatmul.bf16.gmra.mxu0 %v901_v44  ;;  %584 = vmatmul.bf16.gmra.mxu2 %v965_v45 }
  0x9c   : > { %633 = vmatmul.bf16.gmra.mxu1 %v905_v46  ;;  %673 = vmatmul.bf16.gmra.mxu3 %v969_v47 }
  0xa8   : > { %v510_v49 = vpop.f32.mrf.mxu0 }
  0xa9   : > { %v511_v50 = vadd.f32 %v1269_v48, %v510_v49  ;;  %v599_v51 = vpop.f32.mrf.mxu1 }
  0xab   : > { %v600_v52 = vadd.f32 %v599_v51, %v511_v50 }
  0xad   : > { %v679_v53 = vmax.f32 %v600_v52, 0.0 }
  0xae   : > { %v550_v54 = vpop.f32.mrf.mxu2 }
  0xaf   : > { %v711_v55 = vpack.c.bf16 %v679_v53, %v679_v53  ;;  %v551_v56 = vadd.f32 %v1269_v48, %v550_v54  ;;  %v639_v57 = vpop.f32.mrf.mxu3 }
  0xb0   : > { %v512_v58 = vpop.f32.mrf.mxu0 }
  0xb1   : > { %744 = vst.msk [vmem:[%s1276_s4] sm:$0xf] %vm743_vm0, %v711_v55  ;;  %v640_v59 = vadd.f32 %v639_v57, %v551_v56  ;;  %v513_v60 = vadd.f32 %v1269_v48, %v512_v58  ;;  %v601_v61 = vpop.f32.mrf.mxu1 }
  0xb3   : > { %v695_v62 = vmax.f32 %v640_v59, 0.0  ;;  %v602_v63 = vadd.f32 %v601_v61, %v513_v60 }
  0xb5   : > { %v727_v0 = vpack.c.bf16 %v695_v62, %v695_v62  ;;  %v680_v1 = vmax.f32 %v602_v63, 0.0 }
  0xb6   : > { %v552_v2 = vpop.f32.mrf.mxu2 }
  0xb7   : > { %760 = vst.msk [vmem:[%s1276_s4 + $0x40] sm:$0xf] %vm743_vm0, %v727_v0  ;;  %v712_v3 = vpack.c.bf16 %v680_v1, %v680_v1  ;;  %v553_v4 = vadd.f32 %v1269_v48, %v552_v2  ;;  %v641_v5 = vpop.f32.mrf.mxu3 }
  0xb8   : > { %v515_v6 = vpop.f32.mrf.mxu0 }
  0xb9   : > { %745 = vst.msk [vmem:[%s1276_s4 + $0x4] sm:$0xf] %vm743_vm0, %v712_v3  ;;  %v642_v7 = vadd.f32 %v641_v5, %v553_v4  ;;  %v516_v8 = vadd.f32 %v1269_v48, %v515_v6  ;;  %v604_v9 = vpop.f32.mrf.mxu1 }
  0xbb   : > { %v696_v10 = vmax.f32 %v642_v7, 0.0  ;;  %v605_v11 = vadd.f32 %v604_v9, %v516_v8 }
  0xbd   : > { %v728_v12 = vpack.c.bf16 %v696_v10, %v696_v10  ;;  %v681_v13 = vmax.f32 %v605_v11, 0.0 }
  0xbe   : > { %v555_v14 = vpop.f32.mrf.mxu2 }
  0xbf   : > { %761 = vst.msk [vmem:[%s1276_s4 + $0x44] sm:$0xf] %vm743_vm0, %v728_v12  ;;  %v713_v15 = vpack.c.bf16 %v681_v13, %v681_v13  ;;  %v556_v16 = vadd.f32 %v1269_v48, %v555_v14  ;;  %v644_v17 = vpop.f32.mrf.mxu3 }
  0xc0   : > { %v517_v18 = vpop.f32.mrf.mxu0 }
  0xc1   : > { %746 = vst.msk [vmem:[%s1276_s4 + $0x8] sm:$0xf] %vm743_vm0, %v713_v15  ;;  %v645_v19 = vadd.f32 %v644_v17, %v556_v16  ;;  %v518_v20 = vadd.f32 %v1269_v48, %v517_v18  ;;  %v606_v21 = vpop.f32.mrf.mxu1 }
  0xc3   : > { %v697_v22 = vmax.f32 %v645_v19, 0.0  ;;  %v607_v23 = vadd.f32 %v606_v21, %v518_v20 }
  0xc5   : > { %v729_v24 = vpack.c.bf16 %v697_v22, %v697_v22  ;;  %v682_v25 = vmax.f32 %v607_v23, 0.0 }
  0xc6   : > { %v557_v26 = vpop.f32.mrf.mxu2 }
  0xc7   : > { %762 = vst.msk [vmem:[%s1276_s4 + $0x48] sm:$0xf] %vm743_vm0, %v729_v24  ;;  %v714_v27 = vpack.c.bf16 %v682_v25, %v682_v25  ;;  %v558_v28 = vadd.f32 %v1269_v48, %v557_v26  ;;  %v646_v29 = vpop.f32.mrf.mxu3 }
  0xc8   : > { %v520_v30 = vpop.f32.mrf.mxu0 }
  0xc9   : > { %747 = vst.msk [vmem:[%s1276_s4 + $0xc] sm:$0xf] %vm743_vm0, %v714_v27  ;;  %v647_v31 = vadd.f32 %v646_v29, %v558_v28  ;;  %v521_v32 = vadd.f32 %v1269_v48, %v520_v30  ;;  %v609_v33 = vpop.f32.mrf.mxu1 }
  0xcb   : > { %v698_v34 = vmax.f32 %v647_v31, 0.0  ;;  %v610_v35 = vadd.f32 %v609_v33, %v521_v32 }
  0xcd   : > { %v730_v36 = vpack.c.bf16 %v698_v34, %v698_v34  ;;  %v683_v37 = vmax.f32 %v610_v35, 0.0 }
  0xce   : > { %v560_v38 = vpop.f32.mrf.mxu2 }
  0xcf   : > { %763 = vst.msk [vmem:[%s1276_s4 + $0x4c] sm:$0xf] %vm743_vm0, %v730_v36  ;;  %v715_v39 = vpack.c.bf16 %v683_v37, %v683_v37  ;;  %v561_v40 = vadd.f32 %v1269_v48, %v560_v38  ;;  %v649_v41 = vpop.f32.mrf.mxu3 }
  0xd0   : > { %v522_v42 = vpop.f32.mrf.mxu0 }
  0xd1   : > { %748 = vst.msk [vmem:[%s1276_s4 + $0x10] sm:$0xf] %vm743_vm0, %v715_v39  ;;  %v650_v43 = vadd.f32 %v649_v41, %v561_v40  ;;  %v523_v44 = vadd.f32 %v1269_v48, %v522_v42  ;;  %v611_v45 = vpop.f32.mrf.mxu1 }
  0xd3   : > { %v699_v46 = vmax.f32 %v650_v43, 0.0  ;;  %v612_v47 = vadd.f32 %v611_v45, %v523_v44 }
  0xd5   : > { %v731_v49 = vpack.c.bf16 %v699_v46, %v699_v46  ;;  %v684_v50 = vmax.f32 %v612_v47, 0.0 }
  0xd6   : > { %v562_v51 = vpop.f32.mrf.mxu2 }
  0xd7   : > { %764 = vst.msk [vmem:[%s1276_s4 + $0x50] sm:$0xf] %vm743_vm0, %v731_v49  ;;  %v716_v52 = vpack.c.bf16 %v684_v50, %v684_v50  ;;  %v563_v53 = vadd.f32 %v1269_v48, %v562_v51  ;;  %v651_v54 = vpop.f32.mrf.mxu3 }
  0xd8   : > { %v525_v55 = vpop.f32.mrf.mxu0 }
  0xd9   : > { %749 = vst.msk [vmem:[%s1276_s4 + $0x14] sm:$0xf] %vm743_vm0, %v716_v52  ;;  %v652_v56 = vadd.f32 %v651_v54, %v563_v53  ;;  %v526_v57 = vadd.f32 %v1269_v48, %v525_v55  ;;  %v614_v58 = vpop.f32.mrf.mxu1 }
  0xdb   : > { %v700_v59 = vmax.f32 %v652_v56, 0.0  ;;  %v615_v60 = vadd.f32 %v614_v58, %v526_v57 }
  0xdd   : > { %v732_v61 = vpack.c.bf16 %v700_v59, %v700_v59  ;;  %v685_v62 = vmax.f32 %v615_v60, 0.0 }
  0xde   : > { %v565_v63 = vpop.f32.mrf.mxu2 }
  0xdf   : > { %765 = vst.msk [vmem:[%s1276_s4 + $0x54] sm:$0xf] %vm743_vm0, %v732_v61  ;;  %v717_v0 = vpack.c.bf16 %v685_v62, %v685_v62  ;;  %v566_v1 = vadd.f32 %v1269_v48, %v565_v63  ;;  %v654_v2 = vpop.f32.mrf.mxu3 }
  0xe0   : > { %v527_v3 = vpop.f32.mrf.mxu0 }
  0xe1   : > { %750 = vst.msk [vmem:[%s1276_s4 + $0x18] sm:$0xf] %vm743_vm0, %v717_v0  ;;  %v655_v4 = vadd.f32 %v654_v2, %v566_v1  ;;  %v528_v5 = vadd.f32 %v1269_v48, %v527_v3  ;;  %v616_v6 = vpop.f32.mrf.mxu1 }
  0xe3   : > { %v701_v7 = vmax.f32 %v655_v4, 0.0  ;;  %v617_v8 = vadd.f32 %v616_v6, %v528_v5 }
  0xe5   : > { %v733_v9 = vpack.c.bf16 %v701_v7, %v701_v7  ;;  %v686_v10 = vmax.f32 %v617_v8, 0.0 }
  0xe6   : > { %v567_v11 = vpop.f32.mrf.mxu2 }
  0xe7   : > { %766 = vst.msk [vmem:[%s1276_s4 + $0x58] sm:$0xf] %vm743_vm0, %v733_v9  ;;  %v718_v12 = vpack.c.bf16 %v686_v10, %v686_v10  ;;  %v568_v13 = vadd.f32 %v1269_v48, %v567_v11  ;;  %v656_v14 = vpop.f32.mrf.mxu3 }
  0xe8   : > { %v530_v15 = vpop.f32.mrf.mxu0 }
  0xe9   : > { %751 = vst.msk [vmem:[%s1276_s4 + $0x1c] sm:$0xf] %vm743_vm0, %v718_v12  ;;  %v657_v16 = vadd.f32 %v656_v14, %v568_v13  ;;  %v531_v17 = vadd.f32 %v1269_v48, %v530_v15  ;;  %v619_v18 = vpop.f32.mrf.mxu1 }
  0xeb   : > { %v702_v19 = vmax.f32 %v657_v16, 0.0  ;;  %v620_v20 = vadd.f32 %v619_v18, %v531_v17 }
  0xed   : > { %v734_v21 = vpack.c.bf16 %v702_v19, %v702_v19  ;;  %v687_v22 = vmax.f32 %v620_v20, 0.0 }
  0xee   : > { %v570_v23 = vpop.f32.mrf.mxu2 }
  0xef   : > { %767 = vst.msk [vmem:[%s1276_s4 + $0x5c] sm:$0xf] %vm743_vm0, %v734_v21  ;;  %v719_v24 = vpack.c.bf16 %v687_v22, %v687_v22  ;;  %v571_v25 = vadd.f32 %v1269_v48, %v570_v23  ;;  %v659_v26 = vpop.f32.mrf.mxu3 }
  0xf0   : > { %v532_v27 = vpop.f32.mrf.mxu0 }
  0xf1   : > { %752 = vst.msk [vmem:[%s1276_s4 + $0x20] sm:$0xf] %vm743_vm0, %v719_v24  ;;  %v660_v28 = vadd.f32 %v659_v26, %v571_v25  ;;  %v533_v29 = vadd.f32 %v1269_v48, %v532_v27  ;;  %v621_v30 = vpop.f32.mrf.mxu1 }
  0xf3   : > { %v703_v31 = vmax.f32 %v660_v28, 0.0  ;;  %v622_v32 = vadd.f32 %v621_v30, %v533_v29 }
  0xf5   : > { %v735_v33 = vpack.c.bf16 %v703_v31, %v703_v31  ;;  %v688_v34 = vmax.f32 %v622_v32, 0.0 }
  0xf6   : > { %v572_v35 = vpop.f32.mrf.mxu2 }
  0xf7   : > { %768 = vst.msk [vmem:[%s1276_s4 + $0x60] sm:$0xf] %vm743_vm0, %v735_v33  ;;  %v720_v36 = vpack.c.bf16 %v688_v34, %v688_v34  ;;  %v573_v37 = vadd.f32 %v1269_v48, %v572_v35  ;;  %v661_v38 = vpop.f32.mrf.mxu3 }
  0xf8   : > { %v535_v39 = vpop.f32.mrf.mxu0 }
  0xf9   : > { %753 = vst.msk [vmem:[%s1276_s4 + $0x24] sm:$0xf] %vm743_vm0, %v720_v36  ;;  %v662_v40 = vadd.f32 %v661_v38, %v573_v37  ;;  %v536_v41 = vadd.f32 %v1269_v48, %v535_v39  ;;  %v624_v42 = vpop.f32.mrf.mxu1 }
  0xfb   : > { %v704_v43 = vmax.f32 %v662_v40, 0.0  ;;  %v625_v44 = vadd.f32 %v624_v42, %v536_v41 }
  0xfd   : > { %v736_v45 = vpack.c.bf16 %v704_v43, %v704_v43  ;;  %v689_v46 = vmax.f32 %v625_v44, 0.0 }
  0xfe   : > { %v575_v47 = vpop.f32.mrf.mxu2 }
  0xff   : > { %769 = vst.msk [vmem:[%s1276_s4 + $0x64] sm:$0xf] %vm743_vm0, %v736_v45  ;;  %v721_v49 = vpack.c.bf16 %v689_v46, %v689_v46  ;;  %v576_v50 = vadd.f32 %v1269_v48, %v575_v47  ;;  %v664_v51 = vpop.f32.mrf.mxu3 }
 0x100   : > { %v537_v52 = vpop.f32.mrf.mxu0 }
 0x101   : > { %754 = vst.msk [vmem:[%s1276_s4 + $0x28] sm:$0xf] %vm743_vm0, %v721_v49  ;;  %v665_v53 = vadd.f32 %v664_v51, %v576_v50  ;;  %v538_v54 = vadd.f32 %v1269_v48, %v537_v52  ;;  %v626_v55 = vpop.f32.mrf.mxu1 }
 0x103   : > { %v705_v56 = vmax.f32 %v665_v53, 0.0  ;;  %v627_v57 = vadd.f32 %v626_v55, %v538_v54 }
 0x105   : > { %v737_v58 = vpack.c.bf16 %v705_v56, %v705_v56  ;;  %v690_v59 = vmax.f32 %v627_v57, 0.0 }
 0x106   : > { %v577_v60 = vpop.f32.mrf.mxu2 }
 0x107   : > { %770 = vst.msk [vmem:[%s1276_s4 + $0x68] sm:$0xf] %vm743_vm0, %v737_v58  ;;  %v722_v61 = vpack.c.bf16 %v690_v59, %v690_v59  ;;  %v578_v62 = vadd.f32 %v1269_v48, %v577_v60  ;;  %v666_v63 = vpop.f32.mrf.mxu3 }
 0x108   : > { %v540_v0 = vpop.f32.mrf.mxu0 }
 0x109   : > { %755 = vst.msk [vmem:[%s1276_s4 + $0x2c] sm:$0xf] %vm743_vm0, %v722_v61  ;;  %v667_v1 = vadd.f32 %v666_v63, %v578_v62  ;;  %v541_v2 = vadd.f32 %v1269_v48, %v540_v0  ;;  %v629_v3 = vpop.f32.mrf.mxu1 }
 0x10b   : > { %v706_v4 = vmax.f32 %v667_v1, 0.0  ;;  %v630_v5 = vadd.f32 %v629_v3, %v541_v2 }
 0x10d   : > { %v738_v6 = vpack.c.bf16 %v706_v4, %v706_v4  ;;  %v691_v7 = vmax.f32 %v630_v5, 0.0 }
 0x10e   : > { %v580_v8 = vpop.f32.mrf.mxu2 }
 0x10f   : > { %771 = vst.msk [vmem:[%s1276_s4 + $0x6c] sm:$0xf] %vm743_vm0, %v738_v6  ;;  %v723_v9 = vpack.c.bf16 %v691_v7, %v691_v7  ;;  %v581_v10 = vadd.f32 %v1269_v48, %v580_v8  ;;  %v669_v11 = vpop.f32.mrf.mxu3 }
 0x110   : > { %v542_v12 = vpop.f32.mrf.mxu0 }
 0x111   : > { %756 = vst.msk [vmem:[%s1276_s4 + $0x30] sm:$0xf] %vm743_vm0, %v723_v9  ;;  %v670_v13 = vadd.f32 %v669_v11, %v581_v10  ;;  %v543_v14 = vadd.f32 %v1269_v48, %v542_v12  ;;  %v631_v15 = vpop.f32.mrf.mxu1 }
 0x113   : > { %v707_v16 = vmax.f32 %v670_v13, 0.0  ;;  %v632_v17 = vadd.f32 %v631_v15, %v543_v14 }
 0x115   : > { %v739_v18 = vpack.c.bf16 %v707_v16, %v707_v16  ;;  %v692_v19 = vmax.f32 %v632_v17, 0.0 }
 0x116   : > { %v582_v20 = vpop.f32.mrf.mxu2 }
 0x117   : > { %772 = vst.msk [vmem:[%s1276_s4 + $0x70] sm:$0xf] %vm743_vm0, %v739_v18  ;;  %v724_v21 = vpack.c.bf16 %v692_v19, %v692_v19  ;;  %v583_v22 = vadd.f32 %v1269_v48, %v582_v20  ;;  %v671_v23 = vpop.f32.mrf.mxu3 }
 0x118   : > { %v545_v24 = vpop.f32.mrf.mxu0 }
 0x119   : > { %757 = vst.msk [vmem:[%s1276_s4 + $0x34] sm:$0xf] %vm743_vm0, %v724_v21  ;;  %v672_v25 = vadd.f32 %v671_v23, %v583_v22  ;;  %v546_v26 = vadd.f32 %v1269_v48, %v545_v24  ;;  %v634_v27 = vpop.f32.mrf.mxu1 }
 0x11b   : > { %v708_v28 = vmax.f32 %v672_v25, 0.0  ;;  %v635_v29 = vadd.f32 %v634_v27, %v546_v26 }
 0x11d   : > { %v740_v30 = vpack.c.bf16 %v708_v28, %v708_v28  ;;  %v693_v31 = vmax.f32 %v635_v29, 0.0 }
 0x11e   : > { %v585_v32 = vpop.f32.mrf.mxu2 }
 0x11f   : > { %773 = vst.msk [vmem:[%s1276_s4 + $0x74] sm:$0xf] %vm743_vm0, %v740_v30  ;;  %v725_v33 = vpack.c.bf16 %v693_v31, %v693_v31  ;;  %v586_v34 = vadd.f32 %v1269_v48, %v585_v32  ;;  %v674_v35 = vpop.f32.mrf.mxu3 }
 0x120   : > { %v547_v36 = vpop.f32.mrf.mxu0 }
 0x121   : > { %758 = vst.msk [vmem:[%s1276_s4 + $0x38] sm:$0xf] %vm743_vm0, %v725_v33  ;;  %v675_v37 = vadd.f32 %v674_v35, %v586_v34  ;;  %v548_v38 = vadd.f32 %v1269_v48, %v547_v36  ;;  %v636_v39 = vpop.f32.mrf.mxu1 }
 0x123   : > { %v709_v40 = vmax.f32 %v675_v37, 0.0  ;;  %v637_v41 = vadd.f32 %v636_v39, %v548_v38 }
 0x125   : > { %v741_v42 = vpack.c.bf16 %v709_v40, %v709_v40  ;;  %v694_v43 = vmax.f32 %v637_v41, 0.0 }
 0x126   : > { %v587_v44 = vpop.f32.mrf.mxu2 }
 0x127   : > { %774 = vst.msk [vmem:[%s1276_s4 + $0x78] sm:$0xf] %vm743_vm0, %v741_v42  ;;  %v726_v45 = vpack.c.bf16 %v694_v43, %v694_v43  ;;  %v588_v46 = vadd.f32 %v1269_v48, %v587_v44  ;;  %v676_v47 = vpop.f32.mrf.mxu3 }
 0x129   : > { %759 = vst.msk [vmem:[%s1276_s4 + $0x3c] sm:$0xf] %vm743_vm0, %v726_v45  ;;  %v677_v49 = vadd.f32 %v676_v47, %v588_v46 }
 0x12b   : > { %v710_v50 = vmax.f32 %v677_v49, 0.0 }
 0x12d   : > { %v742_v51 = vpack.c.bf16 %v710_v50, %v710_v50 }
 0x12f   : > { %775 = vst.msk [vmem:[%s1276_s4 + $0x7c] sm:$0xf] %vm743_vm0, %v742_v51 }
 0x130 PF: > { %s13_s12 = sadd.s32 1, %s1116_s12  }
 0x131   : > { %p10_p4 = scmp.ge.s32.totalorder %s13_s12, 6  }
 0x133   :  { %12 = sbr.rel (!%p10_p4) target bundleno = 1 (0x1), region = 62 }

// kernel: cnn_forward.5
= control target key start
LH: loop header
LB: loop body
LE: loop exit
PB: predicated region body
PF: predicated region fallthrough
CT: control target
= control target key end

     0   :  { %vm824_vm0 = vcmask 519168   ;;  %s1683_s1 = inlined_call_operand.vmem [shape: bf16[512,64], index: 1, kind: input, shape index: {}]   ;;  %s1684_s2 = inlined_call_operand.vmem [shape: f32[1,64], index: 2, kind: input, shape index: {}]   ;;  %s1685_s0 = inlined_call_operand.vmem [shape: bf16[168,512], index: 0, kind: input, shape index: {}]   ;;  %s1686_s3 = inlined_call_operand.vmem [shape: bf16[168,64], index: 3, kind: output, shape index: {}]  }
   0x1   :  { %v1185_v0 = vld [vmem:[%s1683_s1 + $0x38] sm:$0xff]  ;;  %v1184_v4 = vld [vmem:[%s1683_s1 + $0x30] sm:$0xff]  ;;  %v1183_v8 = vld [vmem:[%s1683_s1 + $0x28] sm:$0xff] }
   0x2   :  { %v1193_v1 = vld [vmem:[%s1683_s1 + $0x78] sm:$0xff]  ;;  %530 = vmatpush.bf16.msra.mxu0 %v1185_v0  ;;  %v1192_v5 = vld [vmem:[%s1683_s1 + $0x70] sm:$0xff]  ;;  %v1191_v9 = vld [vmem:[%s1683_s1 + $0x68] sm:$0xff] }
   0x3   :  { %v1201_v2 = vld [vmem:[%s1683_s1 + $0xb8] sm:$0xff]  ;;  %593 = vmatpush.bf16.msra.mxu1 %v1193_v1  ;;  %v1200_v6 = vld [vmem:[%s1683_s1 + $0xb0] sm:$0xff]  ;;  %v1199_v10 = vld [vmem:[%s1683_s1 + $0xa8] sm:$0xff] }
   0x4   :  { %v1209_v3 = vld [vmem:[%s1683_s1 + $0xf8] sm:$0xff]  ;;  %656 = vmatpush.bf16.msra.mxu2 %v1201_v2  ;;  %v1208_v7 = vld [vmem:[%s1683_s1 + $0xf0] sm:$0xff]  ;;  %v1207_v11 = vld [vmem:[%s1683_s1 + $0xe8] sm:$0xff] }
   0x5   :  { %719 = vmatpush.bf16.msra.mxu3 %v1209_v3  ;;  %v1182_v12 = vld [vmem:[%s1683_s1 + $0x20] sm:$0xff]  ;;  %v1181_v16 = vld [vmem:[%s1683_s1 + $0x18] sm:$0xff]  ;;  %v1180_v20 = vld [vmem:[%s1683_s1 + $0x10] sm:$0xff] }
   0x6   :  { %531 = vmatpush.bf16.msra.mxu0 %v1184_v4  ;;  %v1190_v13 = vld [vmem:[%s1683_s1 + $0x60] sm:$0xff]  ;;  %v1189_v17 = vld [vmem:[%s1683_s1 + $0x58] sm:$0xff]  ;;  %v1188_v21 = vld [vmem:[%s1683_s1 + $0x50] sm:$0xff] }
   0x7   :  { %594 = vmatpush.bf16.msra.mxu1 %v1192_v5  ;;  %v1198_v14 = vld [vmem:[%s1683_s1 + $0xa0] sm:$0xff]  ;;  %v1197_v18 = vld [vmem:[%s1683_s1 + $0x98] sm:$0xff]  ;;  %v1196_v22 = vld [vmem:[%s1683_s1 + $0x90] sm:$0xff] }
   0x8   :  { %657 = vmatpush.bf16.msra.mxu2 %v1200_v6  ;;  %v1206_v15 = vld [vmem:[%s1683_s1 + $0xe0] sm:$0xff]  ;;  %v1205_v19 = vld [vmem:[%s1683_s1 + $0xd8] sm:$0xff]  ;;  %v1204_v23 = vld [vmem:[%s1683_s1 + $0xd0] sm:$0xff] }
   0x9   :  { %720 = vmatpush.bf16.msra.mxu3 %v1208_v7  ;;  %v1179_v24 = vld [vmem:[%s1683_s1 + $0x8] sm:$0xff]  ;;  %v1178_v28 = vld [vmem:[%s1683_s1] sm:$0xff]  ;;  %v1140_v33 = vld [vmem:[%s1685_s0 + $0xc] sm:$0xf0] }
   0xa   :  { %532 = vmatpush.bf16.msra.mxu0 %v1183_v8  ;;  %v1187_v25 = vld [vmem:[%s1683_s1 + $0x48] sm:$0xff]  ;;  %v1186_v29 = vld [vmem:[%s1683_s1 + $0x40] sm:$0xff]  ;;  %v854_v35 = vld [vmem:[%s1685_s0 + $0x10] sm:$0xf0] }
   0xb   :  { %595 = vmatpush.bf16.msra.mxu1 %v1191_v9  ;;  %v1195_v26 = vld [vmem:[%s1683_s1 + $0x88] sm:$0xff]  ;;  %v1194_v30 = vld [vmem:[%s1683_s1 + $0x80] sm:$0xff]  ;;  %v1141_v37 = vld [vmem:[%s1685_s0 + $0x14] sm:$0xf0] }
   0xc   :  { %658 = vmatpush.bf16.msra.mxu2 %v1199_v10  ;;  %v1203_v27 = vld [vmem:[%s1683_s1 + $0xc8] sm:$0xff]  ;;  %v1202_v31 = vld [vmem:[%s1683_s1 + $0xc0] sm:$0xff]  ;;  %v862_v39 = vld [vmem:[%s1685_s0 + $0x18] sm:$0xf0] }
   0xd   :  { %721 = vmatpush.bf16.msra.mxu3 %v1207_v11  ;;  %v852_v32 = vld [vmem:[%s1685_s0] sm:$0xf]  ;;  %v1138_v34 = vld [vmem:[%s1685_s0 + $0x4] sm:$0xf]  ;;  %v860_v36 = vld [vmem:[%s1685_s0 + $0x8] sm:$0xf] }
   0xe   :  { %533 = vmatpush.bf16.msra.mxu0 %v1182_v12  ;;  %v1139_v38 = vld [vmem:[%s1685_s0 + $0xc] sm:$0xf]  ;;  %v853_v40 = vor.u32 %v1140_v33, %v852_v32  ;;  %v857_v41 = vor.u32 %v1138_v34, %v854_v35  ;;  %v861_v42 = vor.u32 %v1141_v37, %v860_v36  ;;  %v868_v44 = vld [vmem:[%s1685_s0 + $0x20] sm:$0xf]  ;;  %v1144_v45 = vld [vmem:[%s1685_s0 + $0x2c] sm:$0xf0] }
   0xf   :  { %596 = vmatpush.bf16.msra.mxu1 %v1190_v13  ;;  %v865_v43 = vor.u32 %v1139_v38, %v862_v39  ;;  %v1142_v46 = vld [vmem:[%s1685_s0 + $0x24] sm:$0xf]  ;;  %v870_v47 = vld [vmem:[%s1685_s0 + $0x30] sm:$0xf0]  ;;  %v876_v48 = vld [vmem:[%s1685_s0 + $0x28] sm:$0xf]  ;;  %v869_v52 = vor.u32 %v1144_v45, %v868_v44 }
  0x10   :  { %659 = vmatpush.bf16.msra.mxu2 %v1198_v14  ;;  %v1145_v49 = vld [vmem:[%s1685_s0 + $0x34] sm:$0xf0]  ;;  %v1143_v50 = vld [vmem:[%s1685_s0 + $0x2c] sm:$0xf]  ;;  %v878_v51 = vld [vmem:[%s1685_s0 + $0x38] sm:$0xf0]  ;;  %v873_v53 = vor.u32 %v1142_v46, %v870_v47 }
  0x11   :  { %722 = vmatpush.bf16.msra.mxu3 %v1206_v15  ;;  %v877_v54 = vor.u32 %v1145_v49, %v876_v48  ;;  %v881_v55 = vor.u32 %v1143_v50, %v878_v51  ;;  %v884_v56 = vld [vmem:[%s1685_s0 + $0x40] sm:$0xf]  ;;  %v1148_v57 = vld [vmem:[%s1685_s0 + $0x4c] sm:$0xf0]  ;;  %v1146_v58 = vld [vmem:[%s1685_s0 + $0x44] sm:$0xf] }
  0x12   :  { %534 = vmatpush.bf16.msra.mxu0 %v1181_v16  ;;  %v886_v59 = vld [vmem:[%s1685_s0 + $0x50] sm:$0xf0]  ;;  %v892_v60 = vld [vmem:[%s1685_s0 + $0x48] sm:$0xf]  ;;  %v1149_v61 = vld [vmem:[%s1685_s0 + $0x54] sm:$0xf0]  ;;  %v885_v0 = vor.u32 %v1148_v57, %v884_v56 }
  0x13   :  { %597 = vmatpush.bf16.msra.mxu1 %v1189_v17  ;;  %v1147_v62 = vld [vmem:[%s1685_s0 + $0x4c] sm:$0xf]  ;;  %v894_v63 = vld [vmem:[%s1685_s0 + $0x58] sm:$0xf0]  ;;  %v889_v1 = vor.u32 %v1146_v58, %v886_v59  ;;  %v893_v2 = vor.u32 %v1149_v61, %v892_v60  ;;  %v900_v4 = vld [vmem:[%s1685_s0 + $0x60] sm:$0xf] }
  0x14   :  { %660 = vmatpush.bf16.msra.mxu2 %v1197_v18  ;;  %v897_v3 = vor.u32 %v1147_v62, %v894_v63  ;;  %v1152_v5 = vld [vmem:[%s1685_s0 + $0x6c] sm:$0xf0]  ;;  %v1150_v6 = vld [vmem:[%s1685_s0 + $0x64] sm:$0xf]  ;;  %v902_v7 = vld [vmem:[%s1685_s0 + $0x70] sm:$0xf0] }
  0x15   :  { %723 = vmatpush.bf16.msra.mxu3 %v1205_v19  ;;  %v908_v8 = vld [vmem:[%s1685_s0 + $0x68] sm:$0xf]  ;;  %v1153_v9 = vld [vmem:[%s1685_s0 + $0x74] sm:$0xf0]  ;;  %v1151_v10 = vld [vmem:[%s1685_s0 + $0x6c] sm:$0xf]  ;;  %v901_v12 = vor.u32 %v1152_v5, %v900_v4  ;;  %v905_v13 = vor.u32 %v1150_v6, %v902_v7 }
  0x16   :  { %535 = vmatpush.bf16.msra.mxu0 %v1180_v20  ;;  %v910_v11 = vld [vmem:[%s1685_s0 + $0x78] sm:$0xf0]  ;;  %v909_v14 = vor.u32 %v1153_v9, %v908_v8  ;;  %v916_v16 = vld [vmem:[%s1685_s0 + $0x80] sm:$0xf]  ;;  %v1156_v17 = vld [vmem:[%s1685_s0 + $0x8c] sm:$0xf0] }
  0x17   :  { %598 = vmatpush.bf16.msra.mxu1 %v1188_v21  ;;  %v913_v15 = vor.u32 %v1151_v10, %v910_v11  ;;  %v1154_v18 = vld [vmem:[%s1685_s0 + $0x84] sm:$0xf]  ;;  %v918_v19 = vld [vmem:[%s1685_s0 + $0x90] sm:$0xf0]  ;;  %v924_v20 = vld [vmem:[%s1685_s0 + $0x88] sm:$0xf] }
  0x18   :  { %661 = vmatpush.bf16.msra.mxu2 %v1196_v22  ;;  %v1157_v21 = vld [vmem:[%s1685_s0 + $0x94] sm:$0xf0]  ;;  %v1155_v22 = vld [vmem:[%s1685_s0 + $0x8c] sm:$0xf]  ;;  %v940_v32 = vld [vmem:[%s1685_s0 + $0xa8] sm:$0xf] }
  0x19   :  { %724 = vmatpush.bf16.msra.mxu3 %v1204_v23  ;;  %v926_v23 = vld [vmem:[%s1685_s0 + $0x98] sm:$0xf0]  ;;  %v1161_v33 = vld [vmem:[%s1685_s0 + $0xb4] sm:$0xf0]  ;;  %v1159_v34 = vld [vmem:[%s1685_s0 + $0xac] sm:$0xf] }
  0x1a   :  { %536 = vmatpush.bf16.msra.mxu0 %v1179_v24  ;;  %v917_v24 = vor.u32 %v1156_v17, %v916_v16  ;;  %v942_v35 = vld [vmem:[%s1685_s0 + $0xb8] sm:$0xf0]  ;;  %v941_v38 = vor.u32 %v1161_v33, %v940_v32  ;;  %v956_v44 = vld [vmem:[%s1685_s0 + $0xc8] sm:$0xf]  ;;  %v1165_v45 = vld [vmem:[%s1685_s0 + $0xd4] sm:$0xf0] }
  0x1b   :  { %599 = vmatpush.bf16.msra.mxu1 %v1187_v25  ;;  %v921_v25 = vor.u32 %v1154_v18, %v918_v19  ;;  %v945_v39 = vor.u32 %v1159_v34, %v942_v35  ;;  %v1163_v46 = vld [vmem:[%s1685_s0 + $0xcc] sm:$0xf]  ;;  %v958_v47 = vld [vmem:[%s1685_s0 + $0xd8] sm:$0xf0]  ;;  %v957_v50 = vor.u32 %v1165_v45, %v956_v44  ;;  %v972_v56 = vld [vmem:[%s1685_s0 + $0xe8] sm:$0xf] }
  0x1c   :  { %662 = vmatpush.bf16.msra.mxu2 %v1195_v26  ;;  %v925_v26 = vor.u32 %v1157_v21, %v924_v20  ;;  %v961_v51 = vor.u32 %v1163_v46, %v958_v47  ;;  %v1169_v57 = vld [vmem:[%s1685_s0 + $0xf4] sm:$0xf0]  ;;  %v1167_v58 = vld [vmem:[%s1685_s0 + $0xec] sm:$0xf]  ;;  %v974_v59 = vld [vmem:[%s1685_s0 + $0xf8] sm:$0xf0] }
  0x1d   :  { %725 = vmatpush.bf16.msra.mxu3 %v1203_v27  ;;  %v929_v27 = vor.u32 %v1155_v22, %v926_v23  ;;  %v973_v62 = vor.u32 %v1169_v57, %v972_v56  ;;  %v977_v63 = vor.u32 %v1167_v58, %v974_v59  ;;  %v982_v4 = vld [vmem:[%s1685_s0 + $0x110] sm:$0xf0]  ;;  %v988_v5 = vld [vmem:[%s1685_s0 + $0x108] sm:$0xf]  ;;  %v1173_v6 = vld [vmem:[%s1685_s0 + $0x114] sm:$0xf0] }
  0x1e   :  { %537 = vmatpush.bf16.msra.mxu0 %v1178_v28  ;;  %v932_v28 = vld [vmem:[%s1685_s0 + $0xa0] sm:$0xf]  ;;  %v1171_v7 = vld [vmem:[%s1685_s0 + $0x10c] sm:$0xf]  ;;  %v990_v8 = vld [vmem:[%s1685_s0 + $0x118] sm:$0xf0] }
  0x1f   :  { %600 = vmatpush.bf16.msra.mxu1 %v1186_v29  ;;  %v1160_v29 = vld [vmem:[%s1685_s0 + $0xac] sm:$0xf0]  ;;  %v1006_v32 = vld [vmem:[%s1685_s0 + $0x138] sm:$0xf0] }
  0x20   :  { %663 = vmatpush.bf16.msra.mxu2 %v1194_v30  ;;  %v1158_v30 = vld [vmem:[%s1685_s0 + $0xa4] sm:$0xf]  ;;  %v933_v36 = vor.u32 %v1160_v29, %v932_v28  ;;  %v998_v28 = vld [vmem:[%s1685_s0 + $0x130] sm:$0xf0]  ;;  %v1004_v29 = vld [vmem:[%s1685_s0 + $0x128] sm:$0xf] }
  0x21   :  { %726 = vmatpush.bf16.msra.mxu3 %v1202_v31  ;;  %538 = vmatmul.bf16.vlgmr.msra.gmra.mxu0 %v853_v40  ;;  %v934_v31 = vld [vmem:[%s1685_s0 + $0xb0] sm:$0xf0]  ;;  %v948_v40 = vld [vmem:[%s1685_s0 + $0xc0] sm:$0xf] }
  0x22   :  { %601 = vmatmul.bf16.vlgmr.msra.gmra.mxu1 %v857_v41  ;;  %v937_v37 = vor.u32 %v1158_v30, %v934_v31  ;;  %v1164_v41 = vld [vmem:[%s1685_s0 + $0xcc] sm:$0xf0]  ;;  %v1177_v30 = vld [vmem:[%s1685_s0 + $0x134] sm:$0xf0]  ;;  %v1175_v31 = vld [vmem:[%s1685_s0 + $0x12c] sm:$0xf] }
  0x23   :  { %664 = vmatmul.bf16.vlgmr.msra.gmra.mxu2 %v861_v42  ;;  %v1162_v42 = vld [vmem:[%s1685_s0 + $0xc4] sm:$0xf]  ;;  %v949_v48 = vor.u32 %v1164_v41, %v948_v40 }
  0x24   :  { %727 = vmatmul.bf16.vlgmr.msra.gmra.mxu3 %v865_v43  ;;  %v950_v43 = vld [vmem:[%s1685_s0 + $0xd0] sm:$0xf0] }
  0x25   :  { %v953_v49 = vor.u32 %v1162_v42, %v950_v43  ;;  %v1005_v42 = vor.u32 %v1177_v30, %v1004_v29  ;;  %v1009_v43 = vor.u32 %v1175_v31, %v1006_v32 }
  0x31   :  { %543 = vmatmul.bf16.gmra.mxu0 %v869_v52  ;;  %v964_v52 = vld [vmem:[%s1685_s0 + $0xe0] sm:$0xf] }
  0x32   :  { %606 = vmatmul.bf16.gmra.mxu1 %v873_v53  ;;  %v1168_v53 = vld [vmem:[%s1685_s0 + $0xec] sm:$0xf0] }
  0x33   :  { %669 = vmatmul.bf16.gmra.mxu2 %v877_v54  ;;  %v1166_v54 = vld [vmem:[%s1685_s0 + $0xe4] sm:$0xf]  ;;  %v965_v60 = vor.u32 %v1168_v53, %v964_v52 }
  0x34   :  { %732 = vmatmul.bf16.gmra.mxu3 %v881_v55  ;;  %v966_v55 = vld [vmem:[%s1685_s0 + $0xf0] sm:$0xf0] }
  0x35   :  { %v969_v61 = vor.u32 %v1166_v54, %v966_v55  ;;  %v54_v54 = vld [vmem:[%s1685_s0 + $0x140] sm:$0xff]  ;;  %v55_v55 = vld [vmem:[%s1685_s0 + $0x148] sm:$0xff] }
  0x36   :  { %v246_v58 = vunpack.c.l.b16 %v54_v54  ;;  %v247_v59 = vunpack.c.h.b16 %v54_v54 }
  0x41   :  { %548 = vmatmul.bf16.gmra.mxu0 %v885_v0  ;;  %v1522_v0 = vld [vmem:[%s1684_s2] ss:$0 sm:$0xff] }
  0x42   :  { %611 = vmatmul.bf16.gmra.mxu1 %v889_v1  ;;  %v980_v1 = vld [vmem:[%s1685_s0 + $0x100] sm:$0xf] }
  0x43   :  { %674 = vmatmul.bf16.gmra.mxu2 %v893_v2  ;;  %v1172_v2 = vld [vmem:[%s1685_s0 + $0x10c] sm:$0xf0] }
  0x44   :  { %737 = vmatmul.bf16.gmra.mxu3 %v897_v3  ;;  %v1170_v3 = vld [vmem:[%s1685_s0 + $0x104] sm:$0xf]  ;;  %v981_v9 = vor.u32 %v1172_v2, %v980_v1 }
  0x45   :  { %v985_v10 = vor.u32 %v1170_v3, %v982_v4  ;;  %v290_v4 = vpack.c.b16 %v246_v58, %v246_v58 }
  0x51   :  { %553 = vmatmul.bf16.gmra.mxu0 %v901_v12 }
  0x52   :  { %616 = vmatmul.bf16.gmra.mxu1 %v905_v13  ;;  %v989_v13 = vor.u32 %v1173_v6, %v988_v5  ;;  %v291_v5 = vpack.c.b16 %v247_v59, %v247_v59 }
  0x53   :  { %679 = vmatmul.bf16.gmra.mxu2 %v909_v14  ;;  %v993_v14 = vor.u32 %v1171_v7, %v990_v8 }
  0x54   :  { %742 = vmatmul.bf16.gmra.mxu3 %v913_v15 }
  0x61   :  { %558 = vmatmul.bf16.gmra.mxu0 %v917_v24  ;;  %v996_v24 = vld [vmem:[%s1685_s0 + $0x120] sm:$0xf] }
  0x62   :  { %621 = vmatmul.bf16.gmra.mxu1 %v921_v25  ;;  %v1176_v25 = vld [vmem:[%s1685_s0 + $0x12c] sm:$0xf0] }
  0x63   :  { %684 = vmatmul.bf16.gmra.mxu2 %v925_v26  ;;  %v1174_v26 = vld [vmem:[%s1685_s0 + $0x124] sm:$0xf] }
  0x64   :  { %747 = vmatmul.bf16.gmra.mxu3 %v929_v27 }
  0x71   :  { %563 = vmatmul.bf16.gmra.mxu0 %v933_v36 }
  0x72   :  { %626 = vmatmul.bf16.gmra.mxu1 %v937_v37  ;;  %v997_v37 = vor.u32 %v1176_v25, %v996_v24 }
  0x73   :  { %689 = vmatmul.bf16.gmra.mxu2 %v941_v38  ;;  %v1001_v38 = vor.u32 %v1174_v26, %v998_v28 }
  0x74   :  { %752 = vmatmul.bf16.gmra.mxu3 %v945_v39 }
  0x81   :  { %568 = vmatmul.bf16.gmra.mxu0 %v949_v48 }
  0x82   :  { %631 = vmatmul.bf16.gmra.mxu1 %v953_v49 }
  0x83   :  { %694 = vmatmul.bf16.gmra.mxu2 %v957_v50 }
  0x84   :  { %757 = vmatmul.bf16.gmra.mxu3 %v961_v51 }
  0x91   :  { %573 = vmatmul.bf16.gmra.mxu0 %v965_v60 }
  0x92   :  { %636 = vmatmul.bf16.gmra.mxu1 %v969_v61  ;;  %v248_v61 = vunpack.c.l.b16 %v55_v55 }
  0x93   :  { %699 = vmatmul.bf16.gmra.mxu2 %v973_v62  ;;  %v249_v62 = vunpack.c.h.b16 %v55_v55 }
  0x94   :  { %762 = vmatmul.bf16.gmra.mxu3 %v977_v63 }
  0x9e   :  { %v539_v11 = vpop.f32.mrf.mxu0 }
  0x9f   :  { %v602_v12 = vpop.f32.mrf.mxu1  ;;  %v540_v15 = vadd.f32 %v1522_v0, %v539_v11 }
  0xa1   :  { %578 = vmatmul.bf16.gmra.mxu0 %v981_v9  ;;  %v603_v16 = vadd.f32 %v602_v12, %v540_v15  ;;  %v292_v9 = vpack.c.b16 %v248_v61, %v248_v61 }
  0xa2   :  { %641 = vmatmul.bf16.gmra.mxu1 %v985_v10  ;;  %v293_v10 = vpack.c.b16 %v249_v62, %v249_v62 }
  0xa3   :  { %704 = vmatmul.bf16.gmra.mxu2 %v989_v13 }
  0xa4   :  { %767 = vmatmul.bf16.gmra.mxu3 %v993_v14 }
  0xa6   :  { %v665_v17 = vpop.f32.mrf.mxu2  ;;  %v541_v20 = vpop.f32.mrf.mxu0 }
  0xa7   :  { %v728_v18 = vpop.f32.mrf.mxu3  ;;  %v666_v19 = vadd.f32 %v665_v17, %v603_v16  ;;  %v604_v21 = vpop.f32.mrf.mxu1  ;;  %v542_v23 = vadd.f32 %v1522_v0, %v541_v20 }
  0xa9   :  { %v729_v22 = vadd.f32 %v728_v18, %v666_v19  ;;  %v605_v34 = vadd.f32 %v604_v21, %v542_v23 }
  0xab   :  { %v782_v27 = vmax.f32 %v729_v22, 0.0 }
  0xad   :  { %v803_v33 = vpack.c.bf16 %v782_v27, %v782_v27 }
  0xae   :  { %v667_v35 = vpop.f32.mrf.mxu2  ;;  %v544_v40 = vpop.f32.mrf.mxu0 }
  0xaf   :  { %v730_v36 = vpop.f32.mrf.mxu3  ;;  %825 = vst.msk [vmem:[%s1686_s3] sm:$0xf] %vm824_vm0, %v803_v33  ;;  %v668_v39 = vadd.f32 %v667_v35, %v605_v34  ;;  %v607_v41 = vpop.f32.mrf.mxu1  ;;  %v545_v44 = vadd.f32 %v1522_v0, %v544_v40 }
  0xb1   :  { %v731_v45 = vadd.f32 %v730_v36, %v668_v39  ;;  %583 = vmatmul.bf16.gmra.mxu0 %v997_v37  ;;  %v608_v47 = vadd.f32 %v607_v41, %v545_v44 }
  0xb2   :  { %646 = vmatmul.bf16.gmra.mxu1 %v1001_v38 }
  0xb3   :  { %v783_v46 = vmax.f32 %v731_v45, 0.0  ;;  %709 = vmatmul.bf16.gmra.mxu2 %v1005_v42 }
  0xb4   :  { %772 = vmatmul.bf16.gmra.mxu3 %v1009_v43 }
  0xb5   :  { %v804_v48 = vpack.c.bf16 %v783_v46, %v783_v46 }
  0xb6   :  { %v670_v49 = vpop.f32.mrf.mxu2  ;;  %v546_v52 = vpop.f32.mrf.mxu0 }
  0xb7   :  { %v733_v50 = vpop.f32.mrf.mxu3  ;;  %826 = vst.msk [vmem:[%s1686_s3 + $0x4] sm:$0xf] %vm824_vm0, %v804_v48  ;;  %v671_v51 = vadd.f32 %v670_v49, %v608_v47  ;;  %v609_v53 = vpop.f32.mrf.mxu1  ;;  %v547_v57 = vadd.f32 %v1522_v0, %v546_v52 }
  0xb9   :  { %v734_v56 = vadd.f32 %v733_v50, %v671_v51  ;;  %v610_v1 = vadd.f32 %v609_v53, %v547_v57 }
  0xbb   :  { %v784_v60 = vmax.f32 %v734_v56, 0.0 }
  0xbd   :  { %v805_v63 = vpack.c.bf16 %v784_v60, %v784_v60 }
  0xbe   :  { %v672_v2 = vpop.f32.mrf.mxu2  ;;  %v549_v7 = vpop.f32.mrf.mxu0 }
  0xbf   :  { %v735_v3 = vpop.f32.mrf.mxu3  ;;  %827 = vst.msk [vmem:[%s1686_s3 + $0x8] sm:$0xf] %vm824_vm0, %v805_v63  ;;  %v673_v6 = vadd.f32 %v672_v2, %v610_v1  ;;  %v612_v8 = vpop.f32.mrf.mxu1  ;;  %v550_v11 = vadd.f32 %v1522_v0, %v549_v7 }
  0xc1   :  { %v736_v12 = vadd.f32 %v735_v3, %v673_v6  ;;  %588 = vmatmul.bf16.gmra.mxu0 %v290_v4  ;;  %v613_v14 = vadd.f32 %v612_v8, %v550_v11 }
  0xc2   :  { %651 = vmatmul.bf16.gmra.mxu1 %v291_v5 }
  0xc3   :  { %v785_v13 = vmax.f32 %v736_v12, 0.0  ;;  %714 = vmatmul.bf16.gmra.mxu2 %v292_v9 }
  0xc4   :  { %777 = vmatmul.bf16.gmra.mxu3 %v293_v10 }
  0xc5   :  { %v806_v15 = vpack.c.bf16 %v785_v13, %v785_v13 }
  0xc6   :  { %v675_v16 = vpop.f32.mrf.mxu2  ;;  %v551_v19 = vpop.f32.mrf.mxu0 }
  0xc7   :  { %v738_v17 = vpop.f32.mrf.mxu3  ;;  %828 = vst.msk [vmem:[%s1686_s3 + $0xc] sm:$0xf] %vm824_vm0, %v806_v15  ;;  %v676_v18 = vadd.f32 %v675_v16, %v613_v14  ;;  %v614_v20 = vpop.f32.mrf.mxu1  ;;  %v552_v22 = vadd.f32 %v1522_v0, %v551_v19 }
  0xc9   :  { %v739_v21 = vadd.f32 %v738_v17, %v676_v18  ;;  %v615_v25 = vadd.f32 %v614_v20, %v552_v22 }
  0xcb   :  { %v786_v23 = vmax.f32 %v739_v21, 0.0 }
  0xcd   :  { %v807_v24 = vpack.c.bf16 %v786_v23, %v786_v23 }
  0xce   :  { %v677_v26 = vpop.f32.mrf.mxu2  ;;  %v554_v29 = vpop.f32.mrf.mxu0 }
  0xcf   :  { %v740_v27 = vpop.f32.mrf.mxu3  ;;  %829 = vst.msk [vmem:[%s1686_s3 + $0x10] sm:$0xf] %vm824_vm0, %v807_v24  ;;  %v678_v28 = vadd.f32 %v677_v26, %v615_v25  ;;  %v617_v30 = vpop.f32.mrf.mxu1  ;;  %v555_v31 = vadd.f32 %v1522_v0, %v554_v29 }
  0xd1   :  { %v741_v32 = vadd.f32 %v740_v27, %v678_v28  ;;  %v618_v34 = vadd.f32 %v617_v30, %v555_v31 }
  0xd3   :  { %v787_v33 = vmax.f32 %v741_v32, 0.0 }
  0xd5   :  { %v808_v35 = vpack.c.bf16 %v787_v33, %v787_v33 }
  0xd6   :  { %v680_v36 = vpop.f32.mrf.mxu2  ;;  %v556_v39 = vpop.f32.mrf.mxu0 }
  0xd7   :  { %v743_v37 = vpop.f32.mrf.mxu3  ;;  %830 = vst.msk [vmem:[%s1686_s3 + $0x14] sm:$0xf] %vm824_vm0, %v808_v35  ;;  %v681_v38 = vadd.f32 %v680_v36, %v618_v34  ;;  %v619_v40 = vpop.f32.mrf.mxu1  ;;  %v557_v42 = vadd.f32 %v1522_v0, %v556_v39 }
  0xd9   :  { %v744_v41 = vadd.f32 %v743_v37, %v681_v38  ;;  %v620_v45 = vadd.f32 %v619_v40, %v557_v42 }
  0xdb   :  { %v788_v43 = vmax.f32 %v744_v41, 0.0 }
  0xdd   :  { %v809_v44 = vpack.c.bf16 %v788_v43, %v788_v43 }
  0xde   :  { %v682_v46 = vpop.f32.mrf.mxu2  ;;  %v559_v49 = vpop.f32.mrf.mxu0 }
  0xdf   :  { %v745_v47 = vpop.f32.mrf.mxu3  ;;  %831 = vst.msk [vmem:[%s1686_s3 + $0x18] sm:$0xf] %vm824_vm0, %v809_v44  ;;  %v683_v48 = vadd.f32 %v682_v46, %v620_v45  ;;  %v622_v50 = vpop.f32.mrf.mxu1  ;;  %v560_v51 = vadd.f32 %v1522_v0, %v559_v49 }
  0xe1   :  { %v746_v52 = vadd.f32 %v745_v47, %v683_v48  ;;  %v623_v54 = vadd.f32 %v622_v50, %v560_v51 }
  0xe3   :  { %v789_v53 = vmax.f32 %v746_v52, 0.0 }
  0xe5   :  { %v810_v55 = vpack.c.bf16 %v789_v53, %v789_v53 }
  0xe6   :  { %v685_v56 = vpop.f32.mrf.mxu2  ;;  %v561_v59 = vpop.f32.mrf.mxu0 }
  0xe7   :  { %v748_v57 = vpop.f32.mrf.mxu3  ;;  %832 = vst.msk [vmem:[%s1686_s3 + $0x1c] sm:$0xf] %vm824_vm0, %v810_v55  ;;  %v686_v58 = vadd.f32 %v685_v56, %v623_v54  ;;  %v624_v60 = vpop.f32.mrf.mxu1  ;;  %v562_v62 = vadd.f32 %v1522_v0, %v561_v59 }
  0xe9   :  { %v749_v61 = vadd.f32 %v748_v57, %v686_v58  ;;  %v625_v2 = vadd.f32 %v624_v60, %v562_v62 }
  0xeb   :  { %v790_v63 = vmax.f32 %v749_v61, 0.0 }
  0xed   :  { %v811_v1 = vpack.c.bf16 %v790_v63, %v790_v63 }
  0xee   :  { %v687_v3 = vpop.f32.mrf.mxu2  ;;  %v564_v6 = vpop.f32.mrf.mxu0 }
  0xef   :  { %v750_v4 = vpop.f32.mrf.mxu3  ;;  %833 = vst.msk [vmem:[%s1686_s3 + $0x20] sm:$0xf] %vm824_vm0, %v811_v1  ;;  %v688_v5 = vadd.f32 %v687_v3, %v625_v2  ;;  %v627_v7 = vpop.f32.mrf.mxu1  ;;  %v565_v8 = vadd.f32 %v1522_v0, %v564_v6 }
  0xf1   :  { %v751_v9 = vadd.f32 %v750_v4, %v688_v5  ;;  %v628_v11 = vadd.f32 %v627_v7, %v565_v8 }
  0xf3   :  { %v791_v10 = vmax.f32 %v751_v9, 0.0 }
  0xf5   :  { %v812_v12 = vpack.c.bf16 %v791_v10, %v791_v10 }
  0xf6   :  { %v690_v13 = vpop.f32.mrf.mxu2  ;;  %v566_v16 = vpop.f32.mrf.mxu0 }
  0xf7   :  { %v753_v14 = vpop.f32.mrf.mxu3  ;;  %834 = vst.msk [vmem:[%s1686_s3 + $0x24] sm:$0xf] %vm824_vm0, %v812_v12  ;;  %v691_v15 = vadd.f32 %v690_v13, %v628_v11  ;;  %v629_v17 = vpop.f32.mrf.mxu1  ;;  %v567_v19 = vadd.f32 %v1522_v0, %v566_v16 }
  0xf9   :  { %v754_v18 = vadd.f32 %v753_v14, %v691_v15  ;;  %v630_v22 = vadd.f32 %v629_v17, %v567_v19 }
  0xfb   :  { %v792_v20 = vmax.f32 %v754_v18, 0.0 }
  0xfd   :  { %v813_v21 = vpack.c.bf16 %v792_v20, %v792_v20 }
  0xfe   :  { %v692_v23 = vpop.f32.mrf.mxu2  ;;  %v569_v26 = vpop.f32.mrf.mxu0 }
  0xff   :  { %v755_v24 = vpop.f32.mrf.mxu3  ;;  %835 = vst.msk [vmem:[%s1686_s3 + $0x28] sm:$0xf] %vm824_vm0, %v813_v21  ;;  %v693_v25 = vadd.f32 %v692_v23, %v630_v22  ;;  %v632_v27 = vpop.f32.mrf.mxu1  ;;  %v570_v28 = vadd.f32 %v1522_v0, %v569_v26 }
 0x101   :  { %v756_v29 = vadd.f32 %v755_v24, %v693_v25  ;;  %v633_v31 = vadd.f32 %v632_v27, %v570_v28 }
 0x103   :  { %v793_v30 = vmax.f32 %v756_v29, 0.0 }
 0x105   :  { %v814_v32 = vpack.c.bf16 %v793_v30, %v793_v30 }
 0x106   :  { %v695_v33 = vpop.f32.mrf.mxu2  ;;  %v571_v36 = vpop.f32.mrf.mxu0 }
 0x107   :  { %v758_v34 = vpop.f32.mrf.mxu3  ;;  %836 = vst.msk [vmem:[%s1686_s3 + $0x2c] sm:$0xf] %vm824_vm0, %v814_v32  ;;  %v696_v35 = vadd.f32 %v695_v33, %v633_v31  ;;  %v634_v37 = vpop.f32.mrf.mxu1  ;;  %v572_v39 = vadd.f32 %v1522_v0, %v571_v36 }
 0x109   :  { %v759_v38 = vadd.f32 %v758_v34, %v696_v35  ;;  %v635_v42 = vadd.f32 %v634_v37, %v572_v39 }
 0x10b   :  { %v794_v40 = vmax.f32 %v759_v38, 0.0 }
 0x10d   :  { %v815_v41 = vpack.c.bf16 %v794_v40, %v794_v40 }
 0x10e   :  { %v697_v43 = vpop.f32.mrf.mxu2  ;;  %v574_v46 = vpop.f32.mrf.mxu0 }
 0x10f   :  { %v760_v44 = vpop.f32.mrf.mxu3  ;;  %837 = vst.msk [vmem:[%s1686_s3 + $0x30] sm:$0xf] %vm824_vm0, %v815_v41  ;;  %v698_v45 = vadd.f32 %v697_v43, %v635_v42  ;;  %v637_v47 = vpop.f32.mrf.mxu1  ;;  %v575_v48 = vadd.f32 %v1522_v0, %v574_v46 }
 0x111   :  { %v761_v49 = vadd.f32 %v760_v44, %v698_v45  ;;  %v638_v51 = vadd.f32 %v637_v47, %v575_v48 }
 0x113   :  { %v795_v50 = vmax.f32 %v761_v49, 0.0 }
 0x115   :  { %v816_v52 = vpack.c.bf16 %v795_v50, %v795_v50 }
 0x116   :  { %v700_v53 = vpop.f32.mrf.mxu2  ;;  %v576_v56 = vpop.f32.mrf.mxu0 }
 0x117   :  { %v763_v54 = vpop.f32.mrf.mxu3  ;;  %838 = vst.msk [vmem:[%s1686_s3 + $0x34] sm:$0xf] %vm824_vm0, %v816_v52  ;;  %v701_v55 = vadd.f32 %v700_v53, %v638_v51  ;;  %v639_v57 = vpop.f32.mrf.mxu1  ;;  %v577_v59 = vadd.f32 %v1522_v0, %v576_v56 }
 0x119   :  { %v764_v58 = vadd.f32 %v763_v54, %v701_v55  ;;  %v640_v62 = vadd.f32 %v639_v57, %v577_v59 }
 0x11b   :  { %v796_v60 = vmax.f32 %v764_v58, 0.0 }
 0x11d   :  { %v817_v61 = vpack.c.bf16 %v796_v60, %v796_v60 }
 0x11e   :  { %v702_v63 = vpop.f32.mrf.mxu2  ;;  %v579_v3 = vpop.f32.mrf.mxu0 }
 0x11f   :  { %v765_v1 = vpop.f32.mrf.mxu3  ;;  %839 = vst.msk [vmem:[%s1686_s3 + $0x38] sm:$0xf] %vm824_vm0, %v817_v61  ;;  %v703_v2 = vadd.f32 %v702_v63, %v640_v62  ;;  %v642_v4 = vpop.f32.mrf.mxu1  ;;  %v580_v5 = vadd.f32 %v1522_v0, %v579_v3 }
 0x121   :  { %v766_v6 = vadd.f32 %v765_v1, %v703_v2  ;;  %v643_v8 = vadd.f32 %v642_v4, %v580_v5 }
 0x123   :  { %v797_v7 = vmax.f32 %v766_v6, 0.0 }
 0x125   :  { %v818_v9 = vpack.c.bf16 %v797_v7, %v797_v7 }
 0x126   :  { %v705_v10 = vpop.f32.mrf.mxu2  ;;  %v581_v13 = vpop.f32.mrf.mxu0 }
 0x127   :  { %v768_v11 = vpop.f32.mrf.mxu3  ;;  %840 = vst.msk [vmem:[%s1686_s3 + $0x3c] sm:$0xf] %vm824_vm0, %v818_v9  ;;  %v706_v12 = vadd.f32 %v705_v10, %v643_v8  ;;  %v644_v14 = vpop.f32.mrf.mxu1  ;;  %v582_v16 = vadd.f32 %v1522_v0, %v581_v13 }
 0x129   :  { %v769_v15 = vadd.f32 %v768_v11, %v706_v12  ;;  %v645_v19 = vadd.f32 %v644_v14, %v582_v16 }
 0x12b   :  { %v798_v17 = vmax.f32 %v769_v15, 0.0 }
 0x12d   :  { %v819_v18 = vpack.c.bf16 %v798_v17, %v798_v17 }
 0x12e   :  { %v707_v20 = vpop.f32.mrf.mxu2  ;;  %v584_v23 = vpop.f32.mrf.mxu0 }
 0x12f   :  { %v770_v21 = vpop.f32.mrf.mxu3  ;;  %841 = vst.msk [vmem:[%s1686_s3 + $0x40] sm:$0xf] %vm824_vm0, %v819_v18  ;;  %v708_v22 = vadd.f32 %v707_v20, %v645_v19  ;;  %v647_v24 = vpop.f32.mrf.mxu1  ;;  %v585_v25 = vadd.f32 %v1522_v0, %v584_v23 }
 0x131   :  { %v771_v26 = vadd.f32 %v770_v21, %v708_v22  ;;  %v648_v28 = vadd.f32 %v647_v24, %v585_v25 }
 0x133   :  { %v799_v27 = vmax.f32 %v771_v26, 0.0 }
 0x135   :  { %v820_v29 = vpack.c.bf16 %v799_v27, %v799_v27 }
 0x136   :  { %v710_v30 = vpop.f32.mrf.mxu2  ;;  %v586_v33 = vpop.f32.mrf.mxu0 }
 0x137   :  { %v773_v31 = vpop.f32.mrf.mxu3  ;;  %842 = vst.msk [vmem:[%s1686_s3 + $0x44] sm:$0xf] %vm824_vm0, %v820_v29  ;;  %v711_v32 = vadd.f32 %v710_v30, %v648_v28  ;;  %v649_v34 = vpop.f32.mrf.mxu1  ;;  %v587_v36 = vadd.f32 %v1522_v0, %v586_v33 }
 0x139   :  { %v774_v35 = vadd.f32 %v773_v31, %v711_v32  ;;  %v650_v39 = vadd.f32 %v649_v34, %v587_v36 }
 0x13b   :  { %v800_v37 = vmax.f32 %v774_v35, 0.0 }
 0x13d   :  { %v821_v38 = vpack.c.bf16 %v800_v37, %v800_v37 }
 0x13e   :  { %v712_v40 = vpop.f32.mrf.mxu2  ;;  %v589_v43 = vpop.f32.mrf.mxu0 }
 0x13f   :  { %v775_v41 = vpop.f32.mrf.mxu3  ;;  %843 = vst.msk [vmem:[%s1686_s3 + $0x48] sm:$0xf] %vm824_vm0, %v821_v38  ;;  %v713_v42 = vadd.f32 %v712_v40, %v650_v39  ;;  %v652_v44 = vpop.f32.mrf.mxu1  ;;  %v590_v45 = vadd.f32 %v1522_v0, %v589_v43 }
 0x141   :  { %v776_v46 = vadd.f32 %v775_v41, %v713_v42  ;;  %v653_v48 = vadd.f32 %v652_v44, %v590_v45 }
 0x143   :  { %v801_v47 = vmax.f32 %v776_v46, 0.0 }
 0x145   :  { %v822_v49 = vpack.c.bf16 %v801_v47, %v801_v47 }
 0x146   :  { %v715_v50 = vpop.f32.mrf.mxu2  ;;  %v591_v53 = vpop.f32.mrf.mxu0 }
 0x147   :  { %v778_v51 = vpop.f32.mrf.mxu3  ;;  %844 = vst.msk [vmem:[%s1686_s3 + $0x4c] sm:$0xf] %vm824_vm0, %v822_v49  ;;  %v716_v52 = vadd.f32 %v715_v50, %v653_v48  ;;  %v654_v54 = vpop.f32.mrf.mxu1 }
 0x149   :  { %v779_v55 = vadd.f32 %v778_v51, %v716_v52 }
 0x14b   :  { %v802_v56 = vmax.f32 %v779_v55, 0.0 }
 0x14d   :  { %v823_v57 = vpack.c.bf16 %v802_v56, %v802_v56 }
 0x14e   :  { %v717_v58 = vpop.f32.mrf.mxu2 }
 0x14f   :  { %v780_v59 = vpop.f32.mrf.mxu3  ;;  %845 = vst.msk [vmem:[%s1686_s3 + $0x50] sm:$0xf] %vm824_vm0, %v823_v57 }

// kernel: cnn_forward.6
= control target key start
LH: loop header
LB: loop body
LE: loop exit
PB: predicated region body
PF: predicated region fallthrough
CT: control target
= control target key end

     0   :  { %vm513_vm0 = vcmask 523264   ;;  %vm776_vm1 = vcmask 257024   ;;  %s1581_s1 = inlined_call_operand.vmem [shape: bf16[576,32], index: 1, kind: input, shape index: {}]   ;;  %s1582_s2 = inlined_call_operand.vmem [shape: f32[1,32], index: 2, kind: input, shape index: {}]   ;;  %s1583_s0 = inlined_call_operand.vmem [shape: bf16[104,576], index: 0, kind: input, shape index: {}]   ;;  %s1584_s3 = inlined_call_operand.vmem [shape: bf16[104,32], index: 3, kind: output, shape index: {}]  }
   0x1   :  { %v1102_v0 = vld [vmem:[%s1581_s1 + $0x38] sm:$0xff]  ;;  %v1101_v1 = vld [vmem:[%s1581_s1 + $0x30] sm:$0xff]  ;;  %v1100_v2 = vld [vmem:[%s1581_s1 + $0x28] sm:$0xff] }
   0x2   :  { %1131 = vmatpush.bf16.msra.mxu1 %v1102_v0  ;;  %1132 = vmatpush.bf16.msra.mxu2 %v1102_v0  ;;  %v1099_v3 = vld [vmem:[%s1581_s1 + $0x20] sm:$0xff]  ;;  %v1098_v4 = vld [vmem:[%s1581_s1 + $0x18] sm:$0xff]  ;;  %v1097_v5 = vld [vmem:[%s1581_s1 + $0x10] sm:$0xff] }
   0x3   :  { %1133 = vmatpush.bf16.msra.mxu3 %v1102_v0  ;;  %535 = vmatpush.bf16.msra.mxu0 %v1102_v0  ;;  %v1096_v6 = vld [vmem:[%s1581_s1 + $0x8] sm:$0xff]  ;;  %v1200_v7 = vld [vmem:[%s1583_s0 + $0xf0] sm:$0xff]  ;;  %v1095_v8 = vld [vmem:[%s1581_s1] sm:$0xff] }
   0x4   :  { %v836_v9 = vld [vmem:[%s1583_s0 + $0x50] sm:$0xf]  ;;  %v1077_v10 = vld [vmem:[%s1583_s0 + $0x60] sm:$0xf0]  ;;  %v876_v11 = vld [vmem:[%s1583_s0 + $0xa0] sm:$0xf]  ;;  %v229_v15 = vunpack.c.l.b16 %v1200_v7 }
   0x5   :  { %v1087_v12 = vld [vmem:[%s1583_s0 + $0xb0] sm:$0xf0]  ;;  %v796_v13 = vld [vmem:[%s1583_s0] sm:$0xf]  ;;  %v1126_v16 = vld [vmem:[%s1581_s1 + $0xf8] sm:$0xff]  ;;  %v837_v18 = vor.u32 %v1077_v10, %v836_v9 }
   0x6   :  { %1134 = vmatpush.bf16.msra.mxu1 %v1101_v1  ;;  %1135 = vmatpush.bf16.msra.mxu2 %v1101_v1  ;;  %v1067_v14 = vld [vmem:[%s1583_s0 + $0x10] sm:$0xf0]  ;;  %v1118_v17 = vld [vmem:[%s1581_s1 + $0xb8] sm:$0xff]  ;;  %v877_v19 = vor.u32 %v1087_v12, %v876_v11  ;;  %v264_v23 = vpack.c.b16 %v229_v15, %v229_v15  ;;  %v1124_v28 = vld [vmem:[%s1581_s1 + $0xe8] sm:$0xff] }
   0x7   :  { %1136 = vmatpush.bf16.msra.mxu3 %v1101_v1  ;;  %536 = vmatpush.bf16.msra.mxu0 %v1101_v1  ;;  %v797_v20 = vor.u32 %v1067_v14, %v796_v13  ;;  %v1110_v21 = vld [vmem:[%s1581_s1 + $0x78] sm:$0xff]  ;;  %v1125_v24 = vld [vmem:[%s1581_s1 + $0xf0] sm:$0xff]  ;;  %v1116_v29 = vld [vmem:[%s1581_s1 + $0xa8] sm:$0xff] }
   0x8   :  { %v1130_v22 = vld [vmem:[%s1581_s1 + $0x118] sm:$0xff]  ;;  %v1117_v25 = vld [vmem:[%s1581_s1 + $0xb0] sm:$0xff]  ;;  %v1108_v30 = vld [vmem:[%s1581_s1 + $0x68] sm:$0xff] }
   0x9   :  { %v1109_v26 = vld [vmem:[%s1581_s1 + $0x70] sm:$0xff]  ;;  %v1128_v31 = vld [vmem:[%s1581_s1 + $0x108] sm:$0xff]  ;;  %v1123_v32 = vld [vmem:[%s1581_s1 + $0xe0] sm:$0xff] }
   0xa   :  { %1137 = vmatpush.bf16.msra.mxu1 %v1100_v2  ;;  %1138 = vmatpush.bf16.msra.mxu2 %v1100_v2  ;;  %v1129_v27 = vld [vmem:[%s1581_s1 + $0x110] sm:$0xff]  ;;  %v1115_v33 = vld [vmem:[%s1581_s1 + $0xa0] sm:$0xff]  ;;  %v856_v35 = vld [vmem:[%s1583_s0 + $0x78] sm:$0xf] }
   0xb   :  { %1139 = vmatpush.bf16.msra.mxu3 %v1100_v2  ;;  %537 = vmatpush.bf16.msra.mxu0 %v1100_v2  ;;  %v1107_v34 = vld [vmem:[%s1581_s1 + $0x60] sm:$0xff]  ;;  %v1082_v36 = vld [vmem:[%s1583_s0 + $0x88] sm:$0xf0]  ;;  %v896_v37 = vld [vmem:[%s1583_s0 + $0xc8] sm:$0xf] }
   0xc   :  { %v1092_v38 = vld [vmem:[%s1583_s0 + $0xd8] sm:$0xf0]  ;;  %v816_v39 = vld [vmem:[%s1583_s0 + $0x28] sm:$0xf]  ;;  %v1127_v41 = vld [vmem:[%s1581_s1 + $0x100] sm:$0xff]  ;;  %v857_v44 = vor.u32 %v1082_v36, %v856_v35 }
   0xd   :  { %v1072_v40 = vld [vmem:[%s1583_s0 + $0x38] sm:$0xf0]  ;;  %v897_v45 = vor.u32 %v1092_v38, %v896_v37  ;;  %v1121_v48 = vld [vmem:[%s1581_s1 + $0xd0] sm:$0xff]  ;;  %v1120_v51 = vld [vmem:[%s1581_s1 + $0xc8] sm:$0xff] }
   0xe   :  { %1140 = vmatpush.bf16.msra.mxu1 %v1099_v3  ;;  %1141 = vmatpush.bf16.msra.mxu2 %v1099_v3  ;;  %v1122_v42 = vld [vmem:[%s1581_s1 + $0xd8] sm:$0xff]  ;;  %v817_v46 = vor.u32 %v1072_v40, %v816_v39  ;;  %v1113_v49 = vld [vmem:[%s1581_s1 + $0x90] sm:$0xff]  ;;  %v1112_v52 = vld [vmem:[%s1581_s1 + $0x88] sm:$0xff] }
   0xf   :  { %1142 = vmatpush.bf16.msra.mxu3 %v1099_v3  ;;  %538 = vmatpush.bf16.msra.mxu0 %v1099_v3  ;;  %v1114_v43 = vld [vmem:[%s1581_s1 + $0x98] sm:$0xff]  ;;  %v1105_v50 = vld [vmem:[%s1581_s1 + $0x50] sm:$0xff]  ;;  %v1104_v53 = vld [vmem:[%s1581_s1 + $0x48] sm:$0xff] }
  0x10   :  { %v1106_v47 = vld [vmem:[%s1581_s1 + $0x58] sm:$0xff]  ;;  %v1119_v54 = vld [vmem:[%s1581_s1 + $0xc0] sm:$0xff]  ;;  %v1066_v56 = vld [vmem:[%s1583_s0 + $0xc] sm:$0xf] }
  0x11   :  { %v1111_v55 = vld [vmem:[%s1581_s1 + $0x80] sm:$0xff]  ;;  %v798_v60 = vld [vmem:[%s1583_s0 + $0x14] sm:$0xf0]  ;;  %v804_v61 = vld [vmem:[%s1583_s0 + $0x8] sm:$0xf] }
  0x12   :  { %1143 = vmatpush.bf16.msra.mxu1 %v1098_v4  ;;  %1144 = vmatpush.bf16.msra.mxu2 %v1098_v4  ;;  %v806_v57 = vld [vmem:[%s1583_s0 + $0x1c] sm:$0xf0]  ;;  %v1065_v59 = vld [vmem:[%s1583_s0 + $0x4] sm:$0xf]  ;;  %v1068_v62 = vld [vmem:[%s1583_s0 + $0x18] sm:$0xf0] }
  0x13   :  { %1145 = vmatpush.bf16.msra.mxu3 %v1098_v4  ;;  %539 = vmatpush.bf16.msra.mxu0 %v1098_v4  ;;  %v1103_v58 = vld [vmem:[%s1581_s1 + $0x40] sm:$0xff]  ;;  %v809_v63 = vor.u32 %v1066_v56, %v806_v57  ;;  %v812_v0 = vld [vmem:[%s1583_s0 + $0x10] sm:$0xf]  ;;  %v801_v2 = vor.u32 %v1065_v59, %v798_v60  ;;  %v805_v3 = vor.u32 %v1068_v62, %v804_v61  ;;  %v832_v13 = vld [vmem:[%s1583_s0 + $0x38] sm:$0xf] }
  0x14   :  { %v1069_v1 = vld [vmem:[%s1583_s0 + $0x20] sm:$0xf0]  ;;  %v818_v9 = vld [vmem:[%s1583_s0 + $0x3c] sm:$0xf0]  ;;  %v824_v10 = vld [vmem:[%s1583_s0 + $0x30] sm:$0xf] }
  0x15   :  { %v813_v4 = vor.u32 %v1069_v1, %v812_v0  ;;  %v1073_v11 = vld [vmem:[%s1583_s0 + $0x40] sm:$0xf0]  ;;  %v1074_v14 = vld [vmem:[%s1583_s0 + $0x48] sm:$0xf0]  ;;  %v1083_v35 = vld [vmem:[%s1583_s0 + $0x90] sm:$0xf0] }
  0x16   :  { %1146 = vmatpush.bf16.msra.mxu1 %v1097_v5  ;;  %1147 = vmatpush.bf16.msra.mxu2 %v1097_v5  ;;  %v872_v37 = vld [vmem:[%s1583_s0 + $0x88] sm:$0xf]  ;;  %v1084_v38 = vld [vmem:[%s1583_s0 + $0x98] sm:$0xf0]  ;;  %v1090_v56 = vld [vmem:[%s1583_s0 + $0xcc] sm:$0xf] }
  0x17   :  { %1148 = vmatpush.bf16.msra.mxu3 %v1097_v5  ;;  %540 = vmatpush.bf16.msra.mxu0 %v1097_v5  ;;  %v1071_v5 = vld [vmem:[%s1583_s0 + $0x34] sm:$0xf]  ;;  %v898_v57 = vld [vmem:[%s1583_s0 + $0xdc] sm:$0xf0]  ;;  %v1093_v59 = vld [vmem:[%s1583_s0 + $0xe0] sm:$0xf0] }
  0x18   :  { %v912_v61 = vld [vmem:[%s1583_s0 + $0xd8] sm:$0xf]  ;;  %v1094_v62 = vld [vmem:[%s1583_s0 + $0xe8] sm:$0xf0] }
  0x19   :  { %v913_v1 = vor.u32 %v1094_v62, %v912_v61 }
  0x1a   :  { %1149 = vmatpush.bf16.msra.mxu1 %v1096_v6  ;;  %1150 = vmatpush.bf16.msra.mxu2 %v1096_v6 }
  0x1b   :  { %1151 = vmatpush.bf16.msra.mxu3 %v1096_v6  ;;  %541 = vmatpush.bf16.msra.mxu0 %v1096_v6  ;;  %v826_v6 = vld [vmem:[%s1583_s0 + $0x44] sm:$0xf0] }
  0x1c   :  { %v829_v12 = vor.u32 %v1071_v5, %v826_v6  ;;  %v230_v5 = vunpack.c.h.b16 %v1200_v7 }
  0x1e   :  { %1152 = vmatpush.bf16.msra.mxu1 %v1095_v8  ;;  %1153 = vmatpush.bf16.msra.mxu2 %v1095_v8 }
  0x1f   :  { %1154 = vmatpush.bf16.msra.mxu3 %v1095_v8  ;;  %542 = vmatpush.bf16.msra.mxu0 %v1095_v8  ;;  %v1070_v8 = vld [vmem:[%s1583_s0 + $0x2c] sm:$0xf] }
  0x20   :  { %v821_v15 = vor.u32 %v1070_v8, %v818_v9 }
  0x21   :  { %553 = vmatmul.bf16.vlgmr.msra.gmra.mxu1 %v837_v18  ;;  %563 = vmatmul.bf16.vlgmr.msra.gmra.mxu2 %v877_v19  ;;  %v1076_v18 = vld [vmem:[%s1583_s0 + $0x5c] sm:$0xf]  ;;  %v846_v19 = vld [vmem:[%s1583_s0 + $0x6c] sm:$0xf0] }
  0x22   :  { %621 = vmatpush.bf16.msrb.mxu2 %v1118_v17  ;;  %543 = vmatmul.bf16.vlgmr.msra.gmra.mxu0 %v797_v20  ;;  %v833_v17 = vor.u32 %v1074_v14, %v832_v13  ;;  %v1075_v20 = vld [vmem:[%s1583_s0 + $0x54] sm:$0xf] }
  0x23   :  { %664 = vmatpush.bf16.msrb.mxu3 %v1126_v16  ;;  %578 = vmatpush.bf16.msrb.mxu1 %v1110_v21  ;;  %v825_v16 = vor.u32 %v1073_v11, %v824_v10  ;;  %v838_v21 = vld [vmem:[%s1583_s0 + $0x64] sm:$0xf0]  ;;  %v265_v10 = vpack.c.b16 %v230_v5, %v230_v5 }
  0x24   :  { %711 = vmatpush.bf16.msrb.mxu0 %v1130_v22  ;;  %573 = vmatmul.bf16.vlgmr.msra.gmra.mxu3 %v264_v23  ;;  %v844_v22 = vld [vmem:[%s1583_s0 + $0x58] sm:$0xf]  ;;  %v1078_v23 = vld [vmem:[%s1583_s0 + $0x68] sm:$0xf0] }
  0x26   :  { %622 = vmatpush.bf16.msrb.mxu2 %v1117_v25  ;;  %v852_v25 = vld [vmem:[%s1583_s0 + $0x60] sm:$0xf] }
  0x27   :  { %665 = vmatpush.bf16.msrb.mxu3 %v1125_v24  ;;  %579 = vmatpush.bf16.msrb.mxu1 %v1109_v26  ;;  %v849_v24 = vor.u32 %v1076_v18, %v846_v19  ;;  %v1079_v26 = vld [vmem:[%s1583_s0 + $0x70] sm:$0xf0] }
  0x28   :  { %712 = vmatpush.bf16.msrb.mxu0 %v1129_v27  ;;  %v841_v27 = vor.u32 %v1075_v20, %v838_v21 }
  0x2a   :  { %623 = vmatpush.bf16.msrb.mxu2 %v1116_v29  ;;  %v853_v29 = vor.u32 %v1079_v26, %v852_v25 }
  0x2b   :  { %666 = vmatpush.bf16.msrb.mxu3 %v1124_v28  ;;  %580 = vmatpush.bf16.msrb.mxu1 %v1108_v30  ;;  %v845_v28 = vor.u32 %v1078_v23, %v844_v22  ;;  %v1081_v30 = vld [vmem:[%s1583_s0 + $0x84] sm:$0xf] }
  0x2c   :  { %713 = vmatpush.bf16.msrb.mxu0 %v1128_v31  ;;  %v866_v31 = vld [vmem:[%s1583_s0 + $0x94] sm:$0xf0] }
  0x2d   :  { %v869_v36 = vor.u32 %v1081_v30, %v866_v31 }
  0x2e   :  { %624 = vmatpush.bf16.msrb.mxu2 %v1115_v33  ;;  %v858_v33 = vld [vmem:[%s1583_s0 + $0x8c] sm:$0xf0] }
  0x2f   :  { %667 = vmatpush.bf16.msrb.mxu3 %v1123_v32  ;;  %581 = vmatpush.bf16.msrb.mxu1 %v1107_v34  ;;  %v1080_v32 = vld [vmem:[%s1583_s0 + $0x7c] sm:$0xf]  ;;  %v864_v34 = vld [vmem:[%s1583_s0 + $0x80] sm:$0xf] }
  0x30   :  { %714 = vmatpush.bf16.msrb.mxu0 %v1127_v41  ;;  %v861_v39 = vor.u32 %v1080_v32, %v858_v33  ;;  %v865_v40 = vor.u32 %v1083_v35, %v864_v34  ;;  %v873_v41 = vor.u32 %v1084_v38, %v872_v37 }
  0x31   :  { %558 = vmatmul.bf16.gmra.mxu1 %v857_v44  ;;  %568 = vmatmul.bf16.gmra.mxu2 %v897_v45  ;;  %v1085_v44 = vld [vmem:[%s1583_s0 + $0xa4] sm:$0xf]  ;;  %v878_v45 = vld [vmem:[%s1583_s0 + $0xb4] sm:$0xf0] }
  0x32   :  { %625 = vmatpush.bf16.msrb.mxu2 %v1114_v43  ;;  %548 = vmatmul.bf16.gmra.mxu0 %v817_v46  ;;  %v886_v43 = vld [vmem:[%s1583_s0 + $0xbc] sm:$0xf0]  ;;  %v884_v46 = vld [vmem:[%s1583_s0 + $0xa8] sm:$0xf] }
  0x33   :  { %668 = vmatpush.bf16.msrb.mxu3 %v1122_v42  ;;  %582 = vmatpush.bf16.msrb.mxu1 %v1106_v47  ;;  %v1086_v42 = vld [vmem:[%s1583_s0 + $0xac] sm:$0xf]  ;;  %v1088_v47 = vld [vmem:[%s1583_s0 + $0xb8] sm:$0xf0] }
  0x36   :  { %626 = vmatpush.bf16.msrb.mxu2 %v1113_v49  ;;  %v892_v49 = vld [vmem:[%s1583_s0 + $0xb0] sm:$0xf] }
  0x37   :  { %669 = vmatpush.bf16.msrb.mxu3 %v1121_v48  ;;  %583 = vmatpush.bf16.msrb.mxu1 %v1105_v50  ;;  %v889_v48 = vor.u32 %v1086_v42, %v886_v43  ;;  %v1089_v50 = vld [vmem:[%s1583_s0 + $0xc0] sm:$0xf0] }
  0x3a   :  { %627 = vmatpush.bf16.msrb.mxu2 %v1112_v52  ;;  %v885_v52 = vor.u32 %v1088_v47, %v884_v46 }
  0x3b   :  { %670 = vmatpush.bf16.msrb.mxu3 %v1120_v51  ;;  %584 = vmatpush.bf16.msrb.mxu1 %v1104_v53  ;;  %v881_v51 = vor.u32 %v1085_v44, %v878_v45  ;;  %v893_v53 = vor.u32 %v1089_v50, %v892_v49 }
  0x3e   :  { %628 = vmatpush.bf16.msrb.mxu2 %v1111_v55  ;;  %v906_v55 = vld [vmem:[%s1583_s0 + $0xe4] sm:$0xf0] }
  0x3f   :  { %671 = vmatpush.bf16.msrb.mxu3 %v1119_v54  ;;  %585 = vmatpush.bf16.msrb.mxu1 %v1103_v58  ;;  %v1091_v54 = vld [vmem:[%s1583_s0 + $0xd4] sm:$0xf]  ;;  %v904_v58 = vld [vmem:[%s1583_s0 + $0xd0] sm:$0xf] }
  0x40   :  { %v909_v60 = vor.u32 %v1091_v54, %v906_v55  ;;  %v905_v0 = vor.u32 %v1093_v59, %v904_v58 }
  0x41   :  { %629 = vmatmul.bf16.vlgmr.msrb.gmra.mxu2 %v805_v3 }
  0x42   :  { %672 = vmatmul.bf16.vlgmr.msrb.gmra.mxu3 %v809_v63  ;;  %586 = vmatmul.bf16.vlgmr.msrb.gmra.mxu1 %v801_v2  ;;  %v901_v63 = vor.u32 %v1090_v56, %v898_v57  ;;  %v52_v2 = vld [vmem:[%s1583_s0 + $0xf8] sm:$0xff] }
  0x43   :  { %1058 = vmatmul.msk.bf16.vlgmr.msrb.gmra.mxu0 %vm513_vm0, %v813_v4  ;;  %v232_v3 = vunpack.c.h.b16 %v52_v2  ;;  %v53_v4 = vld [vmem:[%s1583_s0 + $0x100] sm:$0xf]  ;;  %v231_v6 = vunpack.c.l.b16 %v52_v2 }
  0x44   :  { %v233_v8 = vunpack.c.l.b16 %v53_v4 }
  0x45   :  { %v267_v9 = vpack.c.b16 %v232_v3, %v232_v3  ;;  %v266_v11 = vpack.c.b16 %v231_v6, %v231_v6 }
  0x46   :  { %v268_v13 = vpack.c.b16 %v233_v8, %v233_v8 }
  0x51   :  { %634 = vmatmul.bf16.gmra.mxu2 %v825_v16 }
  0x52   :  { %677 = vmatmul.bf16.gmra.mxu3 %v829_v12  ;;  %591 = vmatmul.bf16.gmra.mxu1 %v821_v15  ;;  %v1489_v15 = vld [vmem:[%s1582_s2] ss:$0 sm:$0xff] }
  0x53   :  { %1059 = vmatmul.msk.bf16.gmra.mxu0 %vm513_vm0, %v833_v17 }
  0x61   :  { %639 = vmatmul.bf16.gmra.mxu2 %v845_v28 }
  0x62   :  { %682 = vmatmul.bf16.gmra.mxu3 %v849_v24  ;;  %596 = vmatmul.bf16.gmra.mxu1 %v841_v27 }
  0x63   :  { %1060 = vmatmul.msk.bf16.gmra.mxu0 %vm513_vm0, %v853_v29 }
  0x71   :  { %644 = vmatmul.bf16.gmra.mxu2 %v865_v40 }
  0x72   :  { %687 = vmatmul.bf16.gmra.mxu3 %v869_v36  ;;  %601 = vmatmul.bf16.gmra.mxu1 %v861_v39 }
  0x73   :  { %1061 = vmatmul.msk.bf16.gmra.mxu0 %vm513_vm0, %v873_v41 }
  0x81   :  { %649 = vmatmul.bf16.gmra.mxu2 %v885_v52 }
  0x82   :  { %692 = vmatmul.bf16.gmra.mxu3 %v889_v48  ;;  %606 = vmatmul.bf16.gmra.mxu1 %v881_v51 }
  0x83   :  { %1062 = vmatmul.msk.bf16.gmra.mxu0 %vm513_vm0, %v893_v53 }
  0x91   :  { %654 = vmatmul.bf16.gmra.mxu2 %v905_v0 }
  0x92   :  { %697 = vmatmul.bf16.gmra.mxu3 %v909_v60  ;;  %611 = vmatmul.bf16.gmra.mxu1 %v901_v63 }
  0x93   :  { %1063 = vmatmul.msk.bf16.gmra.mxu0 %vm513_vm0, %v913_v1 }
  0x9e   :  { %v1483_v12 = vpop.f32.mrf.mxu1 }
  0x9f   :  { %v544_v14 = vpop.f32.mrf.mxu0 }
  0xa0   :  { %v545_v34 = vadd.f32 %v1489_v15, %v544_v14 }
  0xa1   :  { %659 = vmatmul.bf16.gmra.mxu2 %v266_v11 }
  0xa2   :  { %702 = vmatmul.bf16.gmra.mxu3 %v267_v9  ;;  %616 = vmatmul.bf16.gmra.mxu1 %v265_v10 }
  0xa3   :  { %1064 = vmatmul.msk.bf16.gmra.mxu0 %vm513_vm0, %v268_v13  ;;  %v555_v13 = vadd.f32 %v1489_v15, %v1483_v12 }
  0xa4   :  { %v564_v7 = vpop.f32.mrf.mxu2 }
  0xa5   :  { %v1492_v16 = vadd.f32 %v1489_v15, %v564_v7 }
  0xa6   :  { %v1494_v17 = vpop.f32.mrf.mxu1 }
  0xa7   :  { %v574_v18 = vpop.f32.mrf.mxu3  ;;  %v546_v19 = vpop.f32.mrf.mxu0 }
  0xa8   :  { %v1497_v20 = vadd.f32 %v1489_v15, %v574_v18  ;;  %v547_v42 = vadd.f32 %v1489_v15, %v546_v19 }
  0xac   :  { %v566_v21 = vpop.f32.mrf.mxu2 }
  0xad   :  { %v1500_v22 = vadd.f32 %v1489_v15, %v566_v21 }
  0xae   :  { %v1502_v23 = vpop.f32.mrf.mxu1 }
  0xaf   :  { %v576_v24 = vpop.f32.mrf.mxu3  ;;  %v549_v25 = vpop.f32.mrf.mxu0 }
  0xb0   :  { %v550_v53 = vadd.f32 %v1489_v15, %v549_v25 }
  0xb4   :  { %v569_v26 = vpop.f32.mrf.mxu2 }
  0xb5   :  { %v1505_v27 = vadd.f32 %v1489_v15, %v569_v26 }
  0xb6   :  { %v1507_v28 = vpop.f32.mrf.mxu1 }
  0xb7   :  { %v551_v29 = vpop.f32.mrf.mxu0 }
  0xb8   :  { %v552_v0 = vadd.f32 %v1489_v15, %v551_v29 }
  0xbc   :  { %v571_v30 = vpop.f32.mrf.mxu2 }
  0xbd   :  { %v1510_v31 = vadd.f32 %v1489_v15, %v571_v30 }
  0xbf   :  { %v587_v32 = vpop.f32.mrf.mxu1 }
  0xc0   :  { %v716_v33 = vpop.f32.mrf.mxu0  ;;  %v588_v36 = vadd.f32 %v587_v32, %v545_v34  ;;  %v557_v32 = vadd.f32 %v1489_v15, %v1494_v17 }
  0xc4   :  { %v630_v37 = vpop.f32.mrf.mxu2 }
  0xc5   :  { %v673_v35 = vpop.f32.mrf.mxu3  ;;  %v631_v38 = vadd.f32 %v630_v37, %v588_v36 }
  0xc7   :  { %v589_v39 = vpop.f32.mrf.mxu1  ;;  %v674_v40 = vadd.f32 %v673_v35, %v631_v38 }
  0xc8   :  { %v718_v41 = vpop.f32.mrf.mxu0  ;;  %v590_v46 = vadd.f32 %v589_v39, %v547_v42  ;;  %v560_v42 = vadd.f32 %v1489_v15, %v1502_v23 }
  0xc9   :  { %v717_v43 = vadd.f32 %v716_v33, %v674_v40 }
  0xcb   :  { %v750_v45 = vmax.f32 %v717_v43, 0.0 }
  0xcc   :  { %v632_v47 = vpop.f32.mrf.mxu2 }
  0xcd   :  { %v675_v44 = vpop.f32.mrf.mxu3  ;;  %v763_v48 = vpack.c.bf16 %v750_v45, %v750_v45  ;;  %v633_v49 = vadd.f32 %v632_v47, %v590_v46 }
  0xcf   :  { %v592_v50 = vpop.f32.mrf.mxu1  ;;  %777 = vst.msk [vmem:[%s1584_s3] sm:$0xf] %vm776_vm1, %v763_v48  ;;  %v676_v51 = vadd.f32 %v675_v44, %v633_v49 }
  0xd0   :  { %v721_v52 = vpop.f32.mrf.mxu0  ;;  %v593_v57 = vadd.f32 %v592_v50, %v550_v53 }
  0xd1   :  { %v719_v54 = vadd.f32 %v718_v41, %v676_v51 }
  0xd3   :  { %v751_v56 = vmax.f32 %v719_v54, 0.0 }
  0xd4   :  { %v635_v58 = vpop.f32.mrf.mxu2 }
  0xd5   :  { %v678_v55 = vpop.f32.mrf.mxu3  ;;  %v764_v59 = vpack.c.bf16 %v751_v56, %v751_v56  ;;  %v636_v60 = vadd.f32 %v635_v58, %v593_v57 }
  0xd7   :  { %v594_v61 = vpop.f32.mrf.mxu1  ;;  %778 = vst.msk [vmem:[%s1584_s3 + $0x4] sm:$0xf] %vm776_vm1, %v764_v59  ;;  %v679_v62 = vadd.f32 %v678_v55, %v636_v60 }
  0xd8   :  { %v723_v63 = vpop.f32.mrf.mxu0  ;;  %v595_v4 = vadd.f32 %v594_v61, %v552_v0 }
  0xd9   :  { %v722_v1 = vadd.f32 %v721_v52, %v679_v62  ;;  %v562_v52 = vadd.f32 %v1489_v15, %v1507_v28 }
  0xdb   :  { %v752_v3 = vmax.f32 %v722_v1, 0.0 }
  0xdc   :  { %v637_v5 = vpop.f32.mrf.mxu2 }
  0xdd   :  { %v680_v2 = vpop.f32.mrf.mxu3  ;;  %v765_v6 = vpack.c.bf16 %v752_v3, %v752_v3  ;;  %v638_v8 = vadd.f32 %v637_v5, %v595_v4 }
  0xdf   :  { %v597_v9 = vpop.f32.mrf.mxu1  ;;  %779 = vst.msk [vmem:[%s1584_s3 + $0x8] sm:$0xf] %vm776_vm1, %v765_v6  ;;  %v681_v10 = vadd.f32 %v680_v2, %v638_v8 }
  0xe0   :  { %v726_v11 = vpop.f32.mrf.mxu0  ;;  %v598_v19 = vadd.f32 %v597_v9, %v555_v13 }
  0xe1   :  { %v724_v14 = vadd.f32 %v723_v63, %v681_v10 }
  0xe3   :  { %v753_v18 = vmax.f32 %v724_v14, 0.0 }
  0xe4   :  { %v640_v21 = vpop.f32.mrf.mxu2 }
  0xe5   :  { %v683_v7 = vpop.f32.mrf.mxu3  ;;  %v766_v24 = vpack.c.bf16 %v753_v18, %v753_v18  ;;  %v641_v25 = vadd.f32 %v640_v21, %v598_v19 }
  0xe7   :  { %v599_v26 = vpop.f32.mrf.mxu1  ;;  %780 = vst.msk [vmem:[%s1584_s3 + $0xc] sm:$0xf] %vm776_vm1, %v766_v24  ;;  %v684_v29 = vadd.f32 %v683_v7, %v641_v25 }
  0xe8   :  { %v728_v30 = vpop.f32.mrf.mxu0  ;;  %v600_v35 = vadd.f32 %v599_v26, %v557_v32 }
  0xe9   :  { %v727_v33 = vadd.f32 %v726_v11, %v684_v29 }
  0xeb   :  { %v754_v34 = vmax.f32 %v727_v33, 0.0 }
  0xec   :  { %v642_v36 = vpop.f32.mrf.mxu2 }
  0xed   :  { %v685_v12 = vpop.f32.mrf.mxu3  ;;  %v767_v37 = vpack.c.bf16 %v754_v34, %v754_v34  ;;  %v643_v38 = vadd.f32 %v642_v36, %v600_v35 }
  0xef   :  { %v602_v39 = vpop.f32.mrf.mxu1  ;;  %781 = vst.msk [vmem:[%s1584_s3 + $0x10] sm:$0xf] %vm776_vm1, %v767_v37  ;;  %v686_v40 = vadd.f32 %v685_v12, %v643_v38 }
  0xf0   :  { %v731_v41 = vpop.f32.mrf.mxu0  ;;  %v603_v45 = vadd.f32 %v602_v39, %v560_v42 }
  0xf1   :  { %v729_v43 = vadd.f32 %v728_v30, %v686_v40 }
  0xf3   :  { %v755_v44 = vmax.f32 %v729_v43, 0.0 }
  0xf4   :  { %v645_v46 = vpop.f32.mrf.mxu2 }
  0xf5   :  { %v688_v17 = vpop.f32.mrf.mxu3  ;;  %v768_v47 = vpack.c.bf16 %v755_v44, %v755_v44  ;;  %v646_v48 = vadd.f32 %v645_v46, %v603_v45 }
  0xf7   :  { %v604_v49 = vpop.f32.mrf.mxu1  ;;  %782 = vst.msk [vmem:[%s1584_s3 + $0x14] sm:$0xf] %vm776_vm1, %v768_v47  ;;  %v689_v50 = vadd.f32 %v688_v17, %v646_v48 }
  0xf8   :  { %v733_v51 = vpop.f32.mrf.mxu0  ;;  %v605_v55 = vadd.f32 %v604_v49, %v562_v52 }
  0xf9   :  { %v732_v53 = vadd.f32 %v731_v41, %v689_v50 }
  0xfb   :  { %v756_v54 = vmax.f32 %v732_v53, 0.0 }
  0xfc   :  { %v647_v56 = vpop.f32.mrf.mxu2 }
  0xfd   :  { %v690_v23 = vpop.f32.mrf.mxu3  ;;  %v769_v57 = vpack.c.bf16 %v756_v54, %v756_v54  ;;  %v648_v58 = vadd.f32 %v647_v56, %v605_v55 }
  0xff   :  { %v607_v59 = vpop.f32.mrf.mxu1  ;;  %783 = vst.msk [vmem:[%s1584_s3 + $0x18] sm:$0xf] %vm776_vm1, %v769_v57  ;;  %v691_v60 = vadd.f32 %v690_v23, %v648_v58 }
 0x100   :  { %v736_v61 = vpop.f32.mrf.mxu0  ;;  %v608_v15 = vadd.f32 %v607_v59, %v1492_v16 }
 0x101   :  { %v734_v62 = vadd.f32 %v733_v51, %v691_v60 }
 0x103   :  { %v757_v0 = vmax.f32 %v734_v62, 0.0 }
 0x104   :  { %v650_v28 = vpop.f32.mrf.mxu2 }
 0x105   :  { %v693_v63 = vpop.f32.mrf.mxu3  ;;  %v770_v1 = vpack.c.bf16 %v757_v0, %v757_v0  ;;  %v651_v2 = vadd.f32 %v650_v28, %v608_v15 }
 0x107   :  { %v609_v3 = vpop.f32.mrf.mxu1  ;;  %784 = vst.msk [vmem:[%s1584_s3 + $0x1c] sm:$0xf] %vm776_vm1, %v770_v1  ;;  %v694_v4 = vadd.f32 %v693_v63, %v651_v2 }
 0x108   :  { %v738_v5 = vpop.f32.mrf.mxu0  ;;  %v610_v10 = vadd.f32 %v609_v3, %v1500_v22 }
 0x109   :  { %v737_v6 = vadd.f32 %v736_v61, %v694_v4 }
 0x10b   :  { %v758_v9 = vmax.f32 %v737_v6, 0.0 }
 0x10c   :  { %v652_v11 = vpop.f32.mrf.mxu2 }
 0x10d   :  { %v695_v8 = vpop.f32.mrf.mxu3  ;;  %v771_v13 = vpack.c.bf16 %v758_v9, %v758_v9  ;;  %v653_v14 = vadd.f32 %v652_v11, %v610_v10 }
 0x10f   :  { %v612_v16 = vpop.f32.mrf.mxu1  ;;  %785 = vst.msk [vmem:[%s1584_s3 + $0x20] sm:$0xf] %vm776_vm1, %v771_v13  ;;  %v696_v7 = vadd.f32 %v695_v8, %v653_v14 }
 0x110   :  { %v741_v18 = vpop.f32.mrf.mxu0  ;;  %v613_v25 = vadd.f32 %v612_v16, %v1505_v27 }
 0x111   :  { %v739_v19 = vadd.f32 %v738_v5, %v696_v7 }
 0x113   :  { %v759_v24 = vmax.f32 %v739_v19, 0.0 }
 0x114   :  { %v655_v26 = vpop.f32.mrf.mxu2 }
 0x115   :  { %v698_v21 = vpop.f32.mrf.mxu3  ;;  %v772_v29 = vpack.c.bf16 %v759_v24, %v759_v24  ;;  %v656_v30 = vadd.f32 %v655_v26, %v613_v25 }
 0x117   :  { %v614_v22 = vpop.f32.mrf.mxu1  ;;  %786 = vst.msk [vmem:[%s1584_s3 + $0x24] sm:$0xf] %vm776_vm1, %v772_v29  ;;  %v699_v32 = vadd.f32 %v698_v21, %v656_v30 }
 0x118   :  { %v743_v33 = vpop.f32.mrf.mxu0  ;;  %v615_v36 = vadd.f32 %v614_v22, %v1510_v31 }
 0x119   :  { %v742_v12 = vadd.f32 %v741_v18, %v699_v32 }
 0x11b   :  { %v760_v35 = vmax.f32 %v742_v12, 0.0 }
 0x11c   :  { %v657_v37 = vpop.f32.mrf.mxu2 }
 0x11d   :  { %v700_v34 = vpop.f32.mrf.mxu3  ;;  %v773_v38 = vpack.c.bf16 %v760_v35, %v760_v35  ;;  %v658_v39 = vadd.f32 %v657_v37, %v615_v36 }
 0x11f   :  { %v617_v27 = vpop.f32.mrf.mxu1  ;;  %787 = vst.msk [vmem:[%s1584_s3 + $0x28] sm:$0xf] %vm776_vm1, %v773_v38  ;;  %v701_v40 = vadd.f32 %v700_v34, %v658_v39 }
 0x120   :  { %v746_v41 = vpop.f32.mrf.mxu0  ;;  %v618_v44 = vadd.f32 %v617_v27, %v1497_v20 }
 0x121   :  { %v744_v42 = vadd.f32 %v743_v33, %v701_v40 }
 0x123   :  { %v761_v17 = vmax.f32 %v744_v42, 0.0 }
 0x124   :  { %v660_v45 = vpop.f32.mrf.mxu2 }
 0x125   :  { %v703_v43 = vpop.f32.mrf.mxu3  ;;  %v774_v46 = vpack.c.bf16 %v761_v17, %v761_v17  ;;  %v661_v47 = vadd.f32 %v660_v45, %v618_v44 }
 0x127   :  { %v619_v31 = vpop.f32.mrf.mxu1  ;;  %788 = vst.msk [vmem:[%s1584_s3 + $0x2c] sm:$0xf] %vm776_vm1, %v774_v46  ;;  %v704_v48 = vadd.f32 %v703_v43, %v661_v47 }
 0x128   :  { %v748_v49 = vpop.f32.mrf.mxu0 }
 0x129   :  { %v747_v50 = vadd.f32 %v746_v41, %v704_v48 }
 0x12b   :  { %v762_v52 = vmax.f32 %v747_v50, 0.0 }
 0x12c   :  { %v662_v53 = vpop.f32.mrf.mxu2 }
 0x12d   :  { %v705_v51 = vpop.f32.mrf.mxu3  ;;  %v775_v23 = vpack.c.bf16 %v762_v52, %v762_v52 }
 0x12f   :  { %789 = vst.msk [vmem:[%s1584_s3 + $0x30] sm:$0xf] %vm776_vm1, %v775_v23 }

// kernel: cnn_forward.7
= control target key start
LH: loop header
LB: loop body
LE: loop exit
PB: predicated region body
PF: predicated region fallthrough
CT: control target
= control target key end

     0   :  { %vm2429_vm0 = vcmask 261120   ;;  %s7643_s1 = inlined_call_operand.vmem [shape: bf16[1568,512], index: 1, kind: input, shape index: {}]   ;;  %s7644_s0 = inlined_call_operand.vmem [shape: bf16[8,1568], index: 0, kind: input, shape index: {}]   ;;  %s7645_s2 = inlined_call_operand.vmem [shape: f32[1,512], index: 2, kind: input, shape index: {}]   ;;  %s7646_s3 = inlined_call_operand.vmem [shape: f32[8,512], index: 3, kind: output, shape index: {}]  }
   0x1   :  { %v3235_v0 = vld [vmem:[%s7643_s1 + $0xe0] sm:$0xf]  ;;  %v4723_v1 = vld [vmem:[%s7643_s1 + $0xec] sm:$0xf0] }
   0x2   :  { %v3363_v2 = vld [vmem:[%s7643_s1 + $0x1e0] sm:$0xf]  ;;  %v3236_v3 = vor.u32 %v4723_v1, %v3235_v0  ;;  %v4755_v4 = vld [vmem:[%s7643_s1 + $0x1ec] sm:$0xf0] }
   0x3   :  { %v3491_v5 = vld [vmem:[%s7643_s1 + $0x2e0] sm:$0xf]  ;;  %v4787_v6 = vld [vmem:[%s7643_s1 + $0x2ec] sm:$0xf0]  ;;  %v3364_v7 = vor.u32 %v4755_v4, %v3363_v2 }
   0x4   :  { %v3492_v8 = vor.u32 %v4787_v6, %v3491_v5  ;;  %v3619_v9 = vld [vmem:[%s7643_s1 + $0x3e0] sm:$0xf]  ;;  %v4819_v10 = vld [vmem:[%s7643_s1 + $0x3ec] sm:$0xf0]  ;;  %2433 = vmatpush.bf16.msra.mxu0 %v3236_v3 }
   0x5   :  { %v3219_v11 = vld [vmem:[%s7643_s1 + $0xc0] sm:$0xf]  ;;  %v3620_v12 = vor.u32 %v4819_v10, %v3619_v9  ;;  %v4719_v13 = vld [vmem:[%s7643_s1 + $0xcc] sm:$0xf0]  ;;  %2446 = vmatpush.bf16.msra.mxu1 %v3364_v7 }
   0x6   :  { %v3347_v14 = vld [vmem:[%s7643_s1 + $0x1c0] sm:$0xf]  ;;  %v4751_v15 = vld [vmem:[%s7643_s1 + $0x1cc] sm:$0xf0]  ;;  %2459 = vmatpush.bf16.msra.mxu2 %v3492_v8  ;;  %v3220_v16 = vor.u32 %v4719_v13, %v3219_v11 }
   0x7   :  { %v3348_v17 = vor.u32 %v4751_v15, %v3347_v14  ;;  %v3475_v18 = vld [vmem:[%s7643_s1 + $0x2c0] sm:$0xf]  ;;  %v4783_v19 = vld [vmem:[%s7643_s1 + $0x2cc] sm:$0xf0]  ;;  %2472 = vmatpush.bf16.msra.mxu3 %v3620_v12 }
   0x8   :  { %v3603_v20 = vld [vmem:[%s7643_s1 + $0x3c0] sm:$0xf]  ;;  %v3476_v21 = vor.u32 %v4783_v19, %v3475_v18  ;;  %v4815_v22 = vld [vmem:[%s7643_s1 + $0x3cc] sm:$0xf0]  ;;  %2434 = vmatpush.bf16.msra.mxu0 %v3220_v16 }
   0x9   :  { %v3203_v23 = vld [vmem:[%s7643_s1 + $0xa0] sm:$0xf]  ;;  %v4715_v24 = vld [vmem:[%s7643_s1 + $0xac] sm:$0xf0]  ;;  %v3604_v25 = vor.u32 %v4815_v22, %v3603_v20  ;;  %2447 = vmatpush.bf16.msra.mxu1 %v3348_v17 }
   0xa   :  { %v3331_v26 = vld [vmem:[%s7643_s1 + $0x1a0] sm:$0xf]  ;;  %v4747_v27 = vld [vmem:[%s7643_s1 + $0x1ac] sm:$0xf0]  ;;  %v3204_v29 = vor.u32 %v4715_v24, %v3203_v23  ;;  %2460 = vmatpush.bf16.msra.mxu2 %v3476_v21 }
   0xb   :  { %v3459_v28 = vld [vmem:[%s7643_s1 + $0x2a0] sm:$0xf]  ;;  %v4779_v30 = vld [vmem:[%s7643_s1 + $0x2ac] sm:$0xf0]  ;;  %v3332_v33 = vor.u32 %v4747_v27, %v3331_v26  ;;  %2473 = vmatpush.bf16.msra.mxu3 %v3604_v25 }
   0xc   :  { %v3587_v31 = vld [vmem:[%s7643_s1 + $0x3a0] sm:$0xf]  ;;  %v4811_v32 = vld [vmem:[%s7643_s1 + $0x3ac] sm:$0xf0]  ;;  %v3460_v34 = vor.u32 %v4779_v30, %v3459_v28  ;;  %2435 = vmatpush.bf16.msra.mxu0 %v3204_v29 }
   0xd   :  { %v3187_v35 = vld [vmem:[%s7643_s1 + $0x80] sm:$0xf]  ;;  %v4711_v36 = vld [vmem:[%s7643_s1 + $0x8c] sm:$0xf0]  ;;  %v3588_v38 = vor.u32 %v4811_v32, %v3587_v31  ;;  %2448 = vmatpush.bf16.msra.mxu1 %v3332_v33 }
   0xe   :  { %v3315_v37 = vld [vmem:[%s7643_s1 + $0x180] sm:$0xf]  ;;  %v4743_v39 = vld [vmem:[%s7643_s1 + $0x18c] sm:$0xf0]  ;;  %v3188_v44 = vor.u32 %v4711_v36, %v3187_v35  ;;  %2461 = vmatpush.bf16.msra.mxu2 %v3460_v34 }
   0xf   :  { %v3443_v40 = vld [vmem:[%s7643_s1 + $0x280] sm:$0xf]  ;;  %v4775_v41 = vld [vmem:[%s7643_s1 + $0x28c] sm:$0xf0]  ;;  %v3316_v45 = vor.u32 %v4743_v39, %v3315_v37  ;;  %2474 = vmatpush.bf16.msra.mxu3 %v3588_v38 }
  0x10   :  { %v3571_v42 = vld [vmem:[%s7643_s1 + $0x380] sm:$0xf]  ;;  %v4807_v43 = vld [vmem:[%s7643_s1 + $0x38c] sm:$0xf0]  ;;  %v3444_v46 = vor.u32 %v4775_v41, %v3443_v40  ;;  %2436 = vmatpush.bf16.msra.mxu0 %v3188_v44 }
  0x11   :  { %v3171_v47 = vld [vmem:[%s7643_s1 + $0x60] sm:$0xf]  ;;  %v4707_v48 = vld [vmem:[%s7643_s1 + $0x6c] sm:$0xf0]  ;;  %v3572_v50 = vor.u32 %v4807_v43, %v3571_v42  ;;  %2449 = vmatpush.bf16.msra.mxu1 %v3316_v45 }
  0x12   :  { %v3299_v49 = vld [vmem:[%s7643_s1 + $0x160] sm:$0xf]  ;;  %v4739_v51 = vld [vmem:[%s7643_s1 + $0x16c] sm:$0xf0]  ;;  %v3172_v56 = vor.u32 %v4707_v48, %v3171_v47  ;;  %2462 = vmatpush.bf16.msra.mxu2 %v3444_v46 }
  0x13   :  { %v3427_v52 = vld [vmem:[%s7643_s1 + $0x260] sm:$0xf]  ;;  %v4771_v53 = vld [vmem:[%s7643_s1 + $0x26c] sm:$0xf0]  ;;  %v3300_v57 = vor.u32 %v4739_v51, %v3299_v49  ;;  %2475 = vmatpush.bf16.msra.mxu3 %v3572_v50 }
  0x14   :  { %v3555_v54 = vld [vmem:[%s7643_s1 + $0x360] sm:$0xf]  ;;  %v4803_v55 = vld [vmem:[%s7643_s1 + $0x36c] sm:$0xf0]  ;;  %v3428_v58 = vor.u32 %v4771_v53, %v3427_v52  ;;  %2437 = vmatpush.bf16.msra.mxu0 %v3172_v56 }
  0x15   :  { %v3155_v59 = vld [vmem:[%s7643_s1 + $0x40] sm:$0xf]  ;;  %v4703_v60 = vld [vmem:[%s7643_s1 + $0x4c] sm:$0xf0]  ;;  %v3556_v62 = vor.u32 %v4803_v55, %v3555_v54  ;;  %2450 = vmatpush.bf16.msra.mxu1 %v3300_v57 }
  0x16   :  { %v3283_v61 = vld [vmem:[%s7643_s1 + $0x140] sm:$0xf]  ;;  %v4735_v63 = vld [vmem:[%s7643_s1 + $0x14c] sm:$0xf0]  ;;  %v3156_v4 = vor.u32 %v4703_v60, %v3155_v59  ;;  %2463 = vmatpush.bf16.msra.mxu2 %v3428_v58  ;;  %v16_v58 = vld [vmem:[%s7644_s0 + $0x8] sm:$0xff] }
  0x17   :  { %v3411_v0 = vld [vmem:[%s7643_s1 + $0x240] sm:$0xf]  ;;  %v4767_v1 = vld [vmem:[%s7643_s1 + $0x24c] sm:$0xf0]  ;;  %v3284_v5 = vor.u32 %v4735_v63, %v3283_v61  ;;  %2476 = vmatpush.bf16.msra.mxu3 %v3556_v62  ;;  %v433_v63 = vunpack.c.l.b16 %v16_v58 }
  0x18   :  { %v3539_v2 = vld [vmem:[%s7643_s1 + $0x340] sm:$0xf]  ;;  %v4799_v3 = vld [vmem:[%s7643_s1 + $0x34c] sm:$0xf0]  ;;  %v3412_v6 = vor.u32 %v4767_v1, %v3411_v0  ;;  %2438 = vmatpush.bf16.msra.mxu0 %v3156_v4  ;;  %v434_v0 = vunpack.c.h.b16 %v16_v58 }
  0x19   :  { %v3139_v7 = vld [vmem:[%s7643_s1 + $0x20] sm:$0xf]  ;;  %v4699_v8 = vld [vmem:[%s7643_s1 + $0x2c] sm:$0xf0]  ;;  %v3540_v10 = vor.u32 %v4799_v3, %v3539_v2  ;;  %2451 = vmatpush.bf16.msra.mxu1 %v3284_v5  ;;  %v5373_v4 = vpack.c.b16 %v433_v63, %v433_v63 }
  0x1a   :  { %v3267_v9 = vld [vmem:[%s7643_s1 + $0x120] sm:$0xf]  ;;  %v4731_v11 = vld [vmem:[%s7643_s1 + $0x12c] sm:$0xf0]  ;;  %v3140_v16 = vor.u32 %v4699_v8, %v3139_v7  ;;  %2464 = vmatpush.bf16.msra.mxu2 %v3412_v6  ;;  %v5378_v6 = vpack.c.b16 %v434_v0, %v434_v0 }
  0x1b   :  { %v3395_v12 = vld [vmem:[%s7643_s1 + $0x220] sm:$0xf]  ;;  %v4763_v13 = vld [vmem:[%s7643_s1 + $0x22c] sm:$0xf0]  ;;  %v3268_v19 = vor.u32 %v4731_v11, %v3267_v9  ;;  %2477 = vmatpush.bf16.msra.mxu3 %v3540_v10 }
  0x1c   :  { %v3523_v14 = vld [vmem:[%s7643_s1 + $0x320] sm:$0xf]  ;;  %v4795_v15 = vld [vmem:[%s7643_s1 + $0x32c] sm:$0xf0]  ;;  %v3396_v20 = vor.u32 %v4763_v13, %v3395_v12  ;;  %2439 = vmatpush.bf16.msra.mxu0 %v3140_v16 }
  0x1d   :  { %v3123_v17 = vld [vmem:[%s7643_s1] sm:$0xf]  ;;  %v4695_v18 = vld [vmem:[%s7643_s1 + $0xc] sm:$0xf0]  ;;  %v3524_v24 = vor.u32 %v4795_v15, %v3523_v14  ;;  %2452 = vmatpush.bf16.msra.mxu1 %v3268_v19 }
  0x1e   :  { %v3251_v21 = vld [vmem:[%s7643_s1 + $0x100] sm:$0xf]  ;;  %v4727_v22 = vld [vmem:[%s7643_s1 + $0x10c] sm:$0xf0]  ;;  %v3124_v31 = vor.u32 %v4695_v18, %v3123_v17  ;;  %2465 = vmatpush.bf16.msra.mxu2 %v3396_v20 }
  0x1f   :  { %v3379_v23 = vld [vmem:[%s7643_s1 + $0x200] sm:$0xf]  ;;  %v4759_v25 = vld [vmem:[%s7643_s1 + $0x20c] sm:$0xf0]  ;;  %v3252_v35 = vor.u32 %v4727_v22, %v3251_v21  ;;  %2478 = vmatpush.bf16.msra.mxu3 %v3524_v24 }
  0x20   :  { %v3507_v26 = vld [vmem:[%s7643_s1 + $0x300] sm:$0xf]  ;;  %v4791_v27 = vld [vmem:[%s7643_s1 + $0x30c] sm:$0xf0]  ;;  %v3380_v36 = vor.u32 %v4759_v25, %v3379_v23  ;;  %2440 = vmatpush.bf16.msra.mxu0 %v3124_v31 }
  0x21   :  { %v3747_v28 = vld [vmem:[%s7643_s1 + $0x4e0] sm:$0xf]  ;;  %v4851_v29 = vld [vmem:[%s7643_s1 + $0x4ec] sm:$0xf0]  ;;  %v3508_v39 = vor.u32 %v4791_v27, %v3507_v26  ;;  %2453 = vmatpush.bf16.msra.mxu1 %v3252_v35 }
  0x22   :  { %v3875_v30 = vld [vmem:[%s7643_s1 + $0x5e0] sm:$0xf]  ;;  %v4883_v32 = vld [vmem:[%s7643_s1 + $0x5ec] sm:$0xf0]  ;;  %v3748_v40 = vor.u32 %v4851_v29, %v3747_v28  ;;  %2466 = vmatpush.bf16.msra.mxu2 %v3380_v36 }
  0x23   :  { %v4003_v33 = vld [vmem:[%s7643_s1 + $0x6e0] sm:$0xf]  ;;  %v4915_v34 = vld [vmem:[%s7643_s1 + $0x6ec] sm:$0xf0]  ;;  %v3876_v41 = vor.u32 %v4883_v32, %v3875_v30  ;;  %2479 = vmatpush.bf16.msra.mxu3 %v3508_v39 }
  0x24   :  { %v4131_v37 = vld [vmem:[%s7643_s1 + $0x7e0] sm:$0xf]  ;;  %v4947_v38 = vld [vmem:[%s7643_s1 + $0x7ec] sm:$0xf0]  ;;  %v4004_v42 = vor.u32 %v4915_v34, %v4003_v33  ;;  %2485 = vmatpush.bf16.msrb.mxu0 %v3748_v40 }
  0x25   :  { %v3731_v43 = vld [vmem:[%s7643_s1 + $0x4c0] sm:$0xf]  ;;  %v4847_v44 = vld [vmem:[%s7643_s1 + $0x4cc] sm:$0xf0]  ;;  %v4132_v46 = vor.u32 %v4947_v38, %v4131_v37  ;;  %2498 = vmatpush.bf16.msrb.mxu1 %v3876_v41  ;;  %2467 = vmatmul.bf16.vlgmr.msra.gmra.mxu2 %v5373_v4 }
  0x26   :  { %v3859_v45 = vld [vmem:[%s7643_s1 + $0x5c0] sm:$0xf]  ;;  %v4879_v47 = vld [vmem:[%s7643_s1 + $0x5cc] sm:$0xf0]  ;;  %v3732_v52 = vor.u32 %v4847_v44, %v3731_v43  ;;  %2511 = vmatpush.bf16.msrb.mxu2 %v4004_v42  ;;  %2480 = vmatmul.bf16.vlgmr.msra.gmra.mxu3 %v5378_v6 }
  0x27   :  { %v3987_v48 = vld [vmem:[%s7643_s1 + $0x6c0] sm:$0xf]  ;;  %v4911_v49 = vld [vmem:[%s7643_s1 + $0x6cc] sm:$0xf0]  ;;  %v3860_v54 = vor.u32 %v4879_v47, %v3859_v45  ;;  %2524 = vmatpush.bf16.msrb.mxu3 %v4132_v46 }
  0x28   :  { %v4115_v50 = vld [vmem:[%s7643_s1 + $0x7c0] sm:$0xf]  ;;  %v4943_v51 = vld [vmem:[%s7643_s1 + $0x7cc] sm:$0xf0]  ;;  %v3988_v55 = vor.u32 %v4911_v49, %v3987_v48  ;;  %2486 = vmatpush.bf16.msrb.mxu0 %v3732_v52 }
  0x29   :  { %v3715_v53 = vld [vmem:[%s7643_s1 + $0x4a0] sm:$0xf]  ;;  %v4843_v56 = vld [vmem:[%s7643_s1 + $0x4ac] sm:$0xf0]  ;;  %v4116_v59 = vor.u32 %v4943_v51, %v4115_v50  ;;  %2499 = vmatpush.bf16.msrb.mxu1 %v3860_v54 }
  0x2a   :  { %v3843_v57 = vld [vmem:[%s7643_s1 + $0x5a0] sm:$0xf]  ;;  %v4875_v60 = vld [vmem:[%s7643_s1 + $0x5ac] sm:$0xf0]  ;;  %v3716_v3 = vor.u32 %v4843_v56, %v3715_v53  ;;  %2512 = vmatpush.bf16.msrb.mxu2 %v3988_v55 }
  0x2b   :  { %v3971_v61 = vld [vmem:[%s7643_s1 + $0x6a0] sm:$0xf]  ;;  %v4907_v62 = vld [vmem:[%s7643_s1 + $0x6ac] sm:$0xf0]  ;;  %v3844_v7 = vor.u32 %v4875_v60, %v3843_v57  ;;  %2525 = vmatpush.bf16.msrb.mxu3 %v4116_v59 }
  0x2c   :  { %v4099_v1 = vld [vmem:[%s7643_s1 + $0x7a0] sm:$0xf]  ;;  %v4939_v2 = vld [vmem:[%s7643_s1 + $0x7ac] sm:$0xf0]  ;;  %v3972_v8 = vor.u32 %v4907_v62, %v3971_v61  ;;  %2487 = vmatpush.bf16.msrb.mxu0 %v3716_v3  ;;  %v18_v3 = vld [vmem:[%s7644_s0 + $0x18] sm:$0xff] }
  0x2d   :  { %v15_v5 = vld [vmem:[%s7644_s0] sm:$0xff]  ;;  %v4839_v10 = vld [vmem:[%s7643_s1 + $0x48c] sm:$0xf0]  ;;  %v4100_v14 = vor.u32 %v4939_v2, %v4099_v1  ;;  %2500 = vmatpush.bf16.msrb.mxu1 %v3844_v7 }
  0x2e   :  { %v3699_v9 = vld [vmem:[%s7643_s1 + $0x480] sm:$0xf]  ;;  %v431_v12 = vunpack.c.l.b16 %v15_v5  ;;  %v432_v13 = vunpack.c.h.b16 %v15_v5  ;;  %v4871_v15 = vld [vmem:[%s7643_s1 + $0x58c] sm:$0xf0]  ;;  %2513 = vmatpush.bf16.msrb.mxu2 %v3972_v8 }
  0x2f   :  { %v3827_v11 = vld [vmem:[%s7643_s1 + $0x580] sm:$0xf]  ;;  %v4903_v17 = vld [vmem:[%s7643_s1 + $0x68c] sm:$0xf0]  ;;  %v3700_v22 = vor.u32 %v4839_v10, %v3699_v9  ;;  %2526 = vmatpush.bf16.msrb.mxu3 %v4100_v14 }
  0x30   :  { %v3955_v16 = vld [vmem:[%s7643_s1 + $0x680] sm:$0xf]  ;;  %v4935_v19 = vld [vmem:[%s7643_s1 + $0x78c] sm:$0xf0]  ;;  %v5405_v20 = vpack.c.b16 %v431_v12, %v431_v12  ;;  %v5408_v21 = vpack.c.b16 %v432_v13, %v432_v13  ;;  %v3828_v23 = vor.u32 %v4871_v15, %v3827_v11 }
  0x31   :  { %v4083_v18 = vld [vmem:[%s7643_s1 + $0x780] sm:$0xf]  ;;  %v3956_v24 = vor.u32 %v4903_v17, %v3955_v16  ;;  %v4835_v26 = vld [vmem:[%s7643_s1 + $0x46c] sm:$0xf0]  ;;  %2488 = vmatpush.bf16.msrb.mxu0 %v3700_v22  ;;  %v437_v17 = vunpack.c.l.b16 %v18_v3 }
  0x32   :  { %v3683_v25 = vld [vmem:[%s7643_s1 + $0x460] sm:$0xf]  ;;  %v4084_v28 = vor.u32 %v4935_v19, %v4083_v18  ;;  %v4867_v29 = vld [vmem:[%s7643_s1 + $0x56c] sm:$0xf0]  ;;  %2441 = vmatmul.bf16.vlgmr.msra.gmra.mxu0 %v5405_v20  ;;  %2454 = vmatmul.bf16.vlgmr.msra.gmra.mxu1 %v5408_v21 }
  0x33   :  { %v3811_v27 = vld [vmem:[%s7643_s1 + $0x560] sm:$0xf]  ;;  %v4899_v31 = vld [vmem:[%s7643_s1 + $0x66c] sm:$0xf0]  ;;  %v3684_v34 = vor.u32 %v4835_v26, %v3683_v25  ;;  %2501 = vmatpush.bf16.msrb.mxu1 %v3828_v23  ;;  %2514 = vmatpush.bf16.msrb.mxu2 %v3956_v24  ;;  %v438_v25 = vunpack.c.h.b16 %v18_v3 }
  0x34   :  { %v3939_v30 = vld [vmem:[%s7643_s1 + $0x660] sm:$0xf]  ;;  %v4931_v33 = vld [vmem:[%s7643_s1 + $0x76c] sm:$0xf0]  ;;  %v3812_v35 = vor.u32 %v4867_v29, %v3811_v27  ;;  %2527 = vmatpush.bf16.msrb.mxu3 %v4084_v28 }
  0x35   :  { %v4067_v32 = vld [vmem:[%s7643_s1 + $0x760] sm:$0xf]  ;;  %v3940_v36 = vor.u32 %v4899_v31, %v3939_v30  ;;  %v4831_v38 = vld [vmem:[%s7643_s1 + $0x44c] sm:$0xf0]  ;;  %2489 = vmatpush.bf16.msrb.mxu0 %v3684_v34 }
  0x36   :  { %v3667_v37 = vld [vmem:[%s7643_s1 + $0x440] sm:$0xf]  ;;  %v4068_v40 = vor.u32 %v4931_v33, %v4067_v32  ;;  %v4863_v41 = vld [vmem:[%s7643_s1 + $0x54c] sm:$0xf0] }
  0x37   :  { %v3795_v39 = vld [vmem:[%s7643_s1 + $0x540] sm:$0xf]  ;;  %v4895_v43 = vld [vmem:[%s7643_s1 + $0x64c] sm:$0xf0]  ;;  %v3668_v46 = vor.u32 %v4831_v38, %v3667_v37  ;;  %2502 = vmatpush.bf16.msrb.mxu1 %v3812_v35  ;;  %2515 = vmatpush.bf16.msrb.mxu2 %v3940_v36  ;;  %v5556_v38 = vpack.c.b16 %v437_v17, %v437_v17 }
  0x38   :  { %v3923_v42 = vld [vmem:[%s7643_s1 + $0x640] sm:$0xf]  ;;  %v4927_v45 = vld [vmem:[%s7643_s1 + $0x74c] sm:$0xf0]  ;;  %v3796_v47 = vor.u32 %v4863_v41, %v3795_v39  ;;  %2528 = vmatpush.bf16.msrb.mxu3 %v4068_v40 }
  0x39   :  { %v4051_v44 = vld [vmem:[%s7643_s1 + $0x740] sm:$0xf]  ;;  %v3924_v48 = vor.u32 %v4895_v43, %v3923_v42  ;;  %v4827_v50 = vld [vmem:[%s7643_s1 + $0x42c] sm:$0xf0]  ;;  %2490 = vmatpush.bf16.msrb.mxu0 %v3668_v46  ;;  %v5566_v42 = vpack.c.b16 %v438_v25, %v438_v25 }
  0x3a   :  { %v3651_v49 = vld [vmem:[%s7643_s1 + $0x420] sm:$0xf]  ;;  %v4052_v52 = vor.u32 %v4927_v45, %v4051_v44  ;;  %v4859_v53 = vld [vmem:[%s7643_s1 + $0x52c] sm:$0xf0] }
  0x3b   :  { %v3779_v51 = vld [vmem:[%s7643_s1 + $0x520] sm:$0xf]  ;;  %v4891_v55 = vld [vmem:[%s7643_s1 + $0x62c] sm:$0xf0]  ;;  %v3652_v59 = vor.u32 %v4827_v50, %v3651_v49  ;;  %2503 = vmatpush.bf16.msrb.mxu1 %v3796_v47  ;;  %2516 = vmatpush.bf16.msrb.mxu2 %v3924_v48 }
  0x3c   :  { %v3907_v54 = vld [vmem:[%s7643_s1 + $0x620] sm:$0xf]  ;;  %v4923_v57 = vld [vmem:[%s7643_s1 + $0x72c] sm:$0xf0]  ;;  %v3780_v63 = vor.u32 %v4859_v53, %v3779_v51  ;;  %2529 = vmatpush.bf16.msrb.mxu3 %v4052_v52 }
  0x3d   :  { %v4035_v56 = vld [vmem:[%s7643_s1 + $0x720] sm:$0xf]  ;;  %v4823_v60 = vld [vmem:[%s7643_s1 + $0x40c] sm:$0xf0]  ;;  %v3908_v0 = vor.u32 %v4891_v55, %v3907_v54  ;;  %2491 = vmatpush.bf16.msrb.mxu0 %v3652_v59 }
  0x3e   :  { %v3635_v58 = vld [vmem:[%s7643_s1 + $0x400] sm:$0xf]  ;;  %v4855_v62 = vld [vmem:[%s7643_s1 + $0x50c] sm:$0xf0]  ;;  %v4036_v5 = vor.u32 %v4923_v57, %v4035_v56 }
  0x3f   :  { %v3763_v61 = vld [vmem:[%s7643_s1 + $0x500] sm:$0xf]  ;;  %v4887_v2 = vld [vmem:[%s7643_s1 + $0x60c] sm:$0xf0]  ;;  %v3636_v13 = vor.u32 %v4823_v60, %v3635_v58  ;;  %2504 = vmatpush.bf16.msrb.mxu1 %v3780_v63  ;;  %2517 = vmatpush.bf16.msrb.mxu2 %v3908_v0 }
  0x40   :  { %v3891_v1 = vld [vmem:[%s7643_s1 + $0x600] sm:$0xf]  ;;  %v4919_v8 = vld [vmem:[%s7643_s1 + $0x70c] sm:$0xf0]  ;;  %v3764_v18 = vor.u32 %v4855_v62, %v3763_v61  ;;  %2530 = vmatpush.bf16.msrb.mxu3 %v4036_v5 }
  0x41   :  { %v4019_v7 = vld [vmem:[%s7643_s1 + $0x700] sm:$0xf]  ;;  %v17_v9 = vld [vmem:[%s7644_s0 + $0x10] sm:$0xff]  ;;  %v3892_v19 = vor.u32 %v4887_v2, %v3891_v1  ;;  %2492 = vmatpush.bf16.msrb.mxu0 %v3636_v13 }
  0x42   :  { %v4259_v10 = vld [vmem:[%s7643_s1 + $0x8e0] sm:$0xf]  ;;  %v4979_v11 = vld [vmem:[%s7643_s1 + $0x8ec] sm:$0xf0]  ;;  %v435_v24 = vunpack.c.l.b16 %v17_v9  ;;  %v4020_v26 = vor.u32 %v4919_v8, %v4019_v7  ;;  %v436_v28 = vunpack.c.h.b16 %v17_v9 }
  0x43   :  { %v4387_v12 = vld [vmem:[%s7643_s1 + $0x9e0] sm:$0xf]  ;;  %v5011_v14 = vld [vmem:[%s7643_s1 + $0x9ec] sm:$0xf0]  ;;  %v4260_v27 = vor.u32 %v4979_v11, %v4259_v10  ;;  %2505 = vmatpush.bf16.msrb.mxu1 %v3764_v18  ;;  %2518 = vmatpush.bf16.msrb.mxu2 %v3892_v19 }
  0x44   :  { %v4515_v15 = vld [vmem:[%s7643_s1 + $0xae0] sm:$0xf]  ;;  %v5043_v16 = vld [vmem:[%s7643_s1 + $0xaec] sm:$0xf0]  ;;  %v4388_v29 = vor.u32 %v5011_v14, %v4387_v12  ;;  %v5564_v41 = vpack.c.b16 %v435_v24, %v435_v24  ;;  %2531 = vmatpush.bf16.msrb.mxu3 %v4020_v26  ;;  %v5568_v44 = vpack.c.b16 %v436_v28, %v436_v28 }
  0x45   :  { %v4643_v22 = vld [vmem:[%s7643_s1 + $0xbe0] sm:$0xf]  ;;  %v5075_v23 = vld [vmem:[%s7643_s1 + $0xbec] sm:$0xf0]  ;;  %v4516_v30 = vor.u32 %v5043_v16, %v4515_v15  ;;  %2537 = vmatpush.bf16.msra.mxu0 %v4260_v27 }
  0x46   :  { %v4243_v31 = vld [vmem:[%s7643_s1 + $0x8c0] sm:$0xf]  ;;  %v4975_v32 = vld [vmem:[%s7643_s1 + $0x8cc] sm:$0xf0]  ;;  %v4644_v34 = vor.u32 %v5075_v23, %v4643_v22  ;;  %2519 = vmatmul.bf16.vlgmr.msrb.gmra.mxu2 %v5556_v38  ;;  %2493 = vmatmul.bf16.vlgmr.msrb.gmra.mxu0 %v5564_v41 }
  0x47   :  { %v4371_v33 = vld [vmem:[%s7643_s1 + $0x9c0] sm:$0xf]  ;;  %v5007_v35 = vld [vmem:[%s7643_s1 + $0x9cc] sm:$0xf0]  ;;  %v4244_v43 = vor.u32 %v4975_v32, %v4243_v31  ;;  %2550 = vmatpush.bf16.msra.mxu1 %v4388_v29  ;;  %2563 = vmatpush.bf16.msra.mxu2 %v4516_v30 }
  0x48   :  { %v4499_v36 = vld [vmem:[%s7643_s1 + $0xac0] sm:$0xf]  ;;  %v5039_v37 = vld [vmem:[%s7643_s1 + $0xacc] sm:$0xf0]  ;;  %v4372_v45 = vor.u32 %v5007_v35, %v4371_v33  ;;  %2576 = vmatpush.bf16.msra.mxu3 %v4644_v34  ;;  %2506 = vmatmul.bf16.vlgmr.msrb.gmra.mxu1 %v5568_v44 }
  0x49   :  { %v4627_v39 = vld [vmem:[%s7643_s1 + $0xbc0] sm:$0xf]  ;;  %v5071_v40 = vld [vmem:[%s7643_s1 + $0xbcc] sm:$0xf0]  ;;  %v4500_v46 = vor.u32 %v5039_v37, %v4499_v36  ;;  %2532 = vmatmul.bf16.vlgmr.msrb.gmra.mxu3 %v5566_v42  ;;  %2538 = vmatpush.bf16.msra.mxu0 %v4244_v43 }
  0x4a   :  { %v4227_v47 = vld [vmem:[%s7643_s1 + $0x8a0] sm:$0xf]  ;;  %v4971_v48 = vld [vmem:[%s7643_s1 + $0x8ac] sm:$0xf0]  ;;  %v4628_v50 = vor.u32 %v5071_v40, %v4627_v39 }
  0x4b   :  { %v4355_v49 = vld [vmem:[%s7643_s1 + $0x9a0] sm:$0xf]  ;;  %v5003_v51 = vld [vmem:[%s7643_s1 + $0x9ac] sm:$0xf0]  ;;  %v4228_v56 = vor.u32 %v4971_v48, %v4227_v47  ;;  %2551 = vmatpush.bf16.msra.mxu1 %v4372_v45  ;;  %2564 = vmatpush.bf16.msra.mxu2 %v4500_v46 }
  0x4c   :  { %v4483_v52 = vld [vmem:[%s7643_s1 + $0xaa0] sm:$0xf]  ;;  %v5035_v53 = vld [vmem:[%s7643_s1 + $0xaac] sm:$0xf0]  ;;  %v4356_v57 = vor.u32 %v5003_v51, %v4355_v49  ;;  %2577 = vmatpush.bf16.msra.mxu3 %v4628_v50 }
  0x4d   :  { %v4611_v54 = vld [vmem:[%s7643_s1 + $0xba0] sm:$0xf]  ;;  %v5067_v55 = vld [vmem:[%s7643_s1 + $0xbac] sm:$0xf0]  ;;  %v4484_v58 = vor.u32 %v5035_v53, %v4483_v52  ;;  %2539 = vmatpush.bf16.msra.mxu0 %v4228_v56 }
  0x4e   :  { %v4211_v59 = vld [vmem:[%s7643_s1 + $0x880] sm:$0xf]  ;;  %v4967_v60 = vld [vmem:[%s7643_s1 + $0x88c] sm:$0xf0]  ;;  %v4612_v62 = vor.u32 %v5067_v55, %v4611_v54 }
  0x4f   :  { %v4339_v61 = vld [vmem:[%s7643_s1 + $0x980] sm:$0xf]  ;;  %v4999_v63 = vld [vmem:[%s7643_s1 + $0x98c] sm:$0xf0]  ;;  %v4212_v5 = vor.u32 %v4967_v60, %v4211_v59  ;;  %2552 = vmatpush.bf16.msra.mxu1 %v4356_v57  ;;  %2565 = vmatpush.bf16.msra.mxu2 %v4484_v58  ;;  %v20_v57 = vld [vmem:[%s7644_s0 + $0x28] sm:$0xff] }
  0x50   :  { %v4467_v0 = vld [vmem:[%s7643_s1 + $0xa80] sm:$0xf]  ;;  %v5031_v1 = vld [vmem:[%s7643_s1 + $0xa8c] sm:$0xf0]  ;;  %v4340_v7 = vor.u32 %v4999_v63, %v4339_v61  ;;  %2578 = vmatpush.bf16.msra.mxu3 %v4612_v62  ;;  %v4721_v62 = vld [vmem:[%s7643_s1 + $0xe4] sm:$0xf] }
  0x51   :  { %v4595_v2 = vld [vmem:[%s7643_s1 + $0xb80] sm:$0xf]  ;;  %v5063_v3 = vld [vmem:[%s7643_s1 + $0xb8c] sm:$0xf0]  ;;  %v4468_v8 = vor.u32 %v5031_v1, %v4467_v0  ;;  %2540 = vmatpush.bf16.msra.mxu0 %v4212_v5  ;;  %v3237_v63 = vld [vmem:[%s7643_s1 + $0xf0] sm:$0xf0] }
  0x52   :  { %v4195_v9 = vld [vmem:[%s7643_s1 + $0x860] sm:$0xf]  ;;  %v4963_v10 = vld [vmem:[%s7643_s1 + $0x86c] sm:$0xf0]  ;;  %v4596_v12 = vor.u32 %v5063_v3, %v4595_v2  ;;  %v4753_v0 = vld [vmem:[%s7643_s1 + $0x1e4] sm:$0xf] }
  0x53   :  { %v4323_v11 = vld [vmem:[%s7643_s1 + $0x960] sm:$0xf]  ;;  %v4995_v13 = vld [vmem:[%s7643_s1 + $0x96c] sm:$0xf0]  ;;  %v4196_v18 = vor.u32 %v4963_v10, %v4195_v9  ;;  %2553 = vmatpush.bf16.msra.mxu1 %v4340_v7  ;;  %2566 = vmatpush.bf16.msra.mxu2 %v4468_v8  ;;  %v3365_v2 = vld [vmem:[%s7643_s1 + $0x1f0] sm:$0xf0]  ;;  %v441_v8 = vunpack.c.l.b16 %v20_v57 }
  0x54   :  { %v4451_v14 = vld [vmem:[%s7643_s1 + $0xa60] sm:$0xf]  ;;  %v5027_v15 = vld [vmem:[%s7643_s1 + $0xa6c] sm:$0xf0]  ;;  %v4324_v19 = vor.u32 %v4995_v13, %v4323_v11  ;;  %2579 = vmatpush.bf16.msra.mxu3 %v4596_v12  ;;  %v4785_v3 = vld [vmem:[%s7643_s1 + $0x2e4] sm:$0xf]  ;;  %v3240_v13 = vor.u32 %v4721_v62, %v3237_v63 }
  0x55   :  { %v4579_v16 = vld [vmem:[%s7643_s1 + $0xb60] sm:$0xf]  ;;  %v5059_v17 = vld [vmem:[%s7643_s1 + $0xb6c] sm:$0xf0]  ;;  %v4452_v22 = vor.u32 %v5027_v15, %v4451_v14  ;;  %2541 = vmatpush.bf16.msra.mxu0 %v4196_v18  ;;  %v3493_v5 = vld [vmem:[%s7643_s1 + $0x2f0] sm:$0xf0] }
  0x56   :  { %v4179_v23 = vld [vmem:[%s7643_s1 + $0x840] sm:$0xf]  ;;  %v4959_v24 = vld [vmem:[%s7643_s1 + $0x84c] sm:$0xf0]  ;;  %v4580_v26 = vor.u32 %v5059_v17, %v4579_v16  ;;  %v442_v16 = vunpack.c.h.b16 %v20_v57  ;;  %v3368_v17 = vor.u32 %v4753_v0, %v3365_v2  ;;  %v3496_v18 = vor.u32 %v4785_v3, %v3493_v5  ;;  %v4813_v57 = vld [vmem:[%s7643_s1 + $0x3c4] sm:$0xf] }
  0x57   :  { %v4307_v25 = vld [vmem:[%s7643_s1 + $0x940] sm:$0xf]  ;;  %v4991_v27 = vld [vmem:[%s7643_s1 + $0x94c] sm:$0xf0]  ;;  %v4180_v32 = vor.u32 %v4959_v24, %v4179_v23  ;;  %2554 = vmatpush.bf16.msra.mxu1 %v4324_v19  ;;  %2567 = vmatpush.bf16.msra.mxu2 %v4452_v22  ;;  %v4717_v19 = vld [vmem:[%s7643_s1 + $0xc4] sm:$0xf] }
  0x58   :  { %v4435_v28 = vld [vmem:[%s7643_s1 + $0xa40] sm:$0xf]  ;;  %v5023_v29 = vld [vmem:[%s7643_s1 + $0xa4c] sm:$0xf0]  ;;  %v4308_v33 = vor.u32 %v4991_v27, %v4307_v25  ;;  %2580 = vmatpush.bf16.msra.mxu3 %v4580_v26  ;;  %v3221_v22 = vld [vmem:[%s7643_s1 + $0xd0] sm:$0xf0]  ;;  %v5759_v25 = vpack.c.b16 %v441_v8, %v441_v8 }
  0x59   :  { %v4563_v30 = vld [vmem:[%s7643_s1 + $0xb40] sm:$0xf]  ;;  %v5055_v31 = vld [vmem:[%s7643_s1 + $0xb4c] sm:$0xf0]  ;;  %v4436_v34 = vor.u32 %v5023_v29, %v4435_v28  ;;  %2542 = vmatpush.bf16.msra.mxu0 %v4180_v32  ;;  %v4749_v23 = vld [vmem:[%s7643_s1 + $0x1c4] sm:$0xf]  ;;  %v5775_v32 = vpack.c.b16 %v442_v16, %v442_v16 }
  0x5a   :  { %v4163_v35 = vld [vmem:[%s7643_s1 + $0x820] sm:$0xf]  ;;  %v4955_v36 = vld [vmem:[%s7643_s1 + $0x82c] sm:$0xf0]  ;;  %v4564_v39 = vor.u32 %v5055_v31, %v4563_v30  ;;  %v3349_v26 = vld [vmem:[%s7643_s1 + $0x1d0] sm:$0xf0] }
  0x5b   :  { %v4291_v37 = vld [vmem:[%s7643_s1 + $0x920] sm:$0xf]  ;;  %v4987_v40 = vld [vmem:[%s7643_s1 + $0x92c] sm:$0xf0]  ;;  %v4164_v49 = vor.u32 %v4955_v36, %v4163_v35  ;;  %2555 = vmatpush.bf16.msra.mxu1 %v4308_v33  ;;  %2568 = vmatpush.bf16.msra.mxu2 %v4436_v34  ;;  %v4781_v27 = vld [vmem:[%s7643_s1 + $0x2c4] sm:$0xf]  ;;  %v3224_v33 = vor.u32 %v4717_v19, %v3221_v22 }
  0x5c   :  { %v4419_v43 = vld [vmem:[%s7643_s1 + $0xa20] sm:$0xf]  ;;  %v5019_v45 = vld [vmem:[%s7643_s1 + $0xa2c] sm:$0xf0]  ;;  %v4292_v53 = vor.u32 %v4987_v40, %v4291_v37  ;;  %2581 = vmatpush.bf16.msra.mxu3 %v4564_v39  ;;  %v3477_v28 = vld [vmem:[%s7643_s1 + $0x2d0] sm:$0xf0]  ;;  %v3352_v37 = vor.u32 %v4749_v23, %v3349_v26 }
  0x5d   :  { %v4547_v46 = vld [vmem:[%s7643_s1 + $0xb20] sm:$0xf]  ;;  %v5051_v47 = vld [vmem:[%s7643_s1 + $0xb2c] sm:$0xf0]  ;;  %v4420_v54 = vor.u32 %v5019_v45, %v4419_v43  ;;  %2543 = vmatpush.bf16.msra.mxu0 %v4164_v49  ;;  %v4713_v35 = vld [vmem:[%s7643_s1 + $0xa4] sm:$0xf]  ;;  %v3480_v39 = vor.u32 %v4781_v27, %v3477_v28 }
  0x5e   :  { %v4147_v48 = vld [vmem:[%s7643_s1 + $0x800] sm:$0xf]  ;;  %v4951_v50 = vld [vmem:[%s7643_s1 + $0x80c] sm:$0xf0]  ;;  %v4548_v58 = vor.u32 %v5051_v47, %v4547_v46  ;;  %v3205_v36 = vld [vmem:[%s7643_s1 + $0xb0] sm:$0xf0] }
  0x5f   :  { %v4275_v51 = vld [vmem:[%s7643_s1 + $0x900] sm:$0xf]  ;;  %v4983_v52 = vld [vmem:[%s7643_s1 + $0x90c] sm:$0xf0]  ;;  %v4148_v1 = vor.u32 %v4951_v50, %v4147_v48  ;;  %2556 = vmatpush.bf16.msra.mxu1 %v4292_v53  ;;  %2569 = vmatpush.bf16.msra.mxu2 %v4420_v54  ;;  %v4745_v40 = vld [vmem:[%s7643_s1 + $0x1a4] sm:$0xf]  ;;  %v3208_v50 = vor.u32 %v4713_v35, %v3205_v36 }
  0x60   :  { %v4403_v55 = vld [vmem:[%s7643_s1 + $0xa00] sm:$0xf]  ;;  %v5015_v59 = vld [vmem:[%s7643_s1 + $0xa0c] sm:$0xf0]  ;;  %v4276_v9 = vor.u32 %v4983_v52, %v4275_v51  ;;  %2582 = vmatpush.bf16.msra.mxu3 %v4548_v58  ;;  %v4817_v43 = vld [vmem:[%s7643_s1 + $0x3e4] sm:$0xf] }
  0x61   :  { %v19_v56 = vld [vmem:[%s7644_s0 + $0x20] sm:$0xff]  ;;  %v5047_v61 = vld [vmem:[%s7643_s1 + $0xb0c] sm:$0xf0]  ;;  %v4404_v10 = vor.u32 %v5015_v59, %v4403_v55  ;;  %2544 = vmatpush.bf16.msra.mxu0 %v4148_v1  ;;  %v3621_v45 = vld [vmem:[%s7643_s1 + $0x3f0] sm:$0xf0] }
  0x62   :  { %v4531_v60 = vld [vmem:[%s7643_s1 + $0xb00] sm:$0xf]  ;;  %v439_v7 = vunpack.c.l.b16 %v19_v56  ;;  %v440_v11 = vunpack.c.h.b16 %v19_v56  ;;  %v5083_v15 = vld [vmem:[%s7643_s1 + $0xc2c] sm:$0xf0]  ;;  %v3333_v46 = vld [vmem:[%s7643_s1 + $0x1b0] sm:$0xf0]  ;;  %v3624_v51 = vor.u32 %v4817_v43, %v3621_v45 }
  0x63   :  { %v4532_v12 = vor.u32 %v5047_v61, %v4531_v60  ;;  %v4675_v14 = vld [vmem:[%s7643_s1 + $0xc20] sm:$0xf]  ;;  %2557 = vmatpush.bf16.msra.mxu1 %v4276_v9  ;;  %2570 = vmatpush.bf16.msra.mxu2 %v4404_v10  ;;  %v5079_v34 = vld [vmem:[%s7643_s1 + $0xc0c] sm:$0xf0]  ;;  %v4777_v47 = vld [vmem:[%s7643_s1 + $0x2a4] sm:$0xf]  ;;  %v3336_v54 = vor.u32 %v4745_v40, %v3333_v46 }
  0x64   :  { %v5757_v24 = vpack.c.b16 %v439_v7, %v439_v7  ;;  %v4676_v29 = vor.u32 %v5083_v15, %v4675_v14  ;;  %v5770_v30 = vpack.c.b16 %v440_v11, %v440_v11  ;;  %v4659_v31 = vld [vmem:[%s7643_s1 + $0xc00] sm:$0xf]  ;;  %v3461_v48 = vld [vmem:[%s7643_s1 + $0x2b0] sm:$0xf0]  ;;  %v4709_v52 = vld [vmem:[%s7643_s1 + $0x84] sm:$0xf] }
  0x65   :  { %2583 = vmatpush.bf16.msra.mxu3 %v4532_v12  ;;  %v4660_v49 = vor.u32 %v5079_v34, %v4659_v31  ;;  %v3189_v53 = vld [vmem:[%s7643_s1 + $0x90] sm:$0xf0]  ;;  %v3464_v55 = vor.u32 %v4777_v47, %v3461_v48  ;;  %v4741_v56 = vld [vmem:[%s7643_s1 + $0x184] sm:$0xf]  ;;  %v21_v62 = vld [vmem:[%s7644_s0 + $0x30] sm:$0xf] }
  0x66   :  { %2545 = vmatmul.bf16.vlgmr.msra.gmra.mxu0 %v5757_v24  ;;  %2571 = vmatmul.bf16.vlgmr.msra.gmra.mxu2 %v5759_v25  ;;  %v3605_v58 = vld [vmem:[%s7643_s1 + $0x3d0] sm:$0xf0]  ;;  %v4773_v60 = vld [vmem:[%s7643_s1 + $0x284] sm:$0xf]  ;;  %v3192_v63 = vor.u32 %v4709_v52, %v3189_v53 }
  0x67   :  { %2602 = vmatpush.bf16.msrb.mxu1 %v3240_v13  ;;  %2615 = vmatpush.bf16.msrb.mxu2 %v3368_v17  ;;  %v3317_v59 = vld [vmem:[%s7643_s1 + $0x190] sm:$0xf0]  ;;  %v3608_v0 = vor.u32 %v4813_v57, %v3605_v58  ;;  %v4705_v1 = vld [vmem:[%s7643_s1 + $0x64] sm:$0xf]  ;;  %v443_v13 = vunpack.c.l.b16 %v21_v62 }
  0x68   :  { %2595 = vmatpush.bf16.msrb.mxu0 %v4676_v29  ;;  %2558 = vmatmul.bf16.vlgmr.msra.gmra.mxu1 %v5770_v30  ;;  %v3445_v61 = vld [vmem:[%s7643_s1 + $0x290] sm:$0xf0]  ;;  %v3320_v3 = vor.u32 %v4741_v56, %v3317_v59  ;;  %v4737_v7 = vld [vmem:[%s7643_s1 + $0x164] sm:$0xf] }
  0x69   :  { %2628 = vmatpush.bf16.msrb.mxu3 %v3496_v18  ;;  %v3173_v2 = vld [vmem:[%s7643_s1 + $0x70] sm:$0xf0]  ;;  %v3448_v5 = vor.u32 %v4773_v60, %v3445_v61  ;;  %v4809_v8 = vld [vmem:[%s7643_s1 + $0x3a4] sm:$0xf]  ;;  %v5874_v27 = vpack.c.b16 %v443_v13, %v443_v13 }
  0x6a   :  { %2584 = vmatmul.bf16.vlgmr.msra.gmra.mxu3 %v5775_v32  ;;  %v3589_v9 = vld [vmem:[%s7643_s1 + $0x3b0] sm:$0xf0]  ;;  %v4769_v11 = vld [vmem:[%s7643_s1 + $0x264] sm:$0xf]  ;;  %v3176_v14 = vor.u32 %v4705_v1, %v3173_v2 }
  0x6b   :  { %2603 = vmatpush.bf16.msrb.mxu1 %v3224_v33  ;;  %2616 = vmatpush.bf16.msrb.mxu2 %v3352_v37  ;;  %v3301_v10 = vld [vmem:[%s7643_s1 + $0x170] sm:$0xf0]  ;;  %v3592_v15 = vor.u32 %v4809_v8, %v3589_v9  ;;  %v4701_v16 = vld [vmem:[%s7643_s1 + $0x44] sm:$0xf] }
  0x6c   :  { %2596 = vmatpush.bf16.msrb.mxu0 %v4660_v49  ;;  %v3429_v12 = vld [vmem:[%s7643_s1 + $0x270] sm:$0xf0]  ;;  %v3304_v18 = vor.u32 %v4737_v7, %v3301_v10  ;;  %v4733_v22 = vld [vmem:[%s7643_s1 + $0x144] sm:$0xf] }
  0x6d   :  { %2629 = vmatpush.bf16.msrb.mxu3 %v3480_v39  ;;  %v3157_v17 = vld [vmem:[%s7643_s1 + $0x50] sm:$0xf0]  ;;  %v3432_v19 = vor.u32 %v4769_v11, %v3429_v12  ;;  %v4805_v23 = vld [vmem:[%s7643_s1 + $0x384] sm:$0xf] }
  0x6e   :  { %v3573_v26 = vld [vmem:[%s7643_s1 + $0x390] sm:$0xf0]  ;;  %v4765_v29 = vld [vmem:[%s7643_s1 + $0x244] sm:$0xf]  ;;  %v3160_v33 = vor.u32 %v4701_v16, %v3157_v17 }
  0x6f   :  { %2604 = vmatpush.bf16.msrb.mxu1 %v3208_v50  ;;  %2617 = vmatpush.bf16.msrb.mxu2 %v3336_v54  ;;  %v3285_v28 = vld [vmem:[%s7643_s1 + $0x150] sm:$0xf0]  ;;  %v3576_v34 = vor.u32 %v4805_v23, %v3573_v26  ;;  %v4697_v35 = vld [vmem:[%s7643_s1 + $0x24] sm:$0xf] }
  0x70   :  { %2641 = vmatpush.bf16.msra.mxu0 %v3624_v51  ;;  %v3413_v31 = vld [vmem:[%s7643_s1 + $0x250] sm:$0xf0]  ;;  %v3288_v37 = vor.u32 %v4733_v22, %v3285_v28  ;;  %v4729_v40 = vld [vmem:[%s7643_s1 + $0x124] sm:$0xf] }
  0x71   :  { %2630 = vmatpush.bf16.msrb.mxu3 %v3464_v55  ;;  %v3141_v36 = vld [vmem:[%s7643_s1 + $0x30] sm:$0xf0]  ;;  %v3416_v39 = vor.u32 %v4765_v29, %v3413_v31  ;;  %v4801_v43 = vld [vmem:[%s7643_s1 + $0x364] sm:$0xf] }
  0x72   :  { %v3557_v45 = vld [vmem:[%s7643_s1 + $0x370] sm:$0xf0]  ;;  %v4761_v47 = vld [vmem:[%s7643_s1 + $0x224] sm:$0xf]  ;;  %v3144_v49 = vor.u32 %v4697_v35, %v3141_v36 }
  0x73   :  { %2605 = vmatpush.bf16.msrb.mxu1 %v3192_v63  ;;  %2618 = vmatpush.bf16.msrb.mxu2 %v3320_v3  ;;  %v3269_v46 = vld [vmem:[%s7643_s1 + $0x130] sm:$0xf0]  ;;  %v3560_v50 = vor.u32 %v4801_v43, %v3557_v45  ;;  %v4693_v51 = vld [vmem:[%s7643_s1 + $0x4] sm:$0xf] }
  0x74   :  { %2642 = vmatpush.bf16.msra.mxu0 %v3608_v0  ;;  %v3397_v48 = vld [vmem:[%s7643_s1 + $0x230] sm:$0xf0]  ;;  %v4725_v53 = vld [vmem:[%s7643_s1 + $0x104] sm:$0xf]  ;;  %v3272_v54 = vor.u32 %v4729_v40, %v3269_v46 }
  0x75   :  { %2631 = vmatpush.bf16.msrb.mxu3 %v3448_v5  ;;  %v3125_v52 = vld [vmem:[%s7643_s1 + $0x10] sm:$0xf0]  ;;  %v3400_v55 = vor.u32 %v4761_v47, %v3397_v48  ;;  %v4797_v57 = vld [vmem:[%s7643_s1 + $0x344] sm:$0xf] }
  0x76   :  { %4689 = vmatmul.msk.bf16.vlgmr.msrb.gmra.mxu0 %vm2429_vm0, %v5874_v27  ;;  %v3253_v56 = vld [vmem:[%s7643_s1 + $0x110] sm:$0xf0]  ;;  %v4757_v59 = vld [vmem:[%s7643_s1 + $0x204] sm:$0xf]  ;;  %v3128_v1 = vor.u32 %v4693_v51, %v3125_v52 }
  0x77   :  { %2606 = vmatpush.bf16.msrb.mxu1 %v3176_v14  ;;  %2619 = vmatpush.bf16.msrb.mxu2 %v3304_v18  ;;  %v3541_v58 = vld [vmem:[%s7643_s1 + $0x350] sm:$0xf0]  ;;  %v4849_v61 = vld [vmem:[%s7643_s1 + $0x4e4] sm:$0xf]  ;;  %v3256_v7 = vor.u32 %v4725_v53, %v3253_v56 }
  0x78   :  { %2643 = vmatpush.bf16.msra.mxu0 %v3592_v15  ;;  %v3381_v60 = vld [vmem:[%s7643_s1 + $0x210] sm:$0xf0]  ;;  %v4881_v63 = vld [vmem:[%s7643_s1 + $0x5e4] sm:$0xf]  ;;  %v3544_v2 = vor.u32 %v4797_v57, %v3541_v58 }
  0x79   :  { %2632 = vmatpush.bf16.msrb.mxu3 %v3432_v19  ;;  %v3749_v62 = vld [vmem:[%s7643_s1 + $0x4f0] sm:$0xf0]  ;;  %v4913_v3 = vld [vmem:[%s7643_s1 + $0x6e4] sm:$0xf]  ;;  %v3384_v8 = vor.u32 %v4757_v59, %v3381_v60 }
  0x7a   :  { %v3877_v0 = vld [vmem:[%s7643_s1 + $0x5f0] sm:$0xf0]  ;;  %v4793_v9 = vld [vmem:[%s7643_s1 + $0x324] sm:$0xf]  ;;  %v3752_v11 = vor.u32 %v4849_v61, %v3749_v62 }
  0x7b   :  { %2607 = vmatpush.bf16.msrb.mxu1 %v3160_v33  ;;  %2620 = vmatpush.bf16.msrb.mxu2 %v3288_v37  ;;  %v4005_v5 = vld [vmem:[%s7643_s1 + $0x6f0] sm:$0xf0]  ;;  %v3880_v12 = vor.u32 %v4881_v63, %v3877_v0  ;;  %v4845_v13 = vld [vmem:[%s7643_s1 + $0x4c4] sm:$0xf] }
  0x7c   :  { %2644 = vmatpush.bf16.msra.mxu0 %v3576_v34  ;;  %v3525_v10 = vld [vmem:[%s7643_s1 + $0x330] sm:$0xf0]  ;;  %v4008_v14 = vor.u32 %v4913_v3, %v4005_v5  ;;  %v4877_v16 = vld [vmem:[%s7643_s1 + $0x5c4] sm:$0xf] }
  0x7d   :  { %2633 = vmatpush.bf16.msrb.mxu3 %v3416_v39  ;;  %v3733_v15 = vld [vmem:[%s7643_s1 + $0x4d0] sm:$0xf0]  ;;  %v3528_v18 = vor.u32 %v4793_v9, %v3525_v10  ;;  %v4909_v19 = vld [vmem:[%s7643_s1 + $0x6c4] sm:$0xf] }
  0x7e   :  { %v3861_v17 = vld [vmem:[%s7643_s1 + $0x5d0] sm:$0xf0]  ;;  %v4789_v23 = vld [vmem:[%s7643_s1 + $0x304] sm:$0xf]  ;;  %v3736_v28 = vor.u32 %v4845_v13, %v3733_v15 }
  0x7f   :  { %2608 = vmatpush.bf16.msrb.mxu1 %v3144_v49  ;;  %2621 = vmatpush.bf16.msrb.mxu2 %v3272_v54  ;;  %v3989_v22 = vld [vmem:[%s7643_s1 + $0x6d0] sm:$0xf0]  ;;  %v3864_v29 = vor.u32 %v4877_v16, %v3861_v17  ;;  %v4841_v31 = vld [vmem:[%s7643_s1 + $0x4a4] sm:$0xf] }
  0x80   :  { %2645 = vmatpush.bf16.msra.mxu0 %v3560_v50  ;;  %v3509_v26 = vld [vmem:[%s7643_s1 + $0x310] sm:$0xf0]  ;;  %v4945_v33 = vld [vmem:[%s7643_s1 + $0x7e4] sm:$0xf]  ;;  %v3992_v35 = vor.u32 %v4909_v19, %v3989_v22 }
  0x81   :  { %2634 = vmatpush.bf16.msrb.mxu3 %v3400_v55  ;;  %v4133_v34 = vld [vmem:[%s7643_s1 + $0x7f0] sm:$0xf0]  ;;  %v4873_v37 = vld [vmem:[%s7643_s1 + $0x5a4] sm:$0xf]  ;;  %v3512_v40 = vor.u32 %v4789_v23, %v3509_v26 }
  0x82   :  { %v3717_v36 = vld [vmem:[%s7643_s1 + $0x4b0] sm:$0xf0]  ;;  %v4905_v43 = vld [vmem:[%s7643_s1 + $0x6a4] sm:$0xf]  ;;  %v4136_v46 = vor.u32 %v4945_v33, %v4133_v34 }
  0x83   :  { %2609 = vmatpush.bf16.msrb.mxu1 %v3128_v1  ;;  %2622 = vmatpush.bf16.msrb.mxu2 %v3256_v7  ;;  %v3845_v39 = vld [vmem:[%s7643_s1 + $0x5b0] sm:$0xf0]  ;;  %v3720_v47 = vor.u32 %v4841_v31, %v3717_v36  ;;  %v4837_v49 = vld [vmem:[%s7643_s1 + $0x484] sm:$0xf] }
  0x84   :  { %2646 = vmatpush.bf16.msra.mxu0 %v3544_v2  ;;  %v3973_v45 = vld [vmem:[%s7643_s1 + $0x6b0] sm:$0xf0]  ;;  %v3848_v48 = vor.u32 %v4873_v37, %v3845_v39  ;;  %v4941_v50 = vld [vmem:[%s7643_s1 + $0x7c4] sm:$0xf] }
  0x85   :  { %2635 = vmatpush.bf16.msrb.mxu3 %v3384_v8  ;;  %v4117_v51 = vld [vmem:[%s7643_s1 + $0x7d0] sm:$0xf0]  ;;  %v3976_v52 = vor.u32 %v4905_v43, %v3973_v45  ;;  %v4869_v54 = vld [vmem:[%s7643_s1 + $0x584] sm:$0xf] }
  0x86   :  { %2610 = vmatmul.bf16.vlgmr.msrb.gmra.mxu1 %v5405_v20  ;;  %2623 = vmatmul.bf16.vlgmr.msrb.gmra.mxu2 %v5408_v21  ;;  %v3701_v53 = vld [vmem:[%s7643_s1 + $0x490] sm:$0xf0]  ;;  %v4901_v56 = vld [vmem:[%s7643_s1 + $0x684] sm:$0xf]  ;;  %v4120_v58 = vor.u32 %v4941_v50, %v4117_v51 }
  0x87   :  { %2654 = vmatpush.bf16.msra.mxu1 %v3752_v11  ;;  %2667 = vmatpush.bf16.msra.mxu2 %v3880_v12  ;;  %v3829_v55 = vld [vmem:[%s7643_s1 + $0x590] sm:$0xf0]  ;;  %v3704_v59 = vor.u32 %v4837_v49, %v3701_v53  ;;  %v4833_v61 = vld [vmem:[%s7643_s1 + $0x464] sm:$0xf] }
  0x88   :  { %2647 = vmatpush.bf16.msra.mxu0 %v3528_v18  ;;  %2636 = vmatmul.bf16.vlgmr.msrb.gmra.mxu3 %v5373_v4  ;;  %v3957_v57 = vld [vmem:[%s7643_s1 + $0x690] sm:$0xf0]  ;;  %v3832_v60 = vor.u32 %v4869_v54, %v3829_v55  ;;  %v4937_v62 = vld [vmem:[%s7643_s1 + $0x7a4] sm:$0xf] }
  0x89   :  { %2680 = vmatpush.bf16.msra.mxu3 %v4008_v14  ;;  %v4101_v63 = vld [vmem:[%s7643_s1 + $0x7b0] sm:$0xf0]  ;;  %v3960_v0 = vor.u32 %v4901_v56, %v3957_v57  ;;  %v4865_v2 = vld [vmem:[%s7643_s1 + $0x564] sm:$0xf] }
  0x8a   :  { %v3685_v1 = vld [vmem:[%s7643_s1 + $0x470] sm:$0xf0]  ;;  %v4897_v5 = vld [vmem:[%s7643_s1 + $0x664] sm:$0xf]  ;;  %v4104_v8 = vor.u32 %v4937_v62, %v4101_v63 }
  0x8b   :  { %2655 = vmatpush.bf16.msra.mxu1 %v3736_v28  ;;  %2668 = vmatpush.bf16.msra.mxu2 %v3864_v29  ;;  %v3813_v3 = vld [vmem:[%s7643_s1 + $0x570] sm:$0xf0]  ;;  %v3688_v9 = vor.u32 %v4833_v61, %v3685_v1  ;;  %v4829_v11 = vld [vmem:[%s7643_s1 + $0x444] sm:$0xf] }
  0x8c   :  { %2648 = vmatpush.bf16.msra.mxu0 %v3512_v40  ;;  %v3941_v7 = vld [vmem:[%s7643_s1 + $0x670] sm:$0xf0]  ;;  %v3816_v10 = vor.u32 %v4865_v2, %v3813_v3  ;;  %v4933_v12 = vld [vmem:[%s7643_s1 + $0x784] sm:$0xf] }
  0x8d   :  { %2681 = vmatpush.bf16.msra.mxu3 %v3992_v35  ;;  %v4085_v13 = vld [vmem:[%s7643_s1 + $0x790] sm:$0xf0]  ;;  %v3944_v14 = vor.u32 %v4897_v5, %v3941_v7  ;;  %v4861_v16 = vld [vmem:[%s7643_s1 + $0x544] sm:$0xf] }
  0x8e   :  { %v3669_v15 = vld [vmem:[%s7643_s1 + $0x450] sm:$0xf0]  ;;  %v4893_v18 = vld [vmem:[%s7643_s1 + $0x644] sm:$0xf]  ;;  %v4088_v22 = vor.u32 %v4933_v12, %v4085_v13 }
  0x8f   :  { %2656 = vmatpush.bf16.msra.mxu1 %v3720_v47  ;;  %2669 = vmatpush.bf16.msra.mxu2 %v3848_v48  ;;  %v3797_v17 = vld [vmem:[%s7643_s1 + $0x550] sm:$0xf0]  ;;  %v3672_v23 = vor.u32 %v4829_v11, %v3669_v15  ;;  %v4825_v28 = vld [vmem:[%s7643_s1 + $0x424] sm:$0xf] }
  0x90   :  { %2693 = vmatpush.bf16.msrb.mxu0 %v4136_v46  ;;  %v3925_v19 = vld [vmem:[%s7643_s1 + $0x650] sm:$0xf0]  ;;  %v3800_v26 = vor.u32 %v4861_v16, %v3797_v17  ;;  %v4929_v29 = vld [vmem:[%s7643_s1 + $0x764] sm:$0xf] }
  0x91   :  { %2682 = vmatpush.bf16.msra.mxu3 %v3976_v52  ;;  %2649 = vmatmul.bf16.vlgmr.msra.gmra.mxu0 %v5378_v6  ;;  %v4069_v31 = vld [vmem:[%s7643_s1 + $0x770] sm:$0xf0]  ;;  %v3928_v33 = vor.u32 %v4893_v18, %v3925_v19  ;;  %v4857_v35 = vld [vmem:[%s7643_s1 + $0x524] sm:$0xf] }
  0x92   :  { %v3653_v34 = vld [vmem:[%s7643_s1 + $0x430] sm:$0xf0]  ;;  %v4889_v37 = vld [vmem:[%s7643_s1 + $0x624] sm:$0xf]  ;;  %v4072_v40 = vor.u32 %v4929_v29, %v4069_v31 }
  0x93   :  { %2657 = vmatpush.bf16.msra.mxu1 %v3704_v59  ;;  %2670 = vmatpush.bf16.msra.mxu2 %v3832_v60  ;;  %v3781_v36 = vld [vmem:[%s7643_s1 + $0x530] sm:$0xf0]  ;;  %v4821_v43 = vld [vmem:[%s7643_s1 + $0x404] sm:$0xf]  ;;  %v3656_v46 = vor.u32 %v4825_v28, %v3653_v34 }
  0x94   :  { %2694 = vmatpush.bf16.msrb.mxu0 %v4120_v58  ;;  %v3909_v39 = vld [vmem:[%s7643_s1 + $0x630] sm:$0xf0]  ;;  %v3784_v47 = vor.u32 %v4857_v35, %v3781_v36  ;;  %v4853_v48 = vld [vmem:[%s7643_s1 + $0x504] sm:$0xf] }
  0x95   :  { %2683 = vmatpush.bf16.msra.mxu3 %v3960_v0  ;;  %v3637_v45 = vld [vmem:[%s7643_s1 + $0x410] sm:$0xf0]  ;;  %v4925_v49 = vld [vmem:[%s7643_s1 + $0x744] sm:$0xf]  ;;  %v3912_v51 = vor.u32 %v4889_v37, %v3909_v39 }
  0x96   :  { %v4053_v50 = vld [vmem:[%s7643_s1 + $0x750] sm:$0xf0]  ;;  %v4885_v53 = vld [vmem:[%s7643_s1 + $0x604] sm:$0xf]  ;;  %v3640_v62 = vor.u32 %v4821_v43, %v3637_v45 }
  0x97   :  { %2658 = vmatpush.bf16.msra.mxu1 %v3688_v9  ;;  %2671 = vmatpush.bf16.msra.mxu2 %v3816_v10  ;;  %v3765_v52 = vld [vmem:[%s7643_s1 + $0x510] sm:$0xf0]  ;;  %v4977_v55 = vld [vmem:[%s7643_s1 + $0x8e4] sm:$0xf]  ;;  %v4056_v58 = vor.u32 %v4925_v49, %v4053_v50 }
  0x98   :  { %2695 = vmatpush.bf16.msrb.mxu0 %v4104_v8  ;;  %v3893_v54 = vld [vmem:[%s7643_s1 + $0x610] sm:$0xf0]  ;;  %v5009_v57 = vld [vmem:[%s7643_s1 + $0x9e4] sm:$0xf]  ;;  %v3768_v63 = vor.u32 %v4853_v48, %v3765_v52 }
  0x99   :  { %2684 = vmatpush.bf16.msra.mxu3 %v3944_v14  ;;  %v4261_v56 = vld [vmem:[%s7643_s1 + $0x8f0] sm:$0xf0]  ;;  %v5041_v60 = vld [vmem:[%s7643_s1 + $0xae4] sm:$0xf]  ;;  %v3896_v2 = vor.u32 %v4885_v53, %v3893_v54 }
  0x9a   :  { %v4389_v59 = vld [vmem:[%s7643_s1 + $0x9f0] sm:$0xf0]  ;;  %v4921_v0 = vld [vmem:[%s7643_s1 + $0x724] sm:$0xf]  ;;  %v4264_v3 = vor.u32 %v4977_v55, %v4261_v56 }
  0x9b   :  { %2659 = vmatpush.bf16.msra.mxu1 %v3672_v23  ;;  %2672 = vmatpush.bf16.msra.mxu2 %v3800_v26  ;;  %v4517_v61 = vld [vmem:[%s7643_s1 + $0xaf0] sm:$0xf0]  ;;  %v4392_v5 = vor.u32 %v5009_v57, %v4389_v59  ;;  %v4973_v8 = vld [vmem:[%s7643_s1 + $0x8c4] sm:$0xf] }
  0x9c   :  { %2696 = vmatpush.bf16.msrb.mxu0 %v4088_v22  ;;  %v4037_v1 = vld [vmem:[%s7643_s1 + $0x730] sm:$0xf0]  ;;  %v4520_v7 = vor.u32 %v5041_v60, %v4517_v61  ;;  %v5005_v10 = vld [vmem:[%s7643_s1 + $0x9c4] sm:$0xf] }
  0x9d   :  { %2685 = vmatpush.bf16.msra.mxu3 %v3928_v33  ;;  %v4245_v9 = vld [vmem:[%s7643_s1 + $0x8d0] sm:$0xf0]  ;;  %v4040_v11 = vor.u32 %v4921_v0, %v4037_v1  ;;  %v5037_v13 = vld [vmem:[%s7643_s1 + $0xac4] sm:$0xf] }
  0x9e   :  { %v4373_v12 = vld [vmem:[%s7643_s1 + $0x9d0] sm:$0xf0]  ;;  %v4917_v15 = vld [vmem:[%s7643_s1 + $0x704] sm:$0xf]  ;;  %v4248_v17 = vor.u32 %v4973_v8, %v4245_v9 }
  0x9f   :  { %2660 = vmatpush.bf16.msra.mxu1 %v3656_v46  ;;  %2673 = vmatpush.bf16.msra.mxu2 %v3784_v47  ;;  %v4501_v14 = vld [vmem:[%s7643_s1 + $0xad0] sm:$0xf0]  ;;  %v5073_v18 = vld [vmem:[%s7643_s1 + $0xbe4] sm:$0xf]  ;;  %v4376_v22 = vor.u32 %v5005_v10, %v4373_v12 }
  0xa0   :  { %2697 = vmatpush.bf16.msrb.mxu0 %v4072_v40  ;;  %v4021_v16 = vld [vmem:[%s7643_s1 + $0x710] sm:$0xf0]  ;;  %v4504_v23 = vor.u32 %v5037_v13, %v4501_v14  ;;  %v4969_v26 = vld [vmem:[%s7643_s1 + $0x8a4] sm:$0xf] }
  0xa1   :  { %2686 = vmatpush.bf16.msra.mxu3 %v3912_v51  ;;  %v4645_v19 = vld [vmem:[%s7643_s1 + $0xbf0] sm:$0xf0]  ;;  %v5001_v29 = vld [vmem:[%s7643_s1 + $0x9a4] sm:$0xf]  ;;  %v4024_v31 = vor.u32 %v4917_v15, %v4021_v16 }
  0xa2   :  { %v4229_v28 = vld [vmem:[%s7643_s1 + $0x8b0] sm:$0xf0]  ;;  %v5033_v34 = vld [vmem:[%s7643_s1 + $0xaa4] sm:$0xf]  ;;  %v4648_v36 = vor.u32 %v5073_v18, %v4645_v19 }
  0xa3   :  { %2661 = vmatpush.bf16.msra.mxu1 %v3640_v62  ;;  %2674 = vmatpush.bf16.msra.mxu2 %v3768_v63  ;;  %v4357_v33 = vld [vmem:[%s7643_s1 + $0x9b0] sm:$0xf0]  ;;  %v4232_v37 = vor.u32 %v4969_v26, %v4229_v28  ;;  %v5069_v39 = vld [vmem:[%s7643_s1 + $0xbc4] sm:$0xf] }
  0xa4   :  { %2698 = vmatpush.bf16.msrb.mxu0 %v4056_v58  ;;  %v4485_v35 = vld [vmem:[%s7643_s1 + $0xab0] sm:$0xf0]  ;;  %v4360_v43 = vor.u32 %v5001_v29, %v4357_v33  ;;  %v4965_v46 = vld [vmem:[%s7643_s1 + $0x884] sm:$0xf] }
  0xa5   :  { %2687 = vmatpush.bf16.msra.mxu3 %v3896_v2  ;;  %v4629_v40 = vld [vmem:[%s7643_s1 + $0xbd0] sm:$0xf0]  ;;  %v4488_v45 = vor.u32 %v5033_v34, %v4485_v35  ;;  %v4997_v48 = vld [vmem:[%s7643_s1 + $0x984] sm:$0xf] }
  0xa6   :  { %2675 = vmatmul.bf16.vlgmr.msra.gmra.mxu2 %v5568_v44  ;;  %2662 = vmatmul.bf16.vlgmr.msra.gmra.mxu1 %v5564_v41  ;;  %v4213_v47 = vld [vmem:[%s7643_s1 + $0x890] sm:$0xf0]  ;;  %v5029_v50 = vld [vmem:[%s7643_s1 + $0xa84] sm:$0xf]  ;;  %v4632_v52 = vor.u32 %v5069_v39, %v4629_v40 }
  0xa7   :  { %2706 = vmatpush.bf16.msrb.mxu1 %v4264_v3  ;;  %2719 = vmatpush.bf16.msrb.mxu2 %v4392_v5  ;;  %v4341_v49 = vld [vmem:[%s7643_s1 + $0x990] sm:$0xf0]  ;;  %v4216_v53 = vor.u32 %v4965_v46, %v4213_v47  ;;  %v5065_v54 = vld [vmem:[%s7643_s1 + $0xba4] sm:$0xf] }
  0xa8   :  { %2699 = vmatpush.bf16.msrb.mxu0 %v4040_v11  ;;  %2688 = vmatmul.bf16.vlgmr.msra.gmra.mxu3 %v5556_v38  ;;  %v4469_v51 = vld [vmem:[%s7643_s1 + $0xa90] sm:$0xf0]  ;;  %v4344_v56 = vor.u32 %v4997_v48, %v4341_v49  ;;  %v4961_v58 = vld [vmem:[%s7643_s1 + $0x864] sm:$0xf]  ;;  %v6307_v35 = vpop.f32.mrf.mxu2 }
  0xa9   :  { %2732 = vmatpush.bf16.msrb.mxu3 %v4520_v7  ;;  %v4613_v55 = vld [vmem:[%s7643_s1 + $0xbb0] sm:$0xf0]  ;;  %v4472_v57 = vor.u32 %v5029_v50, %v4469_v51  ;;  %v4993_v60 = vld [vmem:[%s7643_s1 + $0x964] sm:$0xf] }
  0xaa   :  { %v4197_v59 = vld [vmem:[%s7643_s1 + $0x870] sm:$0xf0]  ;;  %v5025_v62 = vld [vmem:[%s7643_s1 + $0xa64] sm:$0xf]  ;;  %v4616_v0 = vor.u32 %v5065_v54, %v4613_v55  ;;  %v4724_v55 = vld [vmem:[%s7643_s1 + $0xf4] sm:$0xf0] }
  0xab   :  { %2707 = vmatpush.bf16.msrb.mxu1 %v4248_v17  ;;  %2720 = vmatpush.bf16.msrb.mxu2 %v4376_v22  ;;  %v4325_v61 = vld [vmem:[%s7643_s1 + $0x970] sm:$0xf0]  ;;  %v4200_v1 = vor.u32 %v4961_v58, %v4197_v59  ;;  %v5061_v2 = vld [vmem:[%s7643_s1 + $0xb84] sm:$0xf] }
  0xac   :  { %2700 = vmatpush.bf16.msrb.mxu0 %v4024_v31  ;;  %v4453_v63 = vld [vmem:[%s7643_s1 + $0xa70] sm:$0xf0]  ;;  %v4328_v5 = vor.u32 %v4993_v60, %v4325_v61  ;;  %v4957_v8 = vld [vmem:[%s7643_s1 + $0x844] sm:$0xf] }
  0xad   :  { %2733 = vmatpush.bf16.msrb.mxu3 %v4504_v23  ;;  %v4597_v3 = vld [vmem:[%s7643_s1 + $0xb90] sm:$0xf0]  ;;  %v4456_v7 = vor.u32 %v5025_v62, %v4453_v63  ;;  %v4989_v10 = vld [vmem:[%s7643_s1 + $0x944] sm:$0xf] }
  0xae   :  { %v4181_v9 = vld [vmem:[%s7643_s1 + $0x850] sm:$0xf0]  ;;  %v5021_v12 = vld [vmem:[%s7643_s1 + $0xa44] sm:$0xf]  ;;  %v4600_v14 = vor.u32 %v5061_v2, %v4597_v3  ;;  %v3227_v3 = vld [vmem:[%s7643_s1 + $0xc8] sm:$0xf] }
  0xaf   :  { %2708 = vmatpush.bf16.msrb.mxu1 %v4232_v37  ;;  %2721 = vmatpush.bf16.msrb.mxu2 %v4360_v43  ;;  %v4309_v11 = vld [vmem:[%s7643_s1 + $0x950] sm:$0xf0]  ;;  %v4184_v15 = vor.u32 %v4957_v8, %v4181_v9  ;;  %v5057_v16 = vld [vmem:[%s7643_s1 + $0xb64] sm:$0xf]  ;;  %v6285_v18 = vpop.f32.mrf.mxu0  ;;  %v6296_v29 = vpop.f32.mrf.mxu1 }
  0xb0   :  { %2745 = vmatpush.bf16.msra.mxu0 %v4648_v36  ;;  %v4437_v13 = vld [vmem:[%s7643_s1 + $0xa50] sm:$0xf0]  ;;  %v4312_v19 = vor.u32 %v4989_v10, %v4309_v11  ;;  %v4953_v23 = vld [vmem:[%s7643_s1 + $0x824] sm:$0xf]  ;;  %v6309_v37 = vpop.f32.mrf.mxu3  ;;  %v2470_v8 = vpop.f32.mrf.mxu2  ;;  %v4720_v10 = vld [vmem:[%s7643_s1 + $0xd4] sm:$0xf0] }
  0xb1   :  { %2734 = vmatpush.bf16.msrb.mxu3 %v4488_v45  ;;  %2701 = vmatmul.bf16.vlgmr.msrb.gmra.mxu0 %v5566_v42  ;;  %v4581_v17 = vld [vmem:[%s7643_s1 + $0xb70] sm:$0xf0]  ;;  %v4440_v22 = vor.u32 %v5021_v12, %v4437_v13  ;;  %v4985_v28 = vld [vmem:[%s7643_s1 + $0x924] sm:$0xf]  ;;  %v3355_v11 = vld [vmem:[%s7643_s1 + $0x1c8] sm:$0xf] }
  0xb2   :  { %v4165_v26 = vld [vmem:[%s7643_s1 + $0x830] sm:$0xf0]  ;;  %v5017_v33 = vld [vmem:[%s7643_s1 + $0xa24] sm:$0xf]  ;;  %v4584_v36 = vor.u32 %v5057_v16, %v4581_v17  ;;  %v4752_v12 = vld [vmem:[%s7643_s1 + $0x1d4] sm:$0xf0] }
  0xb3   :  { %2709 = vmatpush.bf16.msrb.mxu1 %v4216_v53  ;;  %2722 = vmatpush.bf16.msrb.mxu2 %v4344_v56  ;;  %v4293_v31 = vld [vmem:[%s7643_s1 + $0x930] sm:$0xf0]  ;;  %v4168_v39 = vor.u32 %v4953_v23, %v4165_v26  ;;  %v4949_v40 = vld [vmem:[%s7643_s1 + $0x804] sm:$0xf]  ;;  %v3243_v53 = vld [vmem:[%s7643_s1 + $0xe8] sm:$0xf]  ;;  %v3356_v23 = vor.u32 %v4752_v12, %v3355_v11 }
  0xb4   :  { %2746 = vmatpush.bf16.msra.mxu0 %v4632_v52  ;;  %v4421_v34 = vld [vmem:[%s7643_s1 + $0xa30] sm:$0xf0]  ;;  %v5053_v43 = vld [vmem:[%s7643_s1 + $0xb44] sm:$0xf]  ;;  %v4296_v46 = vor.u32 %v4985_v28, %v4293_v31  ;;  %v3371_v56 = vld [vmem:[%s7643_s1 + $0x1e8] sm:$0xf] }
  0xb5   :  { %2735 = vmatpush.bf16.msrb.mxu3 %v4472_v57  ;;  %v4565_v45 = vld [vmem:[%s7643_s1 + $0xb50] sm:$0xf0]  ;;  %v4424_v47 = vor.u32 %v5017_v33, %v4421_v34  ;;  %v4981_v49 = vld [vmem:[%s7643_s1 + $0x904] sm:$0xf]  ;;  %v4756_v57 = vld [vmem:[%s7643_s1 + $0x1f4] sm:$0xf0] }
  0xb6   :  { %v4149_v48 = vld [vmem:[%s7643_s1 + $0x810] sm:$0xf0]  ;;  %v5013_v51 = vld [vmem:[%s7643_s1 + $0xa04] sm:$0xf]  ;;  %v4568_v54 = vor.u32 %v5053_v43, %v4565_v45  ;;  %v3372_v2 = vor.u32 %v4756_v57, %v3371_v56  ;;  %v3499_v17 = vld [vmem:[%s7643_s1 + $0x2e8] sm:$0xf] }
  0xb7   :  { %2710 = vmatpush.bf16.msrb.mxu1 %v4200_v1  ;;  %2723 = vmatpush.bf16.msrb.mxu2 %v4328_v5  ;;  %v4277_v50 = vld [vmem:[%s7643_s1 + $0x910] sm:$0xf0]  ;;  %v4152_v58 = vor.u32 %v4949_v40, %v4149_v48  ;;  %v5049_v59 = vld [vmem:[%s7643_s1 + $0xb24] sm:$0xf]  ;;  %v2444_v61 = vpop.f32.mrf.mxu0  ;;  %v3244_v1 = vor.u32 %v4724_v55, %v3243_v53  ;;  %v3211_v26 = vld [vmem:[%s7643_s1 + $0xa8] sm:$0xf] }
  0xb8   :  { %2747 = vmatpush.bf16.msra.mxu0 %v4616_v0  ;;  %v4405_v52 = vld [vmem:[%s7643_s1 + $0xa10] sm:$0xf0]  ;;  %v4280_v62 = vor.u32 %v4981_v49, %v4277_v50  ;;  %v2457_v0 = vpop.f32.mrf.mxu1  ;;  %v5081_v5 = vld [vmem:[%s7643_s1 + $0xc24] sm:$0xf]  ;;  %v2483_v13 = vpop.f32.mrf.mxu3  ;;  %v4716_v34 = vld [vmem:[%s7643_s1 + $0xb4] sm:$0xf0] }
  0xb9   :  { %2736 = vmatpush.bf16.msrb.mxu3 %v4456_v7  ;;  %v4549_v60 = vld [vmem:[%s7643_s1 + $0xb30] sm:$0xf0]  ;;  %v4408_v63 = vor.u32 %v5013_v51, %v4405_v52  ;;  %v5077_v28 = vld [vmem:[%s7643_s1 + $0xc04] sm:$0xf]  ;;  %v3627_v43 = vld [vmem:[%s7643_s1 + $0x3e8] sm:$0xf]  ;;  %v3212_v50 = vor.u32 %v4716_v34, %v3211_v26 }
  0xba   :  { %v4677_v7 = vld [vmem:[%s7643_s1 + $0xc30] sm:$0xf0]  ;;  %v4552_v9 = vor.u32 %v5049_v59, %v4549_v60  ;;  %v4820_v45 = vld [vmem:[%s7643_s1 + $0x3f4] sm:$0xf0]  ;;  %v6419_v49 = vld [vmem:[%s7645_s2] sm:$0xf] }
  0xbb   :  { %2711 = vmatpush.bf16.msrb.mxu1 %v4184_v15  ;;  %2724 = vmatpush.bf16.msrb.mxu2 %v4312_v19  ;;  %v4533_v15 = vld [vmem:[%s7643_s1 + $0xb10] sm:$0xf0]  ;;  %v4680_v16 = vor.u32 %v5081_v5, %v4677_v7  ;;  %v4788_v19 = vld [vmem:[%s7643_s1 + $0x2f4] sm:$0xf0]  ;;  %v3195_v52 = vld [vmem:[%s7643_s1 + $0x88] sm:$0xf]  ;;  %v3628_v53 = vor.u32 %v4820_v45, %v3627_v43 }
  0xbc   :  { %2748 = vmatpush.bf16.msra.mxu0 %v4600_v14  ;;  %v5045_v14 = vld [vmem:[%s7643_s1 + $0xb04] sm:$0xf]  ;;  %v4661_v31 = vld [vmem:[%s7643_s1 + $0xc10] sm:$0xf0]  ;;  %v3500_v40 = vor.u32 %v4788_v19, %v3499_v17  ;;  %v4784_v48 = vld [vmem:[%s7643_s1 + $0x2d4] sm:$0xf0] }
  0xbd   :  { %2737 = vmatpush.bf16.msrb.mxu3 %v4440_v22  ;;  %v3228_v22 = vor.u32 %v4720_v10, %v3227_v3  ;;  %v4536_v33 = vor.u32 %v5045_v14, %v4533_v15  ;;  %v3323_v55 = vld [vmem:[%s7643_s1 + $0x188] sm:$0xf]  ;;  %v4744_v56 = vld [vmem:[%s7643_s1 + $0x194] sm:$0xf0] }
  0xbe   :  { %v4816_v59 = vld [vmem:[%s7643_s1 + $0x3d4] sm:$0xf0]  ;;  %v3467_v60 = vld [vmem:[%s7643_s1 + $0x2a8] sm:$0xf]  ;;  %v3324_v0 = vor.u32 %v4744_v56, %v3323_v55 }
  0xbf   :  { %2712 = vmatpush.bf16.msrb.mxu1 %v4168_v39  ;;  %2725 = vmatpush.bf16.msrb.mxu2 %v4296_v46  ;;  %v4748_v39 = vld [vmem:[%s7643_s1 + $0x1b4] sm:$0xf0]  ;;  %v4664_v46 = vor.u32 %v5077_v28, %v4661_v31  ;;  %v3307_v5 = vld [vmem:[%s7643_s1 + $0x168] sm:$0xf] }
  0xc0   :  { %2749 = vmatpush.bf16.msra.mxu0 %v4584_v36  ;;  %v3339_v36 = vld [vmem:[%s7643_s1 + $0x1a8] sm:$0xf]  ;;  %v4780_v61 = vld [vmem:[%s7643_s1 + $0x2b4] sm:$0xf0] }
  0xc1   :  { %2738 = vmatpush.bf16.msrb.mxu3 %v4424_v47  ;;  %v3483_v47 = vld [vmem:[%s7643_s1 + $0x2c8] sm:$0xf]  ;;  %v3340_v51 = vor.u32 %v4748_v39, %v3339_v36  ;;  %v4708_v3 = vld [vmem:[%s7643_s1 + $0x74] sm:$0xf0] }
  0xc2   :  { %v3484_v57 = vor.u32 %v4784_v48, %v3483_v47  ;;  %v4740_v7 = vld [vmem:[%s7643_s1 + $0x174] sm:$0xf0]  ;;  %v3595_v10 = vld [vmem:[%s7643_s1 + $0x3a8] sm:$0xf] }
  0xc3   :  { %2713 = vmatpush.bf16.msrb.mxu1 %v4152_v58  ;;  %2726 = vmatpush.bf16.msrb.mxu2 %v4280_v62  ;;  %v3611_v58 = vld [vmem:[%s7643_s1 + $0x3c8] sm:$0xf]  ;;  %v416_v62 = vperm.slane %v6419_v49, 0  ;;  %v6459_v8 = vpop.f32.mrf.mxu0  ;;  %v4812_v12 = vld [vmem:[%s7643_s1 + $0x3b4] sm:$0xf0] }
  0xc4   :  { %2750 = vmatpush.bf16.msra.mxu0 %v4568_v54  ;;  %v4712_v54 = vld [vmem:[%s7643_s1 + $0x94] sm:$0xf0]  ;;  %v3451_v13 = vld [vmem:[%s7643_s1 + $0x288] sm:$0xf]  ;;  %v3596_v28 = vor.u32 %v4812_v12, %v3595_v10 }
  0xc5   :  { %2739 = vmatpush.bf16.msrb.mxu3 %v4408_v63  ;;  %v3196_v63 = vor.u32 %v4712_v54, %v3195_v52  ;;  %v6464_v11 = vpop.f32.mrf.mxu1  ;;  %v4776_v14 = vld [vmem:[%s7643_s1 + $0x294] sm:$0xf0]  ;;  %v3163_v17 = vld [vmem:[%s7643_s1 + $0x48] sm:$0xf]  ;;  %v2443_v19 = vadd.f32 %v6285_v18, %v416_v62 }
  0xc6   :  { %2714 = vmatmul.bf16.vlgmr.msrb.gmra.mxu1 %v5757_v24  ;;  %2727 = vmatmul.bf16.vlgmr.msrb.gmra.mxu2 %v5770_v30  ;;  %v4736_v26 = vld [vmem:[%s7643_s1 + $0x154] sm:$0xf0]  ;;  %v3452_v31 = vor.u32 %v4776_v14, %v3451_v13  ;;  %v3579_v18 = vld [vmem:[%s7643_s1 + $0x388] sm:$0xf] }
  0xc7   :  { %2771 = vmatpush.bf16.msra.mxu2 %v3244_v1  ;;  %2764 = vmatpush.bf16.msra.mxu1 %v4680_v16  ;;  %v3179_v1 = vld [vmem:[%s7643_s1 + $0x68] sm:$0xf]  ;;  %v3308_v16 = vor.u32 %v4740_v7, %v3307_v5  ;;  %v4808_v34 = vld [vmem:[%s7643_s1 + $0x394] sm:$0xf0]  ;;  %v2456_v47 = vadd.f32 %v6296_v29, %v2443_v19 }
  0xc8   :  { %2751 = vmatpush.bf16.msra.mxu0 %v4552_v9  ;;  %2740 = vmatmul.bf16.vlgmr.msrb.gmra.mxu3 %v5759_v25  ;;  %v3468_v9 = vor.u32 %v4780_v61, %v3467_v60  ;;  %v3180_v15 = vor.u32 %v4708_v3, %v3179_v1  ;;  %v3435_v39 = vld [vmem:[%s7643_s1 + $0x268] sm:$0xf]  ;;  %v4700_v48 = vld [vmem:[%s7643_s1 + $0x34] sm:$0xf0] }
  0xc9   :  { %2784 = vmatpush.bf16.msra.mxu3 %v3372_v2  ;;  %v3612_v2 = vor.u32 %v4816_v59, %v3611_v58  ;;  %v3563_v54 = vld [vmem:[%s7643_s1 + $0x368] sm:$0xf]  ;;  %v4804_v56 = vld [vmem:[%s7643_s1 + $0x374] sm:$0xf0] }
  0xca   :  { %v4768_v58 = vld [vmem:[%s7643_s1 + $0x254] sm:$0xf0]  ;;  %v3131_v61 = vld [vmem:[%s7643_s1 + $0x8] sm:$0xf]  ;;  %v3564_v5 = vor.u32 %v4804_v56, %v3563_v54 }
  0xcb   :  { %2772 = vmatpush.bf16.msra.mxu2 %v3228_v22  ;;  %2765 = vmatpush.bf16.msra.mxu1 %v4664_v46  ;;  %v4704_v22 = vld [vmem:[%s7643_s1 + $0x54] sm:$0xf0]  ;;  %v3147_v46 = vld [vmem:[%s7643_s1 + $0x28] sm:$0xf]  ;;  %v2496_v52 = vpop.f32.mrf.mxu0 }
  0xcc   :  { %2752 = vmatpush.bf16.msra.mxu0 %v4536_v33  ;;  %v6488_v33 = vpop.f32.mrf.mxu2  ;;  %v6496_v36 = vpop.f32.mrf.mxu3  ;;  %v3164_v43 = vor.u32 %v4704_v22, %v3163_v17  ;;  %v3148_v59 = vor.u32 %v4700_v48, %v3147_v46  ;;  %v4696_v62 = vld [vmem:[%s7643_s1 + $0x14] sm:$0xf0]  ;;  %v3547_v10 = vld [vmem:[%s7643_s1 + $0x348] sm:$0xf] }
  0xcd   :  { %2785 = vmatpush.bf16.msra.mxu3 %v3356_v23  ;;  %v3291_v23 = vld [vmem:[%s7643_s1 + $0x148] sm:$0xf]  ;;  %v2509_v55 = vpop.f32.mrf.mxu1  ;;  %v4728_v1 = vld [vmem:[%s7643_s1 + $0x114] sm:$0xf0]  ;;  %v3132_v17 = vor.u32 %v4696_v62, %v3131_v61 }
  0xce   :  { %v3292_v45 = vor.u32 %v4736_v26, %v3291_v23  ;;  %v4852_v3 = vld [vmem:[%s7643_s1 + $0x4f4] sm:$0xf0]  ;;  %v3403_v14 = vld [vmem:[%s7643_s1 + $0x228] sm:$0xf] }
  0xcf   :  { %2773 = vmatpush.bf16.msra.mxu2 %v3212_v50  ;;  %2810 = vmatpush.bf16.msrb.mxu1 %v3628_v53  ;;  %v3275_v50 = vld [vmem:[%s7643_s1 + $0x128] sm:$0xf]  ;;  %v3580_v53 = vor.u32 %v4808_v34, %v3579_v18  ;;  %v4800_v13 = vld [vmem:[%s7643_s1 + $0x354] sm:$0xf0] }
  0xd0   :  { %2797 = vmatpush.bf16.msrb.mxu0 %v3500_v40  ;;  %v4772_v40 = vld [vmem:[%s7643_s1 + $0x274] sm:$0xf0]  ;;  %v3548_v18 = vor.u32 %v4800_v13, %v3547_v10  ;;  %v3995_v62 = vld [vmem:[%s7643_s1 + $0x6c8] sm:$0xf] }
  0xd1   :  { %2786 = vmatpush.bf16.msra.mxu3 %v3340_v51  ;;  %2753 = vmatmul.bf16.vlgmr.msra.gmra.mxu0 %v5775_v32  ;;  %v4732_v51 = vld [vmem:[%s7643_s1 + $0x134] sm:$0xf0]  ;;  %v3436_v29 = vor.u32 %v4772_v40, %v3435_v39  ;;  %v3867_v39 = vld [vmem:[%s7643_s1 + $0x5c8] sm:$0xf] }
  0xd2   :  { %v3276_v60 = vor.u32 %v4732_v51, %v3275_v50  ;;  %v3531_v40 = vld [vmem:[%s7643_s1 + $0x328] sm:$0xf]  ;;  %v4760_v46 = vld [vmem:[%s7643_s1 + $0x214] sm:$0xf0] }
  0xd3   :  { %2774 = vmatpush.bf16.msra.mxu2 %v3196_v63  ;;  %2811 = vmatpush.bf16.msrb.mxu1 %v3612_v2  ;;  %v3259_v63 = vld [vmem:[%s7643_s1 + $0x108] sm:$0xf]  ;;  %v4916_v48 = vld [vmem:[%s7643_s1 + $0x6f4] sm:$0xf0] }
  0xd4   :  { %2798 = vmatpush.bf16.msrb.mxu0 %v3484_v57  ;;  %v3419_v57 = vld [vmem:[%s7643_s1 + $0x248] sm:$0xf]  ;;  %v2522_v12 = vpop.f32.mrf.mxu2  ;;  %v3260_v19 = vor.u32 %v4728_v1, %v3259_v63  ;;  %v4844_v55 = vld [vmem:[%s7643_s1 + $0x4b4] sm:$0xf0] }
  0xd5   :  { %2787 = vmatpush.bf16.msra.mxu3 %v3324_v0  ;;  %v2469_v0 = vadd.f32 %v6307_v35, %v2456_v47  ;;  %v3755_v2 = vld [vmem:[%s7643_s1 + $0x4e8] sm:$0xf]  ;;  %v3420_v7 = vor.u32 %v4768_v58, %v3419_v57  ;;  %v4876_v56 = vld [vmem:[%s7643_s1 + $0x5b4] sm:$0xf0] }
  0xd6   :  { %4690 = vmatmul.msk.bf16.vlgmr.msra.gmra.mxu1 %vm2429_vm0, %v5874_v27  ;;  %v3883_v35 = vld [vmem:[%s7643_s1 + $0x5e8] sm:$0xf]  ;;  %v3756_v23 = vor.u32 %v4852_v3, %v3755_v2  ;;  %v4948_v61 = vld [vmem:[%s7643_s1 + $0x7f4] sm:$0xf0] }
  0xd7   :  { %2775 = vmatpush.bf16.msra.mxu2 %v3180_v15  ;;  %2812 = vmatpush.bf16.msrb.mxu1 %v3596_v28  ;;  %v4764_v15 = vld [vmem:[%s7643_s1 + $0x234] sm:$0xf0]  ;;  %v2482_v22 = vadd.f32 %v6309_v37, %v2469_v0  ;;  %v3739_v28 = vld [vmem:[%s7643_s1 + $0x4c8] sm:$0xf] }
  0xd8   :  { %2799 = vmatpush.bf16.msrb.mxu0 %v3468_v9  ;;  %v4884_v9 = vld [vmem:[%s7643_s1 + $0x5f4] sm:$0xf0]  ;;  %v3404_v34 = vor.u32 %v4764_v15, %v3403_v14  ;;  %v4011_v47 = vld [vmem:[%s7643_s1 + $0x6e8] sm:$0xf] }
  0xd9   :  { %2788 = vmatpush.bf16.msra.mxu3 %v3308_v16  ;;  %v2535_v16 = vpop.f32.mrf.mxu3  ;;  %v3884_v26 = vor.u32 %v4884_v9, %v3883_v35  ;;  %v4880_v37 = vld [vmem:[%s7643_s1 + $0x5d4] sm:$0xf0]  ;;  %v2495_v50 = vadd.f32 %v6459_v8, %v2482_v22  ;;  %v3851_v8 = vld [vmem:[%s7643_s1 + $0x5a8] sm:$0xf]  ;;  %v4012_v57 = vor.u32 %v4916_v48, %v4011_v47 }
  0xda   :  { %v3868_v52 = vor.u32 %v4880_v37, %v3867_v39  ;;  %v3515_v58 = vld [vmem:[%s7643_s1 + $0x308] sm:$0xf]  ;;  %v4912_v63 = vld [vmem:[%s7643_s1 + $0x6d4] sm:$0xf0]  ;;  %v3852_v2 = vor.u32 %v4876_v56, %v3851_v8 }
  0xdb   :  { %2776 = vmatpush.bf16.msra.mxu2 %v3164_v43  ;;  %2813 = vmatpush.bf16.msrb.mxu1 %v3580_v53  ;;  %v4796_v43 = vld [vmem:[%s7643_s1 + $0x334] sm:$0xf0]  ;;  %v3723_v53 = vld [vmem:[%s7643_s1 + $0x4a8] sm:$0xf]  ;;  %v2508_v0 = vadd.f32 %v6464_v11, %v2495_v50  ;;  %v3996_v10 = vor.u32 %v4912_v63, %v3995_v62 }
  0xdc   :  { %2800 = vmatpush.bf16.msrb.mxu0 %v3452_v31  ;;  %v4848_v31 = vld [vmem:[%s7643_s1 + $0x4d4] sm:$0xf0]  ;;  %v3724_v1 = vor.u32 %v4844_v55, %v3723_v53  ;;  %v3707_v3 = vld [vmem:[%s7643_s1 + $0x488] sm:$0xf] }
  0xdd   :  { %2789 = vmatpush.bf16.msra.mxu3 %v3292_v45  ;;  %v3387_v45 = vld [vmem:[%s7643_s1 + $0x208] sm:$0xf]  ;;  %v3740_v51 = vor.u32 %v4848_v31, %v3739_v28  ;;  %v4872_v11 = vld [vmem:[%s7643_s1 + $0x594] sm:$0xf0]  ;;  %v2521_v16 = vadd.f32 %v6488_v33, %v2508_v0 }
  0xde   :  { %v3388_v54 = vor.u32 %v4760_v46, %v3387_v45  ;;  %v3835_v35 = vld [vmem:[%s7643_s1 + $0x588] sm:$0xf]  ;;  %v4944_v13 = vld [vmem:[%s7643_s1 + $0x7d4] sm:$0xf0] }
  0xdf   :  { %2777 = vmatpush.bf16.msra.mxu2 %v3148_v59  ;;  %2814 = vmatpush.bf16.msrb.mxu1 %v3564_v5  ;;  %v4792_v59 = vld [vmem:[%s7643_s1 + $0x314] sm:$0xf0]  ;;  %v4123_v12 = vld [vmem:[%s7643_s1 + $0x7c8] sm:$0xf]  ;;  %v2534_v45 = vadd.f32 %v6496_v36, %v2521_v16 }
  0xe0   :  { %2801 = vmatpush.bf16.msrb.mxu0 %v3436_v29  ;;  %v3532_v29 = vor.u32 %v4796_v43, %v3531_v40  ;;  %v3516_v5 = vor.u32 %v4792_v59, %v3515_v58  ;;  %v3979_v14 = vld [vmem:[%s7643_s1 + $0x6a8] sm:$0xf]  ;;  %v4908_v15 = vld [vmem:[%s7643_s1 + $0x6b4] sm:$0xf0] }
  0xe1   :  { %2790 = vmatpush.bf16.msra.mxu3 %v3276_v60  ;;  %v4139_v60 = vld [vmem:[%s7643_s1 + $0x7e8] sm:$0xf]  ;;  %v4868_v33 = vld [vmem:[%s7643_s1 + $0x574] sm:$0xf0] }
  0xe2   :  { %v4140_v9 = vor.u32 %v4948_v61, %v4139_v60  ;;  %v3691_v22 = vld [vmem:[%s7643_s1 + $0x468] sm:$0xf]  ;;  %v4940_v37 = vld [vmem:[%s7643_s1 + $0x7b4] sm:$0xf0] }
  0xe3   :  { %2778 = vmatpush.bf16.msra.mxu2 %v3132_v17  ;;  %2815 = vmatpush.bf16.msrb.mxu1 %v3548_v18  ;;  %v3819_v28 = vld [vmem:[%s7643_s1 + $0x568] sm:$0xf]  ;;  %v4124_v18 = vor.u32 %v4944_v13, %v4123_v12  ;;  %v4904_v43 = vld [vmem:[%s7643_s1 + $0x694] sm:$0xf0] }
  0xe4   :  { %2802 = vmatpush.bf16.msrb.mxu0 %v3420_v7  ;;  %v4840_v7 = vld [vmem:[%s7643_s1 + $0x494] sm:$0xf0]  ;;  %v4107_v39 = vld [vmem:[%s7643_s1 + $0x7a8] sm:$0xf]  ;;  %v3820_v47 = vor.u32 %v4868_v33, %v3819_v28 }
  0xe5   :  { %2791 = vmatpush.bf16.msra.mxu3 %v3260_v19  ;;  %v3708_v17 = vor.u32 %v4840_v7, %v3707_v3  ;;  %v3836_v19 = vor.u32 %v4872_v11, %v3835_v35  ;;  %v2559_v31 = vpop.f32.mrf.mxu1  ;;  %v3963_v40 = vld [vmem:[%s7643_s1 + $0x688] sm:$0xf]  ;;  %v4832_v50 = vld [vmem:[%s7643_s1 + $0x454] sm:$0xf0]  ;;  %v4108_v53 = vor.u32 %v4940_v37, %v4107_v39 }
  0xe6   :  { %2779 = vmatmul.bf16.vlgmr.msra.gmra.mxu2 %v5405_v20  ;;  %v3675_v48 = vld [vmem:[%s7643_s1 + $0x448] sm:$0xf]  ;;  %v4864_v36 = vld [vmem:[%s7643_s1 + $0x554] sm:$0xf0] }
  0xe7   :  { %2823 = vmatpush.bf16.msrb.mxu2 %v3756_v23  ;;  %2816 = vmatpush.bf16.msrb.mxu1 %v3532_v29  ;;  %v2546_v23 = vpop.f32.mrf.mxu0  ;;  %v3964_v29 = vor.u32 %v4904_v43, %v3963_v40  ;;  %v4936_v8 = vld [vmem:[%s7643_s1 + $0x794] sm:$0xf0]  ;;  %v3947_v56 = vld [vmem:[%s7643_s1 + $0x668] sm:$0xf]  ;;  %v3676_v58 = vor.u32 %v4832_v50, %v3675_v48 }
  0xe8   :  { %2803 = vmatpush.bf16.msrb.mxu0 %v3404_v34  ;;  %2792 = vmatmul.bf16.vlgmr.msra.gmra.mxu3 %v5408_v21  ;;  %v3980_v34 = vor.u32 %v4908_v15, %v3979_v14  ;;  %v3659_v60 = vld [vmem:[%s7643_s1 + $0x428] sm:$0xf]  ;;  %v4828_v63 = vld [vmem:[%s7643_s1 + $0x434] sm:$0xf0] }
  0xe9   :  { %2836 = vmatpush.bf16.msrb.mxu3 %v3884_v26  ;;  %v4836_v26 = vld [vmem:[%s7643_s1 + $0x474] sm:$0xf0]  ;;  %v2572_v55 = vpop.f32.mrf.mxu2  ;;  %v3787_v0 = vld [vmem:[%s7643_s1 + $0x528] sm:$0xf]  ;;  %v3660_v13 = vor.u32 %v4828_v63, %v3659_v60 }
  0xea   :  { %v3692_v46 = vor.u32 %v4836_v26, %v3691_v22  ;;  %v4075_v7 = vld [vmem:[%s7643_s1 + $0x768] sm:$0xf]  ;;  %v4932_v11 = vld [vmem:[%s7643_s1 + $0x774] sm:$0xf0] }
  0xeb   :  { %2824 = vmatpush.bf16.msrb.mxu2 %v3740_v51  ;;  %2817 = vmatpush.bf16.msrb.mxu1 %v3516_v5  ;;  %v3803_v51 = vld [vmem:[%s7643_s1 + $0x548] sm:$0xf]  ;;  %v4824_v16 = vld [vmem:[%s7643_s1 + $0x414] sm:$0xf0]  ;;  %v4076_v26 = vor.u32 %v4932_v11, %v4075_v7 }
  0xec   :  { %2804 = vmatpush.bf16.msrb.mxu0 %v3388_v54  ;;  %v4091_v54 = vld [vmem:[%s7643_s1 + $0x788] sm:$0xf]  ;;  %v3804_v59 = vor.u32 %v4864_v36, %v3803_v51  ;;  %v4892_v37 = vld [vmem:[%s7643_s1 + $0x634] sm:$0xf0] }
  0xed   :  { %2837 = vmatpush.bf16.msrb.mxu3 %v3868_v52  ;;  %v2547_v52 = vadd.f32 %v2546_v23, %v2534_v45  ;;  %v2585_v62 = vpop.f32.mrf.mxu3  ;;  %v4092_v3 = vor.u32 %v4936_v8, %v4091_v54  ;;  %v2561_v35 = vpop.f32.mrf.mxu1  ;;  %v3643_v15 = vld [vmem:[%s7643_s1 + $0x408] sm:$0xf]  ;;  %v4980_v23 = vld [vmem:[%s7643_s1 + $0x8f4] sm:$0xf0] }
  0xee   :  { %2818 = vmatmul.bf16.vlgmr.msrb.gmra.mxu1 %v5378_v6  ;;  %v4267_v22 = vld [vmem:[%s7643_s1 + $0x8e8] sm:$0xf]  ;;  %v3644_v45 = vor.u32 %v4824_v16, %v3643_v15  ;;  %v4976_v36 = vld [vmem:[%s7643_s1 + $0x8d4] sm:$0xf0] }
  0xef   :  { %2825 = vmatpush.bf16.msrb.mxu2 %v3724_v1  ;;  %2805 = vmatmul.bf16.vlgmr.msrb.gmra.mxu0 %v5373_v4  ;;  %v2548_v61 = vpop.f32.mrf.mxu0  ;;  %v4860_v1 = vld [vmem:[%s7643_s1 + $0x534] sm:$0xf0]  ;;  %v4395_v33 = vld [vmem:[%s7643_s1 + $0x9e8] sm:$0xf]  ;;  %v4268_v48 = vor.u32 %v4980_v23, %v4267_v22 }
  0xf0   :  { %2849 = vmatpush.bf16.msra.mxu0 %v4012_v57  ;;  %2862 = vmatpush.bf16.msra.mxu1 %v4140_v9  ;;  %v4900_v57 = vld [vmem:[%s7643_s1 + $0x674] sm:$0xf0]  ;;  %v3931_v9 = vld [vmem:[%s7643_s1 + $0x648] sm:$0xf]  ;;  %v3788_v14 = vor.u32 %v4860_v1, %v3787_v0 }
  0xf1   :  { %2838 = vmatpush.bf16.msrb.mxu3 %v3852_v2  ;;  %v2560_v2 = vadd.f32 %v2559_v31, %v2547_v52  ;;  %v3948_v5 = vor.u32 %v4900_v57, %v3947_v56  ;;  %v5012_v31 = vld [vmem:[%s7643_s1 + $0x9f4] sm:$0xf0]  ;;  %v3915_v39 = vld [vmem:[%s7643_s1 + $0x628] sm:$0xf]  ;;  %v2574_v40 = vpop.f32.mrf.mxu2 }
  0xf2   :  { %v4396_v50 = vor.u32 %v5012_v31, %v4395_v33  ;;  %v4251_v51 = vld [vmem:[%s7643_s1 + $0x8c8] sm:$0xf]  ;;  %v3916_v54 = vor.u32 %v4892_v37, %v3915_v39  ;;  %v5008_v8 = vld [vmem:[%s7643_s1 + $0x9d4] sm:$0xf0] }
  0xf3   :  { %2826 = vmatpush.bf16.msrb.mxu2 %v3708_v17  ;;  %v2573_v12 = vadd.f32 %v2572_v55, %v2560_v2  ;;  %v3771_v17 = vld [vmem:[%s7643_s1 + $0x508] sm:$0xf]  ;;  %v4924_v57 = vld [vmem:[%s7643_s1 + $0x734] sm:$0xf0]  ;;  %v4252_v63 = vor.u32 %v4976_v36, %v4251_v51 }
  0xf4   :  { %2850 = vmatpush.bf16.msra.mxu0 %v3996_v10  ;;  %2863 = vmatpush.bf16.msra.mxu1 %v4124_v18  ;;  %v4896_v10 = vld [vmem:[%s7643_s1 + $0x654] sm:$0xf0]  ;;  %v4059_v18 = vld [vmem:[%s7643_s1 + $0x748] sm:$0xf] }
  0xf5   :  { %2839 = vmatpush.bf16.msrb.mxu3 %v3836_v19  ;;  %v4856_v19 = vld [vmem:[%s7643_s1 + $0x514] sm:$0xf0]  ;;  %v3932_v28 = vor.u32 %v4896_v10, %v3931_v9  ;;  %v2586_v43 = vadd.f32 %v2585_v62, %v2573_v12  ;;  %v2587_v52 = vpop.f32.mrf.mxu3  ;;  %v4379_v55 = vld [vmem:[%s7643_s1 + $0x9c8] sm:$0xf] }
  0xf6   :  { %v4043_v56 = vld [vmem:[%s7643_s1 + $0x728] sm:$0xf]  ;;  %v5044_v62 = vld [vmem:[%s7643_s1 + $0xaf4] sm:$0xf0]  ;;  %v4380_v0 = vor.u32 %v5008_v8, %v4379_v55 }
  0xf7   :  { %2827 = vmatpush.bf16.msrb.mxu2 %v3692_v46  ;;  %v3772_v46 = vor.u32 %v4856_v19, %v3771_v17  ;;  %v4523_v61 = vld [vmem:[%s7643_s1 + $0xae8] sm:$0xf]  ;;  %v4044_v2 = vor.u32 %v4924_v57, %v4043_v56  ;;  %v5004_v35 = vld [vmem:[%s7643_s1 + $0x9b4] sm:$0xf0] }
  0xf8   :  { %2851 = vmatpush.bf16.msra.mxu0 %v3980_v34  ;;  %2864 = vmatpush.bf16.msra.mxu1 %v4108_v53  ;;  %v4928_v34 = vld [vmem:[%s7643_s1 + $0x754] sm:$0xf0]  ;;  %v4235_v1 = vld [vmem:[%s7643_s1 + $0x8a8] sm:$0xf]  ;;  %v4524_v11 = vor.u32 %v5044_v62, %v4523_v61 }
  0xf9   :  { %2840 = vmatpush.bf16.msrb.mxu3 %v3820_v47  ;;  %v2598_v47 = vpop.f32.mrf.mxu0  ;;  %v4363_v7 = vld [vmem:[%s7643_s1 + $0x9a8] sm:$0xf]  ;;  %v4920_v10 = vld [vmem:[%s7643_s1 + $0x714] sm:$0xf0] }
  0xfa   :  { %v2599_v53 = vadd.f32 %v2598_v47, %v2586_v43  ;;  %v4027_v9 = vld [vmem:[%s7643_s1 + $0x708] sm:$0xf]  ;;  %v5040_v15 = vld [vmem:[%s7643_s1 + $0xad4] sm:$0xf0]  ;;  %v4364_v17 = vor.u32 %v5004_v35, %v4363_v7 }
  0xfb   :  { %2828 = vmatpush.bf16.msrb.mxu2 %v3676_v58  ;;  %v3899_v58 = vld [vmem:[%s7643_s1 + $0x608] sm:$0xf]  ;;  %v4028_v23 = vor.u32 %v4920_v10, %v4027_v9  ;;  %v5000_v33 = vld [vmem:[%s7643_s1 + $0x994] sm:$0xf0] }
  0xfc   :  { %2852 = vmatpush.bf16.msra.mxu0 %v3964_v29  ;;  %2865 = vmatpush.bf16.msra.mxu1 %v4092_v3  ;;  %v4060_v29 = vor.u32 %v4928_v34, %v4059_v18  ;;  %v3109_v60 = vmax.f32 %v2599_v53, 0.0  ;;  %v4651_v12 = vld [vmem:[%s7643_s1 + $0xbe8] sm:$0xf]  ;;  %v5072_v39 = vld [vmem:[%s7643_s1 + $0xbd4] sm:$0xf0] }
  0xfd   :  { %2841 = vmatpush.bf16.msrb.mxu3 %v3804_v59  ;;  %v4888_v59 = vld [vmem:[%s7643_s1 + $0x614] sm:$0xf0]  ;;  %v4219_v19 = vld [vmem:[%s7643_s1 + $0x888] sm:$0xf] }
  0xfe   :  { %3113 = vst [vmem:[%s7646_s3] sm:$0xff] %v3109_v60  ;;  %v3900_v3 = vor.u32 %v4888_v59, %v3899_v58  ;;  %v4635_v34 = vld [vmem:[%s7643_s1 + $0xbc8] sm:$0xf]  ;;  %v5036_v40 = vld [vmem:[%s7643_s1 + $0xab4] sm:$0xf0] }
  0xff   :  { %2829 = vmatpush.bf16.msrb.mxu2 %v3660_v13  ;;  %v5076_v13 = vld [vmem:[%s7643_s1 + $0xbf4] sm:$0xf0]  ;;  %v4491_v37 = vld [vmem:[%s7643_s1 + $0xaa8] sm:$0xf]  ;;  %v4636_v36 = vor.u32 %v5072_v39, %v4635_v34  ;;  %v4722_v39 = vld [vmem:[%s7643_s1 + $0xec] sm:$0xf] }
 0x100   :  { %2853 = vmatpush.bf16.msra.mxu0 %v3948_v5  ;;  %2866 = vmatpush.bf16.msra.mxu1 %v4076_v26  ;;  %v4972_v5 = vld [vmem:[%s7643_s1 + $0x8b4] sm:$0xf0]  ;;  %v4652_v31 = vor.u32 %v5076_v13, %v4651_v12  ;;  %v4492_v52 = vor.u32 %v5036_v40, %v4491_v37  ;;  %v4619_v53 = vld [vmem:[%s7643_s1 + $0xba8] sm:$0xf]  ;;  %v3245_v37 = vld [vmem:[%s7643_s1 + $0xf8] sm:$0xf0] }
 0x101   :  { %2842 = vmatpush.bf16.msrb.mxu3 %v3788_v14  ;;  %v4507_v14 = vld [vmem:[%s7643_s1 + $0xac8] sm:$0xf]  ;;  %v4236_v16 = vor.u32 %v4972_v5, %v4235_v1  ;;  %v2600_v22 = vpop.f32.mrf.mxu0  ;;  %v4968_v26 = vld [vmem:[%s7643_s1 + $0x894] sm:$0xf0] }
 0x102   :  { %v4508_v18 = vor.u32 %v5040_v15, %v4507_v14  ;;  %v4220_v43 = vor.u32 %v4968_v26, %v4219_v19  ;;  %v4964_v47 = vld [vmem:[%s7643_s1 + $0x874] sm:$0xf0]  ;;  %v4187_v57 = vld [vmem:[%s7643_s1 + $0x848] sm:$0xf] }
 0x103   :  { %2830 = vmatpush.bf16.msrb.mxu2 %v3644_v45  ;;  %v6871_v51 = vpop.f32.mrf.mxu1  ;;  %v5032_v55 = vld [vmem:[%s7643_s1 + $0xa94] sm:$0xf0]  ;;  %v4315_v59 = vld [vmem:[%s7643_s1 + $0x948] sm:$0xf] }
 0x104   :  { %2854 = vmatpush.bf16.msra.mxu0 %v3932_v28  ;;  %2867 = vmatpush.bf16.msra.mxu1 %v4060_v29  ;;  %v4347_v28 = vld [vmem:[%s7643_s1 + $0x988] sm:$0xf]  ;;  %v5068_v29 = vld [vmem:[%s7643_s1 + $0xbb4] sm:$0xf0] }
 0x105   :  { %2843 = vmatpush.bf16.msrb.mxu3 %v3772_v46  ;;  %v4348_v45 = vor.u32 %v5000_v33, %v4347_v28  ;;  %v4203_v46 = vld [vmem:[%s7643_s1 + $0x868] sm:$0xf]  ;;  %v4960_v58 = vld [vmem:[%s7643_s1 + $0x854] sm:$0xf0]  ;;  %v4620_v61 = vor.u32 %v5068_v29, %v4619_v53 }
 0x106   :  { %2831 = vmatmul.bf16.vlgmr.msrb.gmra.mxu2 %v5564_v41  ;;  %v4204_v8 = vor.u32 %v4964_v47, %v4203_v46  ;;  %v4992_v60 = vld [vmem:[%s7643_s1 + $0x954] sm:$0xf0]  ;;  %v4459_v1 = vld [vmem:[%s7643_s1 + $0xa68] sm:$0xf] }
 0x107   :  { %2875 = vmatpush.bf16.msra.mxu2 %v4268_v48  ;;  %v4331_v48 = vld [vmem:[%s7643_s1 + $0x968] sm:$0xf]  ;;  %v4316_v5 = vor.u32 %v4992_v60, %v4315_v59  ;;  %v4988_v10 = vld [vmem:[%s7643_s1 + $0x934] sm:$0xf0] }
 0x108   :  { %2855 = vmatpush.bf16.msra.mxu0 %v3916_v54  ;;  %2844 = vmatmul.bf16.vlgmr.msrb.gmra.mxu3 %v5568_v44  ;;  %v4475_v54 = vld [vmem:[%s7643_s1 + $0xa88] sm:$0xf]  ;;  %v5060_v19 = vld [vmem:[%s7643_s1 + $0xb74] sm:$0xf0] }
 0x109   :  { %2888 = vmatpush.bf16.msra.mxu3 %v4396_v50  ;;  %2868 = vmatpush.bf16.msra.mxu1 %v4044_v2  ;;  %v4996_v50 = vld [vmem:[%s7643_s1 + $0x974] sm:$0xf0]  ;;  %v4476_v62 = vor.u32 %v5032_v55, %v4475_v54  ;;  %v4171_v7 = vld [vmem:[%s7643_s1 + $0x828] sm:$0xf]  ;;  %v6913_v35 = vpop.f32.mrf.mxu2  ;;  %v3248_v54 = vor.u32 %v4722_v39, %v3245_v37  ;;  %v4750_v39 = vld [vmem:[%s7643_s1 + $0x1cc] sm:$0xf] }
 0x10a   :  { %v4332_v56 = vor.u32 %v4996_v50, %v4331_v48  ;;  %v5028_v2 = vld [vmem:[%s7643_s1 + $0xa74] sm:$0xf0]  ;;  %v4299_v9 = vld [vmem:[%s7643_s1 + $0x928] sm:$0xf]  ;;  %v3357_v37 = vld [vmem:[%s7643_s1 + $0x1d8] sm:$0xf0] }
 0x10b   :  { %2876 = vmatpush.bf16.msra.mxu2 %v4252_v63  ;;  %v4603_v63 = vld [vmem:[%s7643_s1 + $0xb88] sm:$0xf]  ;;  %v6924_v12 = vpop.f32.mrf.mxu3  ;;  %v4460_v15 = vor.u32 %v5028_v2, %v4459_v1  ;;  %v4300_v28 = vor.u32 %v4988_v10, %v4299_v9  ;;  %v4984_v34 = vld [vmem:[%s7643_s1 + $0x914] sm:$0xf0]  ;;  %v4818_v1 = vld [vmem:[%s7643_s1 + $0x3ec] sm:$0xf] }
 0x10c   :  { %2856 = vmatpush.bf16.msra.mxu0 %v3900_v3  ;;  %v4188_v3 = vor.u32 %v4960_v58, %v4187_v57  ;;  %v4443_v22 = vld [vmem:[%s7643_s1 + $0xa48] sm:$0xf]  ;;  %v5084_v47 = vld [vmem:[%s7643_s1 + $0xc34] sm:$0xf0]  ;;  %v3629_v2 = vld [vmem:[%s7643_s1 + $0x3f8] sm:$0xf0] }
 0x10d   :  { %2889 = vmatpush.bf16.msra.mxu3 %v4380_v0  ;;  %2869 = vmatpush.bf16.msra.mxu1 %v4028_v23  ;;  %v5064_v0 = vld [vmem:[%s7643_s1 + $0xb94] sm:$0xf0]  ;;  %v4155_v33 = vld [vmem:[%s7643_s1 + $0x808] sm:$0xf]  ;;  %v4754_v9 = vld [vmem:[%s7643_s1 + $0x1ec] sm:$0xf] }
 0x10e   :  { %v6926_v13 = vpop.f32.mrf.mxu0  ;;  %v4604_v14 = vor.u32 %v5064_v0, %v4603_v63  ;;  %v5024_v23 = vld [vmem:[%s7643_s1 + $0xa54] sm:$0xf0]  ;;  %v4683_v46 = vld [vmem:[%s7643_s1 + $0xc28] sm:$0xf]  ;;  %v3373_v10 = vld [vmem:[%s7643_s1 + $0x1f8] sm:$0xf0] }
 0x10f   :  { %2877 = vmatpush.bf16.msra.mxu2 %v4236_v16  ;;  %2857 = vmatmul.bf16.vlgmr.msra.gmra.mxu0 %v5556_v38  ;;  %v4587_v16 = vld [vmem:[%s7643_s1 + $0xb68] sm:$0xf]  ;;  %v5056_v48 = vld [vmem:[%s7643_s1 + $0xb54] sm:$0xf0]  ;;  %v4684_v55 = vor.u32 %v5084_v47, %v4683_v46  ;;  %v3197_v46 = vld [vmem:[%s7643_s1 + $0x98] sm:$0xf0] }
 0x110   :  { %2901 = vmatpush.bf16.msrb.mxu0 %v4524_v11  ;;  %2870 = vmatmul.bf16.vlgmr.msra.gmra.mxu1 %v5566_v42  ;;  %v4956_v11 = vld [vmem:[%s7643_s1 + $0x834] sm:$0xf0]  ;;  %v4588_v40 = vor.u32 %v5060_v19, %v4587_v16  ;;  %v4427_v50 = vld [vmem:[%s7643_s1 + $0xa28] sm:$0xf]  ;;  %v4714_v16 = vld [vmem:[%s7643_s1 + $0xac] sm:$0xf] }
 0x111   :  { %2890 = vmatpush.bf16.msra.mxu3 %v4364_v17  ;;  %2914 = vmatpush.bf16.msrb.mxu1 %v4652_v31  ;;  %v2613_v17 = vpop.f32.mrf.mxu1  ;;  %v4172_v26 = vor.u32 %v4956_v11, %v4171_v7  ;;  %v4952_v31 = vld [vmem:[%s7643_s1 + $0x814] sm:$0xf0]  ;;  %v2626_v29 = vpop.f32.mrf.mxu2  ;;  %v4539_v19 = vld [vmem:[%s7643_s1 + $0xb08] sm:$0xf] }
 0x112   :  { %v5080_v63 = vld [vmem:[%s7643_s1 + $0xc14] sm:$0xf0]  ;;  %v3213_v17 = vld [vmem:[%s7643_s1 + $0xb8] sm:$0xf0] }
 0x113   :  { %2878 = vmatpush.bf16.msra.mxu2 %v4220_v43  ;;  %v4444_v43 = vor.u32 %v5024_v23, %v4443_v22  ;;  %v2639_v57 = vpop.f32.mrf.mxu3  ;;  %v5052_v0 = vld [vmem:[%s7643_s1 + $0xb34] sm:$0xf0] }
 0x114   :  { %2902 = vmatpush.bf16.msrb.mxu0 %v4508_v18  ;;  %v4283_v18 = vld [vmem:[%s7643_s1 + $0x908] sm:$0xf]  ;;  %v5048_v23 = vld [vmem:[%s7643_s1 + $0xb14] sm:$0xf0]  ;;  %v3181_v57 = vld [vmem:[%s7643_s1 + $0x78] sm:$0xf0] }
 0x115   :  { %2891 = vmatpush.bf16.msra.mxu3 %v4348_v45  ;;  %2915 = vmatpush.bf16.msrb.mxu1 %v4636_v36  ;;  %v4571_v45 = vld [vmem:[%s7643_s1 + $0xb48] sm:$0xf]  ;;  %v5020_v36 = vld [vmem:[%s7643_s1 + $0xa34] sm:$0xf0]  ;;  %v4284_v53 = vor.u32 %v4984_v34, %v4283_v18  ;;  %v3501_v18 = vld [vmem:[%s7643_s1 + $0x2f8] sm:$0xf0]  ;;  %v3216_v34 = vor.u32 %v4714_v16, %v3213_v17 }
 0x116   :  { %v2652_v58 = vpop.f32.mrf.mxu0  ;;  %v4572_v59 = vor.u32 %v5056_v48, %v4571_v45  ;;  %v4428_v60 = vor.u32 %v5020_v36, %v4427_v50  ;;  %v4710_v45 = vld [vmem:[%s7643_s1 + $0x8c] sm:$0xf]  ;;  %v3597_v50 = vld [vmem:[%s7643_s1 + $0x3b8] sm:$0xf0]  ;;  %v3360_v36 = vor.u32 %v4750_v39, %v3357_v37 }
 0x117   :  { %2879 = vmatpush.bf16.msra.mxu2 %v4204_v8  ;;  %v4718_v8 = vld [vmem:[%s7643_s1 + $0xcc] sm:$0xf]  ;;  %v3200_v29 = vor.u32 %v4710_v45, %v3197_v46 }
 0x118   :  { %2903 = vmatpush.bf16.msrb.mxu0 %v4492_v52  ;;  %v4156_v52 = vor.u32 %v4952_v31, %v4155_v33  ;;  %v3376_v33 = vor.u32 %v4754_v9, %v3373_v10  ;;  %v4786_v31 = vld [vmem:[%s7643_s1 + $0x2ec] sm:$0xf] }
 0x119   :  { %2892 = vmatpush.bf16.msra.mxu3 %v4332_v56  ;;  %2916 = vmatpush.bf16.msrb.mxu1 %v4620_v61  ;;  %v3229_v56 = vld [vmem:[%s7643_s1 + $0xd8] sm:$0xf0]  ;;  %v4555_v61 = vld [vmem:[%s7643_s1 + $0xb28] sm:$0xf]  ;;  %v3504_v47 = vor.u32 %v4786_v31, %v3501_v18  ;;  %v4810_v48 = vld [vmem:[%s7643_s1 + $0x3ac] sm:$0xf] }
 0x11a   :  { %v3232_v7 = vor.u32 %v4718_v8, %v3229_v56  ;;  %v3600_v8 = vor.u32 %v4810_v48, %v3597_v50  ;;  %v4706_v56 = vld [vmem:[%s7643_s1 + $0x6c] sm:$0xf]  ;;  %v3149_v18 = vld [vmem:[%s7643_s1 + $0x38] sm:$0xf0] }
 0x11b   :  { %2880 = vmatpush.bf16.msra.mxu2 %v4188_v3  ;;  %v4411_v3 = vld [vmem:[%s7643_s1 + $0xa08] sm:$0xf]  ;;  %v4802_v10 = vld [vmem:[%s7643_s1 + $0x36c] sm:$0xf] }
 0x11c   :  { %2904 = vmatpush.bf16.msrb.mxu0 %v4476_v62  ;;  %v4667_v62 = vld [vmem:[%s7643_s1 + $0xc08] sm:$0xf]  ;;  %v4774_v17 = vld [vmem:[%s7643_s1 + $0x28c] sm:$0xf] }
 0x11d   :  { %2893 = vmatpush.bf16.msra.mxu3 %v4316_v5  ;;  %2917 = vmatpush.bf16.msrb.mxu1 %v4604_v14  ;;  %v5016_v5 = vld [vmem:[%s7643_s1 + $0xa14] sm:$0xf0]  ;;  %v4668_v11 = vor.u32 %v5080_v63, %v4667_v62  ;;  %v4556_v14 = vor.u32 %v5052_v0, %v4555_v61  ;;  %v417_v61 = vperm.slane %v6419_v49, 1  ;;  %v4778_v63 = vld [vmem:[%s7643_s1 + $0x2ac] sm:$0xf] }
 0x11e   :  { %v4412_v22 = vor.u32 %v5016_v5, %v4411_v3  ;;  %v3469_v0 = vld [vmem:[%s7643_s1 + $0x2b8] sm:$0xf0]  ;;  %v4742_v49 = vld [vmem:[%s7643_s1 + $0x18c] sm:$0xf] }
 0x11f   :  { %2881 = vmatpush.bf16.msra.mxu2 %v4172_v26  ;;  %v4814_v26 = vld [vmem:[%s7643_s1 + $0x3cc] sm:$0xf]  ;;  %v3325_v3 = vld [vmem:[%s7643_s1 + $0x198] sm:$0xf0]  ;;  %v3472_v9 = vor.u32 %v4778_v63, %v3469_v0 }
 0x120   :  { %2905 = vmatpush.bf16.msrb.mxu0 %v4460_v15  ;;  %v3632_v15 = vor.u32 %v4818_v1, %v3629_v2  ;;  %v3184_v2 = vor.u32 %v4706_v56, %v3181_v57  ;;  %v3328_v16 = vor.u32 %v4742_v49, %v3325_v3  ;;  %v4698_v31 = vld [vmem:[%s7643_s1 + $0x2c] sm:$0xf]  ;;  %v3533_v57 = vld [vmem:[%s7643_s1 + $0x338] sm:$0xf0] }
 0x121   :  { %2894 = vmatpush.bf16.msra.mxu3 %v4300_v28  ;;  %2918 = vmatpush.bf16.msrb.mxu1 %v4588_v40  ;;  %v3613_v28 = vld [vmem:[%s7643_s1 + $0x3d8] sm:$0xf0]  ;;  %v4540_v40 = vor.u32 %v5048_v23, %v4539_v19  ;;  %v4798_v37 = vld [vmem:[%s7643_s1 + $0x34c] sm:$0xf]  ;;  %v3152_v50 = vor.u32 %v4698_v31, %v3149_v18 }
 0x122   :  { %v3453_v19 = vld [vmem:[%s7643_s1 + $0x298] sm:$0xf0]  ;;  %v4770_v46 = vld [vmem:[%s7643_s1 + $0x26c] sm:$0xf] }
 0x123   :  { %2882 = vmatpush.bf16.msra.mxu2 %v4156_v52  ;;  %v4782_v52 = vld [vmem:[%s7643_s1 + $0x2cc] sm:$0xf]  ;;  %v7088_v1 = vpop.f32.mrf.mxu1 }
 0x124   :  { %2906 = vmatpush.bf16.msrb.mxu0 %v4444_v43  ;;  %v3616_v43 = vor.u32 %v4814_v26, %v3613_v28  ;;  %v4738_v26 = vld [vmem:[%s7643_s1 + $0x16c] sm:$0xf] }
 0x125   :  { %2895 = vmatpush.bf16.msra.mxu3 %v4284_v53  ;;  %2919 = vmatpush.bf16.msrb.mxu1 %v4572_v59  ;;  %v3485_v53 = vld [vmem:[%s7643_s1 + $0x2d8] sm:$0xf0]  ;;  %v4806_v59 = vld [vmem:[%s7643_s1 + $0x38c] sm:$0xf] }
 0x126   :  { %2883 = vmatmul.bf16.vlgmr.msra.gmra.mxu2 %v5757_v24  ;;  %v3488_v58 = vor.u32 %v4782_v52, %v3485_v53  ;;  %v4694_v53 = vld [vmem:[%s7643_s1 + $0xc] sm:$0xf] }
 0x127   :  { %2933 = vmatpush.bf16.msrb.mxu2 %v4684_v55  ;;  %v3341_v55 = vld [vmem:[%s7643_s1 + $0x1b8] sm:$0xf0]  ;;  %v4794_v56 = vld [vmem:[%s7643_s1 + $0x32c] sm:$0xf] }
 0x128   :  { %2907 = vmatpush.bf16.msrb.mxu0 %v4428_v60  ;;  %2896 = vmatmul.bf16.vlgmr.msra.gmra.mxu3 %v5770_v30  ;;  %v3581_v60 = vld [vmem:[%s7643_s1 + $0x398] sm:$0xf0]  ;;  %v4730_v63 = vld [vmem:[%s7643_s1 + $0x12c] sm:$0xf]  ;;  %v3536_v49 = vor.u32 %v4794_v56, %v3533_v57 }
 0x129   :  { %2940 = vmatpush.bf16.msrb.mxu3 %v3248_v54  ;;  %2920 = vmatpush.bf16.msrb.mxu1 %v4556_v14  ;;  %v4746_v54 = vld [vmem:[%s7643_s1 + $0x1ac] sm:$0xf]  ;;  %v3584_v5 = vor.u32 %v4806_v59, %v3581_v60  ;;  %v3565_v14 = vld [vmem:[%s7643_s1 + $0x378] sm:$0xf0]  ;;  %v7116_v23 = vpop.f32.mrf.mxu2 }
 0x12a   :  { %v3344_v62 = vor.u32 %v4746_v54, %v3341_v55  ;;  %v3568_v28 = vor.u32 %v4802_v10, %v3565_v14  ;;  %v4850_v54 = vld [vmem:[%s7643_s1 + $0x4ec] sm:$0xf]  ;;  %v3517_v14 = vld [vmem:[%s7643_s1 + $0x318] sm:$0xf0] }
 0x12b   :  { %2934 = vmatpush.bf16.msrb.mxu2 %v4668_v11  ;;  %v3165_v11 = vld [vmem:[%s7643_s1 + $0x58] sm:$0xf0]  ;;  %v2665_v48 = vpop.f32.mrf.mxu1  ;;  %v4766_v60 = vld [vmem:[%s7643_s1 + $0x24c] sm:$0xf] }
 0x12c   :  { %2908 = vmatpush.bf16.msrb.mxu0 %v4412_v22  ;;  %v4846_v3 = vld [vmem:[%s7643_s1 + $0x4cc] sm:$0xf]  ;;  %v3709_v57 = vld [vmem:[%s7643_s1 + $0x498] sm:$0xf0] }
 0x12d   :  { %2941 = vmatpush.bf16.msrb.mxu3 %v3232_v7  ;;  %2921 = vmatpush.bf16.msrb.mxu1 %v4540_v40  ;;  %v4702_v7 = vld [vmem:[%s7643_s1 + $0x4c] sm:$0xf]  ;;  %v3549_v40 = vld [vmem:[%s7643_s1 + $0x358] sm:$0xf0] }
 0x12e   :  { %v3168_v22 = vor.u32 %v4702_v7, %v3165_v11  ;;  %v7134_v39 = vpop.f32.mrf.mxu0  ;;  %v3552_v52 = vor.u32 %v4798_v37, %v3549_v40  ;;  %v4790_v10 = vld [vmem:[%s7643_s1 + $0x30c] sm:$0xf] }
 0x12f   :  { %2979 = vmatpush.bf16.msra.mxu2 %v3632_v15  ;;  %2909 = vmatmul.bf16.vlgmr.msrb.gmra.mxu0 %v5759_v25  ;;  %v2612_v15 = vadd.f32 %v6871_v51, %v417_v61  ;;  %v3309_v51 = vld [vmem:[%s7643_s1 + $0x178] sm:$0xf0]  ;;  %v3520_v31 = vor.u32 %v4790_v10, %v3517_v14  ;;  %v4882_v18 = vld [vmem:[%s7643_s1 + $0x5ec] sm:$0xf] }
 0x130   :  { %2953 = vmatpush.bf16.msra.mxu0 %v3376_v33  ;;  %2922 = vmatmul.bf16.vlgmr.msrb.gmra.mxu1 %v5775_v32  ;;  %v7124_v33 = vpop.f32.mrf.mxu3  ;;  %v3312_v45 = vor.u32 %v4738_v26, %v3309_v51  ;;  %v3421_v61 = vld [vmem:[%s7643_s1 + $0x258] sm:$0xf0]  ;;  %v4726_v51 = vld [vmem:[%s7643_s1 + $0x10c] sm:$0xf] }
 0x131   :  { %2942 = vmatpush.bf16.msrb.mxu3 %v3216_v34  ;;  %2966 = vmatpush.bf16.msra.mxu1 %v3504_v47  ;;  %v3456_v34 = vor.u32 %v4774_v17, %v3453_v19  ;;  %v3437_v47 = vld [vmem:[%s7643_s1 + $0x278] sm:$0xf0]  ;;  %v2678_v0 = vpop.f32.mrf.mxu2  ;;  %v3424_v11 = vor.u32 %v4766_v60, %v3421_v61  ;;  %v4838_v56 = vld [vmem:[%s7643_s1 + $0x48c] sm:$0xf] }
 0x132   :  { %v3440_v55 = vor.u32 %v4770_v46, %v3437_v47  ;;  %v3405_v19 = vld [vmem:[%s7643_s1 + $0x238] sm:$0xf0]  ;;  %v4758_v46 = vld [vmem:[%s7643_s1 + $0x20c] sm:$0xf] }
 0x133   :  { %2980 = vmatpush.bf16.msra.mxu2 %v3616_v43  ;;  %v2625_v43 = vadd.f32 %v6913_v35, %v2612_v15  ;;  %v3293_v35 = vld [vmem:[%s7643_s1 + $0x158] sm:$0xf0]  ;;  %v4938_v60 = vld [vmem:[%s7643_s1 + $0x7ac] sm:$0xf] }
 0x134   :  { %2954 = vmatpush.bf16.msra.mxu0 %v3360_v36  ;;  %v4734_v36 = vld [vmem:[%s7643_s1 + $0x14c] sm:$0xf]  ;;  %v4141_v26 = vld [vmem:[%s7643_s1 + $0x7f8] sm:$0xf0] }
 0x135   :  { %2943 = vmatpush.bf16.msrb.mxu3 %v3200_v29  ;;  %2967 = vmatpush.bf16.msra.mxu1 %v3488_v58  ;;  %v3133_v29 = vld [vmem:[%s7643_s1 + $0x18] sm:$0xf0]  ;;  %v2638_v58 = vadd.f32 %v6924_v12, %v2625_v43  ;;  %v3296_v59 = vor.u32 %v4734_v36, %v3293_v35  ;;  %v4842_v43 = vld [vmem:[%s7643_s1 + $0x4ac] sm:$0xf] }
 0x136   :  { %4691 = vmatmul.msk.bf16.vlgmr.msrb.gmra.mxu2 %vm2429_vm0, %v5874_v27  ;;  %v3277_v12 = vld [vmem:[%s7643_s1 + $0x138] sm:$0xf0]  ;;  %v2704_v15 = vpop.f32.mrf.mxu0  ;;  %v4942_v36 = vld [vmem:[%s7643_s1 + $0x7cc] sm:$0xf] }
 0x137   :  { %2981 = vmatpush.bf16.msra.mxu2 %v3600_v8  ;;  %v3757_v8 = vld [vmem:[%s7643_s1 + $0x4f8] sm:$0xf0]  ;;  %v3280_v17 = vor.u32 %v4730_v63, %v3277_v12  ;;  %v4910_v63 = vld [vmem:[%s7643_s1 + $0x6cc] sm:$0xf]  ;;  %v3712_v12 = vor.u32 %v4838_v56, %v3709_v57 }
 0x138   :  { %2955 = vmatpush.bf16.msra.mxu0 %v3344_v62  ;;  %v3136_v62 = vor.u32 %v4694_v53, %v3133_v29  ;;  %v2691_v7 = vpop.f32.mrf.mxu3  ;;  %v4125_v35 = vld [vmem:[%s7643_s1 + $0x7d8] sm:$0xf0]  ;;  %v4874_v0 = vld [vmem:[%s7643_s1 + $0x5ac] sm:$0xf] }
 0x139   :  { %2944 = vmatpush.bf16.msrb.mxu3 %v3184_v2  ;;  %2968 = vmatpush.bf16.msra.mxu1 %v3472_v9  ;;  %v3760_v2 = vor.u32 %v4850_v54, %v3757_v8  ;;  %v4762_v9 = vld [vmem:[%s7643_s1 + $0x22c] sm:$0xf]  ;;  %v4013_v53 = vld [vmem:[%s7643_s1 + $0x6f8] sm:$0xf0]  ;;  %v4128_v8 = vor.u32 %v4942_v36, %v4125_v35 }
 0x13a   :  { %v3408_v37 = vor.u32 %v4762_v9, %v3405_v19  ;;  %v4878_v54 = vld [vmem:[%s7643_s1 + $0x5cc] sm:$0xf]  ;;  %v4109_v61 = vld [vmem:[%s7643_s1 + $0x7b8] sm:$0xf0] }
 0x13b   :  { %2982 = vmatpush.bf16.msra.mxu2 %v3584_v5  ;;  %v3741_v5 = vld [vmem:[%s7643_s1 + $0x4d8] sm:$0xf0]  ;;  %v4934_v9 = vld [vmem:[%s7643_s1 + $0x78c] sm:$0xf] }
 0x13c   :  { %2956 = vmatpush.bf16.msra.mxu0 %v3328_v16  ;;  %v2651_v16 = vadd.f32 %v6926_v13, %v2638_v58  ;;  %v3261_v13 = vld [vmem:[%s7643_s1 + $0x118] sm:$0xf0]  ;;  %v4906_v15 = vld [vmem:[%s7643_s1 + $0x6ac] sm:$0xf] }
 0x13d   :  { %2945 = vmatpush.bf16.msrb.mxu3 %v3168_v22  ;;  %2969 = vmatpush.bf16.msra.mxu1 %v3456_v34  ;;  %v4946_v22 = vld [vmem:[%s7643_s1 + $0x7ec] sm:$0xf]  ;;  %v3885_v34 = vld [vmem:[%s7643_s1 + $0x5f8] sm:$0xf0]  ;;  %v3264_v48 = vor.u32 %v4726_v51, %v3261_v13 }
 0x13e   :  { %v4144_v40 = vor.u32 %v4946_v22, %v4141_v26  ;;  %v2664_v47 = vadd.f32 %v7088_v1, %v2651_v16  ;;  %v4914_v1 = vld [vmem:[%s7643_s1 + $0x6ec] sm:$0xf]  ;;  %v4093_v10 = vld [vmem:[%s7643_s1 + $0x798] sm:$0xf0] }
 0x13f   :  { %2983 = vmatpush.bf16.msra.mxu2 %v3568_v28  ;;  %v3744_v28 = vor.u32 %v4846_v3, %v3741_v5  ;;  %v4834_v3 = vld [vmem:[%s7643_s1 + $0x46c] sm:$0xf]  ;;  %v4096_v19 = vor.u32 %v4934_v9, %v4093_v10  ;;  %v3677_v26 = vld [vmem:[%s7643_s1 + $0x458] sm:$0xf0] }
 0x140   :  { %2957 = vmatpush.bf16.msra.mxu0 %v3312_v45  ;;  %v3725_v45 = vld [vmem:[%s7643_s1 + $0x4b8] sm:$0xf0]  ;;  %v2677_v58 = vadd.f32 %v7116_v23, %v2664_v47  ;;  %v4830_v22 = vld [vmem:[%s7643_s1 + $0x44c] sm:$0xf] }
 0x141   :  { %2946 = vmatpush.bf16.msrb.mxu3 %v3152_v50  ;;  %2970 = vmatpush.bf16.msra.mxu1 %v3440_v55  ;;  %v3389_v50 = vld [vmem:[%s7643_s1 + $0x218] sm:$0xf0]  ;;  %v3728_v29 = vor.u32 %v4842_v43, %v3725_v45  ;;  %v4862_v56 = vld [vmem:[%s7643_s1 + $0x54c] sm:$0xf] }
 0x142   :  { %v3392_v55 = vor.u32 %v4758_v46, %v3389_v50  ;;  %v3997_v23 = vld [vmem:[%s7643_s1 + $0x6d8] sm:$0xf0]  ;;  %v2690_v5 = vadd.f32 %v7124_v33, %v2677_v58 }
 0x143   :  { %2984 = vmatpush.bf16.msra.mxu2 %v3552_v52  ;;  %v3888_v52 = vor.u32 %v4882_v18, %v3885_v34  ;;  %v2715_v7 = vpop.f32.mrf.mxu1  ;;  %v3981_v33 = vld [vmem:[%s7643_s1 + $0x6b8] sm:$0xf0]  ;;  %v4902_v18 = vld [vmem:[%s7643_s1 + $0x68c] sm:$0xf] }
 0x144   :  { %2958 = vmatpush.bf16.msra.mxu0 %v3296_v59  ;;  %v4016_v59 = vor.u32 %v4914_v1, %v4013_v53  ;;  %v2703_v51 = vadd.f32 %v7134_v39, %v2690_v5  ;;  %v3984_v13 = vor.u32 %v4906_v15, %v3981_v33  ;;  %v3965_v39 = vld [vmem:[%s7643_s1 + $0x698] sm:$0xf0]  ;;  %v4926_v53 = vld [vmem:[%s7643_s1 + $0x74c] sm:$0xf] }
 0x145   :  { %2947 = vmatpush.bf16.msrb.mxu3 %v3136_v62  ;;  %2971 = vmatpush.bf16.msra.mxu1 %v3424_v11  ;;  %v4000_v11 = vor.u32 %v4910_v63, %v3997_v23  ;;  %v3821_v43 = vld [vmem:[%s7643_s1 + $0x578] sm:$0xf0]  ;;  %v3968_v1 = vor.u32 %v4902_v18, %v3965_v39  ;;  %v4858_v5 = vld [vmem:[%s7643_s1 + $0x52c] sm:$0xf] }
 0x146   :  { %v2716_v34 = vadd.f32 %v2715_v7, %v2703_v51  ;;  %v3661_v50 = vld [vmem:[%s7643_s1 + $0x438] sm:$0xf0]  ;;  %v4854_v39 = vld [vmem:[%s7643_s1 + $0x50c] sm:$0xf] }
 0x147   :  { %2985 = vmatpush.bf16.msra.mxu2 %v3536_v49  ;;  %v4112_v49 = vor.u32 %v4938_v60, %v4109_v61  ;;  %v3805_v57 = vld [vmem:[%s7643_s1 + $0x558] sm:$0xf0]  ;;  %v4822_v60 = vld [vmem:[%s7643_s1 + $0x40c] sm:$0xf] }
 0x148   :  { %2959 = vmatpush.bf16.msra.mxu0 %v3280_v17  ;;  %2948 = vmatmul.bf16.vlgmr.msrb.gmra.mxu3 %v5405_v20  ;;  %v3869_v20 = vld [vmem:[%s7643_s1 + $0x5d8] sm:$0xf0]  ;;  %v4870_v17 = vld [vmem:[%s7643_s1 + $0x58c] sm:$0xf] }
 0x149   :  { %2992 = vmatpush.bf16.msra.mxu3 %v3760_v2  ;;  %2972 = vmatpush.bf16.msra.mxu1 %v3408_v37  ;;  %v3872_v62 = vor.u32 %v4878_v54, %v3869_v20  ;;  %v3853_v2 = vld [vmem:[%s7643_s1 + $0x5b8] sm:$0xf0]  ;;  %v3680_v37 = vor.u32 %v4830_v22, %v3677_v26  ;;  %v2728_v45 = vpop.f32.mrf.mxu2  ;;  %v4898_v20 = vld [vmem:[%s7643_s1 + $0x66c] sm:$0xf] }
 0x14a   :  { %v3856_v14 = vor.u32 %v4874_v0, %v3853_v2  ;;  %v2729_v36 = vadd.f32 %v2728_v45, %v2716_v34  ;;  %v3645_v61 = vld [vmem:[%s7643_s1 + $0x418] sm:$0xf0]  ;;  %v3808_v2 = vor.u32 %v4862_v56, %v3805_v57  ;;  %v4918_v22 = vld [vmem:[%s7643_s1 + $0x70c] sm:$0xf] }
 0x14b   :  { %2986 = vmatpush.bf16.msra.mxu2 %v3520_v31  ;;  %v2741_v46 = vpop.f32.mrf.mxu3  ;;  %v2717_v35 = vpop.f32.mrf.mxu1  ;;  %v4269_v23 = vld [vmem:[%s7643_s1 + $0x8f8] sm:$0xf0] }
 0x14c   :  { %2960 = vmatpush.bf16.msra.mxu0 %v3264_v48  ;;  %v4826_v48 = vld [vmem:[%s7643_s1 + $0x42c] sm:$0xf]  ;;  %v2742_v58 = vadd.f32 %v2741_v46, %v2729_v36  ;;  %v4045_v0 = vld [vmem:[%s7643_s1 + $0x738] sm:$0xf0] }
 0x14d   :  { %2993 = vmatpush.bf16.msra.mxu3 %v3744_v28  ;;  %2973 = vmatpush.bf16.msra.mxu1 %v3392_v55  ;;  %v4930_v28 = vld [vmem:[%s7643_s1 + $0x76c] sm:$0xf]  ;;  %v3949_v55 = vld [vmem:[%s7643_s1 + $0x678] sm:$0xf0] }
 0x14e   :  { %2987 = vmatmul.bf16.vlgmr.msra.gmra.mxu2 %v5378_v6  ;;  %v3693_v6 = vld [vmem:[%s7643_s1 + $0x478] sm:$0xf0]  ;;  %v3952_v63 = vor.u32 %v4898_v20, %v3949_v55  ;;  %v5010_v46 = vld [vmem:[%s7643_s1 + $0x9ec] sm:$0xf] }
 0x14f   :  { %3031 = vmatpush.bf16.msrb.mxu2 %v4144_v40  ;;  %2961 = vmatmul.bf16.vlgmr.msra.gmra.mxu0 %v5408_v21  ;;  %v3696_v16 = vor.u32 %v4834_v3, %v3693_v6  ;;  %v3837_v21 = vld [vmem:[%s7643_s1 + $0x598] sm:$0xf0]  ;;  %v4866_v40 = vld [vmem:[%s7643_s1 + $0x56c] sm:$0xf]  ;;  %v3648_v6 = vor.u32 %v4822_v60, %v3645_v61 }
 0x150   :  { %3005 = vmatpush.bf16.msrb.mxu0 %v3888_v52  ;;  %2974 = vmatmul.bf16.vlgmr.msra.gmra.mxu1 %v5373_v4  ;;  %v4077_v4 = vld [vmem:[%s7643_s1 + $0x778] sm:$0xf0]  ;;  %v3840_v31 = vor.u32 %v4870_v17, %v3837_v21  ;;  %v2754_v52 = vpop.f32.mrf.mxu0  ;;  %v3824_v54 = vor.u32 %v4866_v40, %v3821_v43  ;;  %v4886_v35 = vld [vmem:[%s7643_s1 + $0x60c] sm:$0xf] }
 0x151   :  { %2994 = vmatpush.bf16.msra.mxu3 %v3728_v29  ;;  %3018 = vmatpush.bf16.msrb.mxu1 %v4016_v59  ;;  %v4080_v47 = vor.u32 %v4930_v28, %v4077_v4  ;;  %v4061_v29 = vld [vmem:[%s7643_s1 + $0x758] sm:$0xf0]  ;;  %v5042_v20 = vld [vmem:[%s7643_s1 + $0xaec] sm:$0xf] }
 0x152   :  { %v4064_v59 = vor.u32 %v4926_v53, %v4061_v29  ;;  %v3933_v3 = vld [vmem:[%s7643_s1 + $0x658] sm:$0xf0]  ;;  %v5070_v53 = vld [vmem:[%s7643_s1 + $0xbcc] sm:$0xf] }
 0x153   :  { %3032 = vmatpush.bf16.msrb.mxu2 %v4128_v8  ;;  %v3664_v8 = vor.u32 %v4826_v48, %v3661_v50  ;;  %v3789_v7 = vld [vmem:[%s7643_s1 + $0x538] sm:$0xf0]  ;;  %v2743_v33 = vpop.f32.mrf.mxu3  ;;  %v2767_v17 = vpop.f32.mrf.mxu1 }
 0x154   :  { %3006 = vmatpush.bf16.msrb.mxu0 %v3872_v62  ;;  %v4978_v62 = vld [vmem:[%s7643_s1 + $0x8ec] sm:$0xf]  ;;  %v4253_v15 = vld [vmem:[%s7643_s1 + $0x8d8] sm:$0xf0]  ;;  %v3792_v28 = vor.u32 %v4858_v5, %v3789_v7 }
 0x155   :  { %2995 = vmatpush.bf16.msra.mxu3 %v3712_v12  ;;  %3019 = vmatpush.bf16.msrb.mxu1 %v4000_v11  ;;  %v4922_v12 = vld [vmem:[%s7643_s1 + $0x72c] sm:$0xf]  ;;  %v2755_v11 = vadd.f32 %v2754_v52, %v2742_v58  ;;  %v4272_v9 = vor.u32 %v4978_v62, %v4269_v23  ;;  %v4029_v26 = vld [vmem:[%s7643_s1 + $0x718] sm:$0xf0] }
 0x156   :  { %v4048_v10 = vor.u32 %v4922_v12, %v4045_v0  ;;  %v3917_v4 = vld [vmem:[%s7643_s1 + $0x638] sm:$0xf0]  ;;  %v4032_v45 = vor.u32 %v4918_v22, %v4029_v26  ;;  %v5038_v0 = vld [vmem:[%s7643_s1 + $0xacc] sm:$0xf] }
 0x157   :  { %3033 = vmatpush.bf16.msrb.mxu2 %v4112_v49  ;;  %v4894_v49 = vld [vmem:[%s7643_s1 + $0x64c] sm:$0xf]  ;;  %v4653_v18 = vld [vmem:[%s7643_s1 + $0xbf8] sm:$0xf0] }
 0x158   :  { %3007 = vmatpush.bf16.msrb.mxu0 %v3856_v14  ;;  %v4974_v14 = vld [vmem:[%s7643_s1 + $0x8cc] sm:$0xf]  ;;  %v3936_v21 = vor.u32 %v4894_v49, %v3933_v3  ;;  %v2756_v51 = vpop.f32.mrf.mxu0  ;;  %v3773_v34 = vld [vmem:[%s7643_s1 + $0x518] sm:$0xf0] }
 0x159   :  { %2996 = vmatpush.bf16.msra.mxu3 %v3696_v16  ;;  %3020 = vmatpush.bf16.msrb.mxu1 %v3984_v13  ;;  %v2730_v16 = vpop.f32.mrf.mxu2  ;;  %v2768_v13 = vadd.f32 %v2767_v17, %v2755_v11  ;;  %v4256_v43 = vor.u32 %v4974_v14, %v4253_v15  ;;  %v4237_v36 = vld [vmem:[%s7643_s1 + $0x8b8] sm:$0xf0]  ;;  %v5002_v3 = vld [vmem:[%s7643_s1 + $0x9ac] sm:$0xf] }
 0x15a   :  { %v3901_v52 = vld [vmem:[%s7643_s1 + $0x618] sm:$0xf0]  ;;  %v4962_v5 = vld [vmem:[%s7643_s1 + $0x86c] sm:$0xf] }
 0x15b   :  { %3034 = vmatpush.bf16.msrb.mxu2 %v4096_v19  ;;  %v4890_v19 = vld [vmem:[%s7643_s1 + $0x62c] sm:$0xf]  ;;  %v3110_v40 = vmax.f32 %v2768_v13, 0.0  ;;  %v4637_v29 = vld [vmem:[%s7643_s1 + $0xbd8] sm:$0xf0]  ;;  %v3904_v57 = vor.u32 %v4886_v35, %v3901_v52  ;;  %v2769_v61 = vpop.f32.mrf.mxu1 }
 0x15c   :  { %3008 = vmatpush.bf16.msrb.mxu0 %v3840_v31  ;;  %v5074_v31 = vld [vmem:[%s7643_s1 + $0xbec] sm:$0xf]  ;;  %v3920_v48 = vor.u32 %v4890_v19, %v3917_v4  ;;  %v4525_v55 = vld [vmem:[%s7643_s1 + $0xaf8] sm:$0xf0]  ;;  %v4640_v58 = vor.u32 %v5070_v53, %v4637_v29 }
 0x15d   :  { %2997 = vmatpush.bf16.msra.mxu3 %v3680_v37  ;;  %3021 = vmatpush.bf16.msrb.mxu1 %v3968_v1  ;;  %v4970_v37 = vld [vmem:[%s7643_s1 + $0x8ac] sm:$0xf]  ;;  %v4656_v50 = vor.u32 %v5074_v31, %v4653_v18  ;;  %3114 = vst [vmem:[%s7646_s3 + $0x8] sm:$0xff] %v3110_v40  ;;  %v3776_v1 = vor.u32 %v4854_v39, %v3773_v34  ;;  %v4381_v56 = vld [vmem:[%s7643_s1 + $0x9d8] sm:$0xf0] }
 0x15e   :  { %v4221_v60 = vld [vmem:[%s7643_s1 + $0x898] sm:$0xf0]  ;;  %v4528_v62 = vor.u32 %v5042_v20, %v4525_v55  ;;  %v5034_v15 = vld [vmem:[%s7643_s1 + $0xaac] sm:$0xf] }
 0x15f   :  { %3035 = vmatpush.bf16.msrb.mxu2 %v4080_v47  ;;  %v4397_v47 = vld [vmem:[%s7643_s1 + $0x9f8] sm:$0xf0]  ;;  %v4998_v16 = vld [vmem:[%s7643_s1 + $0x98c] sm:$0xf] }
 0x160   :  { %3009 = vmatpush.bf16.msrb.mxu0 %v3824_v54  ;;  %v4400_v54 = vor.u32 %v5010_v46, %v4397_v47  ;;  %v4621_v23 = vld [vmem:[%s7643_s1 + $0xbb8] sm:$0xf0]  ;;  %v4958_v19 = vld [vmem:[%s7643_s1 + $0x84c] sm:$0xf] }
 0x161   :  { %2998 = vmatpush.bf16.msra.mxu3 %v3664_v8  ;;  %3022 = vmatpush.bf16.msrb.mxu1 %v3952_v63  ;;  %v5006_v8 = vld [vmem:[%s7643_s1 + $0x9cc] sm:$0xf]  ;;  %v4205_v7 = vld [vmem:[%s7643_s1 + $0x878] sm:$0xf0] }
 0x162   :  { %v5066_v63 = vld [vmem:[%s7643_s1 + $0xbac] sm:$0xf]  ;;  %v4384_v12 = vor.u32 %v5006_v8, %v4381_v56  ;;  %v4493_v33 = vld [vmem:[%s7643_s1 + $0xab8] sm:$0xf0] }
 0x163   :  { %3036 = vmatpush.bf16.msrb.mxu2 %v4064_v59  ;;  %v4966_v59 = vld [vmem:[%s7643_s1 + $0x88c] sm:$0xf]  ;;  %v4349_v17 = vld [vmem:[%s7643_s1 + $0x998] sm:$0xf0] }
 0x164   :  { %3010 = vmatpush.bf16.msrb.mxu0 %v3808_v2  ;;  %v4509_v2 = vld [vmem:[%s7643_s1 + $0xad8] sm:$0xf0]  ;;  %v4224_v49 = vor.u32 %v4966_v59, %v4221_v60  ;;  %v5058_v26 = vld [vmem:[%s7643_s1 + $0xb6c] sm:$0xf]  ;;  %v4352_v13 = vor.u32 %v4998_v16, %v4349_v17 }
 0x165   :  { %2999 = vmatpush.bf16.msra.mxu3 %v3648_v6  ;;  %3023 = vmatpush.bf16.msrb.mxu1 %v3936_v21  ;;  %v4365_v6 = vld [vmem:[%s7643_s1 + $0x9b8] sm:$0xf0]  ;;  %v4512_v11 = vor.u32 %v5038_v0, %v4509_v2  ;;  %v4994_v18 = vld [vmem:[%s7643_s1 + $0x96c] sm:$0xf] }
 0x166   :  { %v4368_v14 = vor.u32 %v5002_v3, %v4365_v6  ;;  %v4189_v22 = vld [vmem:[%s7643_s1 + $0x858] sm:$0xf0]  ;;  %v5054_v47 = vld [vmem:[%s7643_s1 + $0xb4c] sm:$0xf] }
 0x167   :  { %3037 = vmatpush.bf16.msrb.mxu2 %v4048_v10  ;;  %v4605_v10 = vld [vmem:[%s7643_s1 + $0xb98] sm:$0xf0]  ;;  %v4192_v31 = vor.u32 %v4958_v19, %v4189_v22  ;;  %v5026_v35 = vld [vmem:[%s7643_s1 + $0xa6c] sm:$0xf] }
 0x168   :  { %3011 = vmatpush.bf16.msrb.mxu0 %v3792_v28  ;;  %3000 = vmatmul.bf16.vlgmr.msra.gmra.mxu3 %v5564_v41  ;;  %v4240_v41 = vor.u32 %v4970_v37, %v4237_v36  ;;  %v4589_v51 = vld [vmem:[%s7643_s1 + $0xb78] sm:$0xf0]  ;;  %v5030_v28 = vld [vmem:[%s7643_s1 + $0xa8c] sm:$0xf] }
 0x169   :  { %3044 = vmatpush.bf16.msrb.mxu3 %v4272_v9  ;;  %3024 = vmatpush.bf16.msrb.mxu1 %v3920_v48  ;;  %v5062_v9 = vld [vmem:[%s7643_s1 + $0xb8c] sm:$0xf]  ;;  %v4477_v4 = vld [vmem:[%s7643_s1 + $0xa98] sm:$0xf0]  ;;  %v4592_v34 = vor.u32 %v5058_v26, %v4589_v51 }
 0x16a   :  { %v4608_v21 = vor.u32 %v5062_v9, %v4605_v10  ;;  %v4333_v39 = vld [vmem:[%s7643_s1 + $0x978] sm:$0xf0]  ;;  %v4954_v37 = vld [vmem:[%s7643_s1 + $0x82c] sm:$0xf]  ;;  %v4480_v46 = vor.u32 %v5030_v28, %v4477_v4 }
 0x16b   :  { %3038 = vmatpush.bf16.msrb.mxu2 %v4032_v45  ;;  %v4173_v40 = vld [vmem:[%s7643_s1 + $0x838] sm:$0xf0]  ;;  %v7540_v45 = vpop.f32.mrf.mxu3  ;;  %v4336_v36 = vor.u32 %v4994_v18, %v4333_v39  ;;  %v4990_v53 = vld [vmem:[%s7643_s1 + $0x94c] sm:$0xf]  ;;  %v7580_v59 = vpop.f32.mrf.mxu1 }
 0x16c   :  { %3012 = vmatpush.bf16.msrb.mxu0 %v3776_v1  ;;  %v4573_v48 = vld [vmem:[%s7643_s1 + $0xb58] sm:$0xf0]  ;;  %v4176_v1 = vor.u32 %v4954_v37, %v4173_v40  ;;  %v4950_v20 = vld [vmem:[%s7643_s1 + $0x80c] sm:$0xf] }
 0x16d   :  { %3045 = vmatpush.bf16.msrb.mxu3 %v4256_v43  ;;  %3025 = vmatpush.bf16.msrb.mxu1 %v3904_v57  ;;  %v7538_v43 = vpop.f32.mrf.mxu2  ;;  %v4461_v52 = vld [vmem:[%s7643_s1 + $0xa78] sm:$0xf0]  ;;  %v5082_v57 = vld [vmem:[%s7643_s1 + $0xc2c] sm:$0xf] }
 0x16e   :  { %3039 = vmatmul.bf16.vlgmr.msrb.gmra.mxu2 %v5566_v42  ;;  %v4624_v42 = vor.u32 %v5066_v63, %v4621_v23  ;;  %v4317_v29 = vld [vmem:[%s7643_s1 + $0x958] sm:$0xf0]  ;;  %v4464_v8 = vor.u32 %v5026_v35, %v4461_v52  ;;  %v5022_v61 = vld [vmem:[%s7643_s1 + $0xa4c] sm:$0xf] }
 0x16f   :  { %3083 = vmatpush.bf16.msra.mxu2 %v4656_v50  ;;  %3013 = vmatmul.bf16.vlgmr.msrb.gmra.mxu0 %v5568_v44  ;;  %v4208_v44 = vor.u32 %v4962_v5, %v4205_v7  ;;  %v7548_v50 = vpop.f32.mrf.mxu0  ;;  %v4157_v55 = vld [vmem:[%s7643_s1 + $0x818] sm:$0xf0]  ;;  %v4320_v60 = vor.u32 %v4990_v53, %v4317_v29  ;;  %v4986_v23 = vld [vmem:[%s7643_s1 + $0x92c] sm:$0xf] }
 0x170   :  { %3057 = vmatpush.bf16.msra.mxu0 %v4400_v54  ;;  %3026 = vmatmul.bf16.vlgmr.msrb.gmra.mxu1 %v5556_v38  ;;  %v4496_v38 = vor.u32 %v5034_v15, %v4493_v33  ;;  %v4576_v54 = vor.u32 %v5054_v47, %v4573_v48  ;;  %v4557_v56 = vld [vmem:[%s7643_s1 + $0xb38] sm:$0xf0]  ;;  %v4160_v63 = vor.u32 %v4950_v20, %v4157_v55  ;;  %v5078_v7 = vld [vmem:[%s7643_s1 + $0xc0c] sm:$0xf] }
 0x171   :  { %3046 = vmatpush.bf16.msrb.mxu3 %v4240_v41  ;;  %3070 = vmatpush.bf16.msra.mxu1 %v4528_v62  ;;  %v5050_v41 = vld [vmem:[%s7643_s1 + $0xb2c] sm:$0xf]  ;;  %v4445_v62 = vld [vmem:[%s7643_s1 + $0xa58] sm:$0xf0] }
 0x172   :  { %v4560_v0 = vor.u32 %v5050_v41, %v4557_v56  ;;  %v4541_v5 = vld [vmem:[%s7643_s1 + $0xb18] sm:$0xf0]  ;;  %v4982_v33 = vld [vmem:[%s7643_s1 + $0x90c] sm:$0xf] }
 0x173   :  { %3084 = vmatpush.bf16.msra.mxu2 %v4640_v58  ;;  %v4685_v58 = vld [vmem:[%s7643_s1 + $0xc38] sm:$0xf0]  ;;  %v2795_v6 = vpop.f32.mrf.mxu3  ;;  %v2821_v19 = vpop.f32.mrf.mxu1 }
 0x174   :  { %3058 = vmatpush.bf16.msra.mxu0 %v4384_v12  ;;  %v4301_v12 = vld [vmem:[%s7643_s1 + $0x938] sm:$0xf0]  ;;  %v4688_v2 = vor.u32 %v5082_v57, %v4685_v58 }
 0x175   :  { %3047 = vmatpush.bf16.msrb.mxu3 %v4224_v49  ;;  %3071 = vmatpush.bf16.msra.mxu1 %v4512_v11  ;;  %v5046_v49 = vld [vmem:[%s7643_s1 + $0xb0c] sm:$0xf]  ;;  %v2782_v3 = vpop.f32.mrf.mxu2  ;;  %v4669_v11 = vld [vmem:[%s7643_s1 + $0xc18] sm:$0xf0]  ;;  %v4304_v10 = vor.u32 %v4986_v23, %v4301_v12 }
 0x176   :  { %v4429_v15 = vld [vmem:[%s7643_s1 + $0xa38] sm:$0xf0]  ;;  %v4544_v16 = vor.u32 %v5046_v49, %v4541_v5  ;;  %v4672_v17 = vor.u32 %v5078_v7, %v4669_v11 }
 0x177   :  { %3085 = vmatpush.bf16.msra.mxu2 %v4624_v42  ;;  %v4448_v42 = vor.u32 %v5022_v61, %v4445_v62  ;;  %v2808_v9 = vpop.f32.mrf.mxu0  ;;  %v4413_v26 = vld [vmem:[%s7643_s1 + $0xa18] sm:$0xf0] }
 0x178   :  { %3059 = vmatpush.bf16.msra.mxu0 %v4368_v14  ;;  %v5018_v14 = vld [vmem:[%s7643_s1 + $0xa2c] sm:$0xf] }
 0x179   :  { %3048 = vmatpush.bf16.msrb.mxu3 %v4208_v44  ;;  %3072 = vmatpush.bf16.msra.mxu1 %v4496_v38  ;;  %v4285_v44 = vld [vmem:[%s7643_s1 + $0x918] sm:$0xf0]  ;;  %v5014_v38 = vld [vmem:[%s7643_s1 + $0xa0c] sm:$0xf] }
 0x17a   :  { %v4288_v22 = vor.u32 %v4982_v33, %v4285_v44  ;;  %v4416_v51 = vor.u32 %v5014_v38, %v4413_v26 }
 0x17b   :  { %3086 = vmatpush.bf16.msra.mxu2 %v4608_v21  ;;  %v4432_v21 = vor.u32 %v5018_v14, %v4429_v15 }
 0x17c   :  { %3060 = vmatpush.bf16.msra.mxu0 %v4352_v13 }
 0x17d   :  { %3049 = vmatpush.bf16.msrb.mxu3 %v4192_v31  ;;  %3073 = vmatpush.bf16.msra.mxu1 %v4480_v46 }
 0x17f   :  { %3087 = vmatpush.bf16.msra.mxu2 %v4592_v34 }
 0x180   :  { %3061 = vmatpush.bf16.msra.mxu0 %v4336_v36 }
 0x181   :  { %3050 = vmatpush.bf16.msrb.mxu3 %v4176_v1  ;;  %3074 = vmatpush.bf16.msra.mxu1 %v4464_v8 }
 0x183   :  { %3088 = vmatpush.bf16.msra.mxu2 %v4576_v54 }
 0x184   :  { %3062 = vmatpush.bf16.msra.mxu0 %v4320_v60 }
 0x185   :  { %3051 = vmatpush.bf16.msrb.mxu3 %v4160_v63  ;;  %3075 = vmatpush.bf16.msra.mxu1 %v4448_v42 }
 0x187   :  { %3089 = vmatpush.bf16.msra.mxu2 %v4560_v0 }
 0x188   :  { %3052 = vmatmul.bf16.vlgmr.msrb.gmra.mxu3 %v5757_v24  ;;  %3063 = vmatpush.bf16.msra.mxu0 %v4304_v10  ;;  %v5085_v24 = vld [vmem:[%s7645_s2] sm:$0xf] }
 0x189   :  { %3102 = vmatpush.bf16.msra.mxu3 %v4688_v2  ;;  %3076 = vmatpush.bf16.msra.mxu1 %v4432_v21  ;;  %v418_v13 = vperm.slane %v5085_v24, 2  ;;  %v2832_v28 = vpop.f32.mrf.mxu2  ;;  %v419_v2 = vperm.slane %v5085_v24, 3 }
 0x18b   :  { %3090 = vmatpush.bf16.msra.mxu2 %v4544_v16  ;;  %v2845_v4 = vpop.f32.mrf.mxu3  ;;  %v2781_v18 = vadd.f32 %v7538_v43, %v418_v13 }
 0x18c   :  { %3064 = vmatpush.bf16.msra.mxu0 %v4288_v22  ;;  %v2858_v31 = vpop.f32.mrf.mxu0 }
 0x18d   :  { %3103 = vmatpush.bf16.msra.mxu3 %v4672_v17  ;;  %3077 = vmatpush.bf16.msra.mxu1 %v4416_v51  ;;  %v2871_v39 = vpop.f32.mrf.mxu1 }
 0x18e   :  { %3091 = vmatmul.bf16.vlgmr.msra.gmra.mxu2 %v5775_v32  ;;  %v2794_v32 = vadd.f32 %v7540_v45, %v2781_v18 }
 0x18f   :  { %3065 = vmatmul.bf16.vlgmr.msra.gmra.mxu0 %v5770_v30 }
 0x190   :  { %3078 = vmatmul.bf16.vlgmr.msra.gmra.mxu1 %v5759_v25  ;;  %v2807_v25 = vadd.f32 %v7548_v50, %v2794_v32 }
 0x191   :  { %v2834_v34 = vpop.f32.mrf.mxu2 }
 0x192   :  { %v2820_v46 = vadd.f32 %v7580_v59, %v2807_v25 }
 0x193   :  { %v2847_v30 = vpop.f32.mrf.mxu3 }
 0x194   :  { %v2860_v37 = vpop.f32.mrf.mxu0  ;;  %v2833_v47 = vadd.f32 %v2832_v28, %v2820_v46 }
 0x195   :  { %v2873_v40 = vpop.f32.mrf.mxu1 }
 0x196   :  { %v2846_v48 = vadd.f32 %v2845_v4, %v2833_v47 }
 0x198   :  { %4692 = vmatmul.msk.bf16.vlgmr.msra.gmra.mxu3 %vm2429_vm0, %v5874_v27  ;;  %v2859_v36 = vadd.f32 %v2858_v31, %v2846_v48 }
 0x19a   :  { %v2872_v27 = vadd.f32 %v2871_v39, %v2859_v36 }
 0x1a9   :  { %v2884_v35 = vpop.f32.mrf.mxu2 }
 0x1aa   :  { %v2885_v53 = vadd.f32 %v2884_v35, %v2872_v27 }
 0x1ab   :  { %v2897_v52 = vpop.f32.mrf.mxu3 }
 0x1ac   :  { %v2910_v1 = vpop.f32.mrf.mxu0  ;;  %v2898_v29 = vadd.f32 %v2897_v52, %v2885_v53 }
 0x1ad   :  { %v2923_v43 = vpop.f32.mrf.mxu1 }
 0x1ae   :  { %v2911_v55 = vadd.f32 %v2910_v1, %v2898_v29 }
 0x1b0   :  { %v2924_v8 = vadd.f32 %v2923_v43, %v2911_v55 }
 0x1b1   :  { %v2886_v54 = vpop.f32.mrf.mxu2 }
 0x1b3   :  { %v2899_v45 = vpop.f32.mrf.mxu3 }
 0x1b4   :  { %v2912_v20 = vpop.f32.mrf.mxu0 }
 0x1b5   :  { %v2925_v41 = vpop.f32.mrf.mxu1 }
 0x1b9   :  { %v2936_v50 = vpop.f32.mrf.mxu2 }
 0x1ba   :  { %v2937_v56 = vadd.f32 %v2936_v50, %v2924_v8 }
 0x1bc   :  { %v3111_v57 = vmax.f32 %v2937_v56, 0.0 }
 0x1be   :  { %3115 = vst [vmem:[%s7646_s3 + $0x10] sm:$0xff] %v3111_v57 }
 0x1c1   :  { %v2938_v58 = vpop.f32.mrf.mxu2 }
 0x1cb   :  { %v2949_v59 = vpop.f32.mrf.mxu3 }
 0x1cc   :  { %v2962_v60 = vpop.f32.mrf.mxu0  ;;  %v2950_v3 = vadd.f32 %v2949_v59, %v419_v2 }
 0x1cd   :  { %v2975_v61 = vpop.f32.mrf.mxu1 }
 0x1ce   :  { %v2963_v7 = vadd.f32 %v2962_v60, %v2950_v3 }
 0x1d0   :  { %v2976_v9 = vadd.f32 %v2975_v61, %v2963_v7 }
 0x1d1   :  { %v2988_v62 = vpop.f32.mrf.mxu2 }
 0x1d2   :  { %v2989_v33 = vadd.f32 %v2988_v62, %v2976_v9 }
 0x1d3   :  { %v2951_v63 = vpop.f32.mrf.mxu3 }
 0x1d4   :  { %v2964_v23 = vpop.f32.mrf.mxu0 }
 0x1d5   :  { %v2977_v12 = vpop.f32.mrf.mxu1 }
 0x1d9   :  { %v2990_v0 = vpop.f32.mrf.mxu2 }
 0x1eb   :  { %v3001_v49 = vpop.f32.mrf.mxu3 }
 0x1ec   :  { %v3014_v6 = vpop.f32.mrf.mxu0  ;;  %v3002_v44 = vadd.f32 %v3001_v49, %v2989_v33 }
 0x1ed   :  { %v3027_v42 = vpop.f32.mrf.mxu1 }
 0x1ee   :  { %v3015_v16 = vadd.f32 %v3014_v6, %v3002_v44 }
 0x1f0   :  { %v3028_v17 = vadd.f32 %v3027_v42, %v3015_v16 }
 0x1f1   :  { %v3040_v5 = vpop.f32.mrf.mxu2 }
 0x1f2   :  { %v3041_v19 = vadd.f32 %v3040_v5, %v3028_v17 }
 0x1f3   :  { %v3003_v11 = vpop.f32.mrf.mxu3 }
 0x1f4   :  { %v3016_v10 = vpop.f32.mrf.mxu0 }
 0x1f5   :  { %v3029_v14 = vpop.f32.mrf.mxu1 }
 0x1f9   :  { %v3042_v15 = vpop.f32.mrf.mxu2 }
 0x20b   :  { %v3053_v21 = vpop.f32.mrf.mxu3 }
 0x20c   :  { %v3066_v22 = vpop.f32.mrf.mxu0  ;;  %v3054_v38 = vadd.f32 %v3053_v21, %v3041_v19 }
 0x20d   :  { %v3079_v26 = vpop.f32.mrf.mxu1 }
 0x20e   :  { %v3067_v24 = vadd.f32 %v3066_v22, %v3054_v38 }
 0x210   :  { %v3080_v4 = vadd.f32 %v3079_v26, %v3067_v24 }
 0x211   :  { %v3092_v51 = vpop.f32.mrf.mxu2 }
 0x212   :  { %v3093_v39 = vadd.f32 %v3092_v51, %v3080_v4 }
 0x213   :  { %v3055_v13 = vpop.f32.mrf.mxu3 }
 0x214   :  { %v3068_v28 = vpop.f32.mrf.mxu0 }
 0x215   :  { %v3081_v31 = vpop.f32.mrf.mxu1 }
 0x219   :  { %v3094_v18 = vpop.f32.mrf.mxu2 }
 0x21b   :  { %v3105_v32 = vpop.f32.mrf.mxu3 }
 0x21c   :  { %v3106_v34 = vadd.f32 %v3105_v32, %v3093_v39 }
 0x21e   :  { %v3112_v30 = vmax.f32 %v3106_v34, 0.0 }
 0x220   :  { %3116 = vst [vmem:[%s7646_s3 + $0x18] sm:$0xff] %v3112_v30 }
 0x223   :  { %v3107_v37 = vpop.f32.mrf.mxu3 }

</bundles_post_ra>
